<compile_context>
chip_gen: v7x
topology: tpu7x:2x2x1
jax: 0.10.0
libtpu: 0.0.40
codegen_flags: <defaults>
</compile_context>

<pallas_src>
import functools

import jax
import jax.numpy as jnp
from jax.experimental import pallas as pl
from jax.experimental.pallas import tpu as pltpu


# ----------------------------------------------------------------------------
# helpers
# ----------------------------------------------------------------------------
def _round_up(x, m):
    return (x + m - 1) // m * m


def _pick_divisor_tile(m, candidates):
    """Largest candidate that divides m exactly, else the full extent."""
    for t in candidates:
        if m % t == 0:
            return t
    return m


# Scoped VMEM budget: tiles below keep the double-buffered footprint well under
# this on every generation, and 32 MiB is safe against v7x's 64 MiB physical VMEM.
_VMEM_LIMIT = 32 * 1024 * 1024


# ----------------------------------------------------------------------------
# Pallas kernel 1: tiled matmul  o = act(a @ b + bias)   (+ optional BN stats)
# ----------------------------------------------------------------------------
def _matmul_kernel(a_ref, b_ref, bias_ref, o_ref, acc_ref, *, activation):
    @pl.when(pl.program_id(2) == 0)
    def _():
        acc_ref[...] = jnp.zeros_like(acc_ref)

    acc_ref[...] += jnp.dot(a_ref[...], b_ref[...],
                            preferred_element_type=jnp.float32)

    @pl.when(pl.program_id(2) == pl.num_programs(2) - 1)
    def _():
        y = acc_ref[...] + bias_ref[...]
        if activation == "relu":
            y = jnp.maximum(y, 0.0)
        o_ref[...] = y.astype(o_ref.dtype)


def _matmul_stats_kernel(a_ref, b_ref, bias_ref, o_ref, sum_ref, sq_ref,
                         acc_ref, *, activation):
    @pl.when(pl.program_id(2) == 0)
    def _():
        acc_ref[...] = jnp.zeros_like(acc_ref)

    acc_ref[...] += jnp.dot(a_ref[...], b_ref[...],
                            preferred_element_type=jnp.float32)

    @pl.when(pl.program_id(2) == pl.num_programs(2) - 1)
    def _():
        y = acc_ref[...] + bias_ref[...]
        if activation == "relu":
            y = jnp.maximum(y, 0.0)
        o_ref[...] = y.astype(o_ref.dtype)
        # Fused per-channel BatchNorm statistics (f32) — saves a later full
        # read of the activation for the stats pass.
        s = jnp.sum(y, axis=0, keepdims=True)
        q = jnp.sum(y * y, axis=0, keepdims=True)
        sum_ref[...] = jnp.broadcast_to(s, sum_ref.shape)
        sq_ref[...] = jnp.broadcast_to(q, sq_ref.shape)


def pallas_matmul(a, b, bias, *, activation="none", out_dtype=jnp.bfloat16,
                  compute_stats=False):
    """act(a @ b + bias) on the MXU (bf16 operands, f32 VMEM accumulator).

    a: (M, K) (cast to bf16), b: (K, Np) bf16 with Np % 128 == 0 (pre-padded),
    bias: (Np,) f32.  Returns (M, Np) `out_dtype`.  With compute_stats=True
    also returns per-channel sum and sum-of-squares (f32, (Np,)) of the f32
    epilogue result for fused BatchNorm statistics.
    """
    M, K = a.shape
    Np = b.shape[1]
    a = a.astype(jnp.bfloat16)
    bias = bias.reshape(1, Np).astype(jnp.float32)

    # Exact (divisor) M tiling -> no partial edge tiles, stats need no masking.
    tm = _pick_divisor_tile(M, (512, 256, 128, 64, 32, 16, 8))
    tn = 256 if Np % 256 == 0 else 128
    # Whole K per step while the operand tiles stay small; else largest divisor.
    if tm * K * 2 <= (4 << 20) and K * tn * 2 <= (4 << 20):
        tk = K
    else:
        tk = _pick_divisor_tile(K, (2048, 1024, 512, 256, 128))
    # Keep >= 2 blocks on a "parallel" axis when possible so v7x's two
    # TensorCores both get work (harmless ~0.35us extra step elsewhere).
    if (M // tm) * (Np // tn) == 1:
        if M >= 16 and M % 16 == 0:
            tm = M // 2
        elif Np % 256 == 0:
            tn = 128

    gm, gn, gk = M // tm, Np // tn, K // tk
    grid = (gm, gn, gk)

    in_specs = [
        pl.BlockSpec((tm, tk), lambda i, j, k: (i, k)),
        pl.BlockSpec((tk, tn), lambda i, j, k: (k, j)),
        pl.BlockSpec((1, tn), lambda i, j, k: (0, j)),
    ]
    cparams = pltpu.CompilerParams(
        dimension_semantics=("parallel", "parallel", "arbitrary"),
        vmem_limit_bytes=_VMEM_LIMIT)
    flops = 2 * M * Np * K
    bytes_accessed = (2 * (M * K + K * Np)
                      + M * Np * jnp.dtype(out_dtype).itemsize + 4 * Np)
    cost = pl.CostEstimate(flops=flops, transcendentals=0,
                           bytes_accessed=bytes_accessed)

    if compute_stats:
        kernel = functools.partial(_matmul_stats_kernel, activation=activation)
        out, psum, psq = pl.pallas_call(
            kernel,
            out_shape=(jax.ShapeDtypeStruct((M, Np), out_dtype),
                       jax.ShapeDtypeStruct((gm * 8, Np), jnp.float32),
                       jax.ShapeDtypeStruct((gm * 8, Np), jnp.float32)),
            grid=grid,
            in_specs=in_specs,
            out_specs=(pl.BlockSpec((tm, tn), lambda i, j, k: (i, j)),
                       pl.BlockSpec((8, tn), lambda i, j, k: (i, j)),
                       pl.BlockSpec((8, tn), lambda i, j, k: (i, j))),
            scratch_shapes=[pltpu.VMEM((tm, tn), jnp.float32)],
            compiler_params=cparams,
            cost_estimate=cost,
        )(a, b, bias)
        # Tiny (gm, Np) partial reduction in glue (each block wrote 8 identical rows).
        s = psum.reshape(gm, 8, Np)[:, 0, :].sum(axis=0)
        q = psq.reshape(gm, 8, Np)[:, 0, :].sum(axis=0)
        return out, s, q

    kernel = functools.partial(_matmul_kernel, activation=activation)
    out = pl.pallas_call(
        kernel,
        out_shape=jax.ShapeDtypeStruct((M, Np), out_dtype),
        grid=grid,
        in_specs=in_specs,
        out_specs=pl.BlockSpec((tm, tn), lambda i, j, k: (i, j)),
        scratch_shapes=[pltpu.VMEM((tm, tn), jnp.float32)],
        compiler_params=cparams,
        cost_estimate=cost,
    )(a, b, bias)
    return out


# ----------------------------------------------------------------------------
# Pallas kernel 2: BN apply (+ optional residual add) + LeakyReLU(0.2), one pass
# ----------------------------------------------------------------------------
def _bn_act_kernel(x_ref, scale_ref, shift_ref, o_ref):
    y = x_ref[...].astype(jnp.float32) * scale_ref[...] + shift_ref[...]
    o_ref[...] = jnp.where(y > 0, y, 0.2 * y).astype(o_ref.dtype)


def _bn_act_skip_kernel(x_ref, scale_ref, shift_ref, skip_ref, o_ref):
    y = (x_ref[...].astype(jnp.float32) * scale_ref[...] + shift_ref[...]
         + skip_ref[...].astype(jnp.float32))
    o_ref[...] = jnp.where(y > 0, y, 0.2 * y).astype(o_ref.dtype)


def pallas_bn_lrelu(xf, scale, shift, skipf=None):
    """xf/skipf: (M, C) bf16; scale/shift: (1, C) f32.  Output (M, C) bf16."""
    M, C = xf.shape
    tm = _pick_divisor_tile(M, (1024, 512, 256, 128, 64, 32, 16, 8))
    gm = M // tm
    row_spec = pl.BlockSpec((tm, C), lambda i: (i, 0))
    vec_spec = pl.BlockSpec((1, C), lambda i: (0, 0))
    if skipf is None:
        kernel, in_specs, args = _bn_act_kernel, [row_spec, vec_spec, vec_spec], \
            (xf, scale, shift)
    else:
        kernel, in_specs, args = _bn_act_skip_kernel, \
            [row_spec, vec_spec, vec_spec, row_spec], (xf, scale, shift, skipf)
    return pl.pallas_call(
        kernel,
        out_shape=jax.ShapeDtypeStruct((M, C), jnp.bfloat16),
        grid=(gm,),
        in_specs=in_specs,
        out_specs=row_spec,
        compiler_params=pltpu.CompilerParams(
            dimension_semantics=("parallel",), vmem_limit_bytes=_VMEM_LIMIT),
    )(*args)


# ----------------------------------------------------------------------------
# Plain-JAX glue: im2col, conv wrappers, BN scale/shift, upsample
# ----------------------------------------------------------------------------
def _im2col(x, kh, kw, pad):
    # TODO(synk): fuse this tap gather into the conv-matmul grid (in-kernel
    # gather over a spatially padded row band) to remove the kh*kw HBM blow-up.
    B, H, W, C = x.shape
    xp = jnp.pad(x, ((0, 0), (pad, pad), (pad, pad), (0, 0)))
    patches = [xp[:, i:i + H, j:j + W, :] for i in range(kh) for j in range(kw)]
    p = jnp.stack(patches, axis=3)                 # (B, H, W, kh*kw, C)
    return p.reshape(B * H * W, kh * kw * C)


def conv2d(x, wm, bias, kh, kw, pad, *, compute_stats=False,
           out_dtype=jnp.bfloat16):
    """x: NHWC bf16 (channel-padded).  wm: prepped (kh*kw*inC16, Np) bf16."""
    B, H, W, _ = x.shape
    inC16 = wm.shape[0] // (kh * kw)               # true channels rounded to 16
    cols = _im2col(x[..., :inC16], kh, kw, pad)    # (B*H*W, kh*kw*inC16) bf16
    res = pallas_matmul(cols, wm, bias, out_dtype=out_dtype,
                        compute_stats=compute_stats)
    if compute_stats:
        out, s, q = res
        return out.reshape(B, H, W, -1), s, q
    return res.reshape(B, H, W, -1)


def conv1x1(x, wm, bias):
    B, H, W, _ = x.shape
    inC16 = wm.shape[0]
    out = pallas_matmul(x[..., :inC16].reshape(-1, inC16), wm, bias)
    return out.reshape(B, H, W, -1)


def _bn_scale_shift(s, q, n_rows, gamma_p, beta_p, eps=1e-5):
    """Training-mode BatchNorm (batch stats, biased var) from fused sums."""
    mean = s / n_rows
    var = jnp.maximum(q / n_rows - mean * mean, 0.0)
    scale = gamma_p * jax.lax.rsqrt(var + eps)
    shift = beta_p - mean * scale
    C = scale.shape[0]
    return scale.reshape(1, C), shift.reshape(1, C)


def residual_block(x, p):
    B, H, W, _ = x.shape
    n_rows = B * H * W
    skip = conv1x1(x, p["expand_w"], p["expand_b"]) \
        if p["expand_w"] is not None else x
    # conv1 -> (fused stats) -> bn1 + LeakyReLU
    h, s1, q1 = conv2d(x, p["conv1_w"], p["conv1_b"], 3, 3, 1, compute_stats=True)
    sc1, sh1 = _bn_scale_shift(s1, q1, n_rows, p["bn1_g"], p["bn1_b"])
    C1 = h.shape[-1]
    h = pallas_bn_lrelu(h.reshape(-1, C1), sc1, sh1).reshape(B, H, W, C1)
    # conv2 -> (fused stats) -> bn2 + skip + LeakyReLU
    h, s2, q2 = conv2d(h, p["conv2_w"], p["conv2_b"], 3, 3, 1, compute_stats=True)
    sc2, sh2 = _bn_scale_shift(s2, q2, n_rows, p["bn2_g"], p["bn2_b"])
    C2 = h.shape[-1]
    out = pallas_bn_lrelu(h.reshape(-1, C2), sc2, sh2, skipf=skip.reshape(-1, C2))
    return out.reshape(B, H, W, C2)


def upsample2_nearest(x):
    # TODO(synk): fuse the 2x nearest upsample into the consumer conv's gather
    # (row/col index // 2) instead of materializing the 4x tensor.
    return jnp.repeat(jnp.repeat(x, 2, axis=1), 2, axis=2)


# ----------------------------------------------------------------------------
# Parameter construction (PyTorch layout) and one-time pre-transform
# ----------------------------------------------------------------------------
def _normal(key, shape, scale=0.05):
    return scale * jax.random.normal(key, shape, jnp.float32)


def make_residual_block_params(key, inc, outc):
    midc = int(outc * 1.0)
    k = jax.random.split(key, 3)
    return {
        "conv_expand": None if inc == outc else _normal(k[0], (outc, inc, 1, 1)),
        "conv1": _normal(k[1], (midc, inc, 3, 3)),
        "bn1_g": jnp.ones((midc,), jnp.float32),
        "bn1_b": jnp.zeros((midc,), jnp.float32),
        "conv2": _normal(k[2], (outc, midc, 3, 3)),
        "bn2_g": jnp.ones((outc,), jnp.float32),
        "bn2_b": jnp.zeros((outc,), jnp.float32),
    }


def make_decoder_params(key, conv_input_size, img_chn, z_size, conv_channels):
    num_fc = int(conv_input_size[0] * conv_input_size[1] * conv_input_size[2])
    keys = jax.random.split(key, len(conv_channels) + 4)
    params = {
        "fc_w": _normal(keys[0], (num_fc, z_size)),   # PyTorch Linear (out, in)
        "fc_b": _normal(keys[1], (num_fc,)),
        "blocks": [],
    }
    upsample_flags = []   # static Python bools, not part of the jitted pytree
    cc = conv_channels[-1]
    for i, ch in enumerate(conv_channels[::-1]):
        params["blocks"].append(make_residual_block_params(keys[2 + i], cc, ch))
        upsample_flags.append(True)
        cc = ch
    params["blocks"].append(
        make_residual_block_params(keys[2 + len(conv_channels)], cc, cc))
    upsample_flags.append(False)
    params["predict_w"] = _normal(keys[3 + len(conv_channels)], (img_chn, cc, 5, 5))
    params["predict_b"] = jnp.zeros((img_chn,), jnp.float32)
    return params, tuple(upsample_flags)


def _prep_conv(w, bias=None):
    """(outC,inC,kh,kw) -> (kh*kw*inC16, Np) bf16 + (Np,) f32 bias (zero rows /
    cols pad; Np multiple of 128, inC16 multiple of 16)."""
    outC, inC, kh, kw = w.shape
    inC16 = _round_up(inC, 16)
    Np = _round_up(outC, 128)
    wt = jnp.transpose(w, (2, 3, 1, 0))                              # (kh,kw,inC,outC)
    wt = jnp.pad(wt, ((0, 0), (0, 0), (0, inC16 - inC), (0, Np - outC)))
    wm = wt.reshape(kh * kw * inC16, Np).astype(jnp.bfloat16)
    if bias is None:
        b = jnp.zeros((Np,), jnp.float32)
    else:
        b = jnp.pad(bias.astype(jnp.float32), (0, Np - outC))
    return wm, b


def _prep_bn(g, b):
    C = g.shape[0]
    Np = _round_up(C, 128)
    return (jnp.pad(g.astype(jnp.float32), (0, Np - C)),
            jnp.pad(b.astype(jnp.float32), (0, Np - C)))


def prepare_decoder_params(params):
    """One-time weight pre-transform (outside jit): transpose / pad / bf16."""
    num_fc, _ = params["fc_w"].shape
    nfp = _round_up(num_fc, 128)
    prep = {
        "fc_w": jnp.pad(params["fc_w"].T,
                        ((0, 0), (0, nfp - num_fc))).astype(jnp.bfloat16),
        "fc_b": jnp.pad(params["fc_b"].astype(jnp.float32), (0, nfp - num_fc)),
        "blocks": [],
    }
    for bp in params["blocks"]:
        blk = {}
        if bp["conv_expand"] is not None:
            blk["expand_w"], blk["expand_b"] = _prep_conv(bp["conv_expand"])
        else:
            blk["expand_w"], blk["expand_b"] = None, None
        blk["conv1_w"], blk["conv1_b"] = _prep_conv(bp["conv1"])
        blk["conv2_w"], blk["conv2_b"] = _prep_conv(bp["conv2"])
        blk["bn1_g"], blk["bn1_b"] = _prep_bn(bp["bn1_g"], bp["bn1_b"])
        blk["bn2_g"], blk["bn2_b"] = _prep_bn(bp["bn2_g"], bp["bn2_b"])
        prep["blocks"].append(blk)
    prep["predict_w"], prep["predict_b"] = _prep_conv(params["predict_w"],
                                                      params["predict_b"])
    return prep


# ----------------------------------------------------------------------------
# Decoder forward
# ----------------------------------------------------------------------------
def soft_intro_decoder_forward(z, prep, conv_input_size, upsample_flags, img_chn):
    B = z.shape[0]
    z = z.reshape(B, -1)
    C0, H0, W0 = conv_input_size
    num_fc = C0 * H0 * W0
    # fc: Linear + ReLU (fused bias+relu epilogue), bf16 output.
    y = pallas_matmul(z, prep["fc_w"], prep["fc_b"], activation="relu")
    y = y[:, :num_fc].reshape(B, C0, H0, W0).transpose(0, 2, 3, 1)   # NCHW -> NHWC
    cpad = _round_up(C0, 128)
    y = jnp.pad(y, ((0, 0), (0, 0), (0, 0), (0, cpad - C0)))         # lane-dense pad
    for p, up in zip(prep["blocks"], upsample_flags):                # static bools
        y = residual_block(y, p)
        if up:
            y = upsample2_nearest(y)
    y = conv2d(y, prep["predict_w"], prep["predict_b"], 5, 5, 2,
               out_dtype=jnp.float32)
    y = y[..., :img_chn]                                             # drop channel pad
    return y.transpose(0, 3, 1, 2)                                   # NHWC -> NCHW


# ----------------------------------------------------------------------------
# Demo
# ----------------------------------------------------------------------------
if __name__ == "__main__":
    # Small configuration consistent with the module's __init__:
    #   conv_channels=(8, 16), conv_input_size=(16, 4, 4), z_size=16, img_chn=3
    #   -> output spatial size 4 * 2**len(conv_channels) = 16
    conv_channels = (8, 16)
    conv_input_size = (conv_channels[-1], 4, 4)
    z_size = 16
    img_chn = 3
    batch = 2

    root = jax.random.PRNGKey(0)
    k_params, k_z = jax.random.split(root)
    params, upsample_flags = make_decoder_params(
        k_params, conv_input_size, img_chn, z_size, conv_channels)
    prep = prepare_decoder_params(params)        # one-time weight transform
    z = jax.random.normal(k_z, (batch, z_size), jnp.float32)

    fwd = jax.jit(lambda zz, pp: soft_intro_decoder_forward(
        zz, pp, conv_input_size, upsample_flags, img_chn))
    out = jax.block_until_ready(fwd(z, prep))

    expected = (batch, img_chn,
                4 * 2 ** len(conv_channels), 4 * 2 ** len(conv_channels))
    assert out.shape == expected, (out.shape, expected)
    assert out.dtype == jnp.float32
    assert bool(jnp.all(jnp.isfinite(out)))
    print("KERNEL_OK")
</pallas_src>

<mosaic_0001>
module attributes {stable_mosaic.version = 11 : i64} {
  func.func @_matmul_kernel(%arg0: i32, %arg1: i32, %arg2: i32, %arg3: memref<2x16xbf16, #tpu.memory_space<vmem>>, %arg4: memref<16x128xbf16, #tpu.memory_space<vmem>>, %arg5: memref<1x128xf32, #tpu.memory_space<vmem>>, %arg6: memref<2x128xbf16, #tpu.memory_space<vmem>>, %arg7: memref<2x128xf32, #tpu.memory_space<vmem>>) attributes {dimension_semantics = [#tpu.dimension_semantics<parallel>, #tpu.dimension_semantics<parallel>, #tpu.dimension_semantics<arbitrary>], iteration_bounds = array<i64: 1, 2, 1>, scalar_prefetch = 0 : i64, scratch_operands = 1 : i64, tpu.core_type = #tpu.core_type<tc>, window_params = [{transform_indices = @transform_0, window_bounds = array<i64: 2, 16>}, {transform_indices = @transform_1, window_bounds = array<i64: 16, 128>}, {transform_indices = @transform_2, window_bounds = array<i64: 1, 128>}, {transform_indices = @transform_3, window_bounds = array<i64: 2, 128>}]} {
    %c0_i32 = arith.constant 0 : i32
    %0 = arith.cmpi eq, %arg2, %c0_i32 : i32
    %1 = arith.extui %0 : i1 to i32
    %c0_i32_0 = arith.constant 0 : i32
    %2 = arith.cmpi ne, %1, %c0_i32_0 : i32
    scf.if %2 {
      %cst_10 = arith.constant 0.000000e+00 : f32
      %12 = vector.broadcast %cst_10 : f32 to vector<2x128xf32>
      %c0_11 = arith.constant 0 : index
      %c0_12 = arith.constant 0 : index
      %13 = vector.load %arg7[%c0_11, %c0_12] : memref<2x128xf32, #tpu.memory_space<vmem>>, vector<2x128xf32>
      tpu.vector_store %arg7[%c0_11, %c0_12], %12 {strides = array<i32>} : memref<2x128xf32, #tpu.memory_space<vmem>>, vector<2x128xf32>,
    } else {
    }
    %c0 = arith.constant 0 : index
    %c0_1 = arith.constant 0 : index
    %3 = vector.load %arg7[%c0, %c0_1] : memref<2x128xf32, #tpu.memory_space<vmem>>, vector<2x128xf32>
    %c0_2 = arith.constant 0 : index
    %c0_3 = arith.constant 0 : index
    %4 = vector.load %arg3[%c0_2, %c0_3] : memref<2x16xbf16, #tpu.memory_space<vmem>>, vector<2x16xbf16>
    %c0_4 = arith.constant 0 : index
    %c0_5 = arith.constant 0 : index
    %5 = vector.load %arg4[%c0_4, %c0_5] : memref<16x128xbf16, #tpu.memory_space<vmem>>, vector<16x128xbf16>
    %cst = arith.constant dense<0.000000e+00> : vector<2x128xf32>
    %6 = tpu.matmul %4, %5, %cst {dimension_numbers = #tpu.dot_dimension_numbers<[1], [0], [0], [1], [0, 0, 1, 1], [], []>} : vector<2x16xbf16>, vector<16x128xbf16>, vector<2x128xf32> -> vector<2x128xf32>
    %7 = arith.addf %3, %6 : vector<2x128xf32>
    %c0_6 = arith.constant 0 : index
    %c0_7 = arith.constant 0 : index
    %8 = vector.load %arg7[%c0_6, %c0_7] : memref<2x128xf32, #tpu.memory_space<vmem>>, vector<2x128xf32>
    tpu.vector_store %arg7[%c0_6, %c0_7], %7 {strides = array<i32>} : memref<2x128xf32, #tpu.memory_space<vmem>>, vector<2x128xf32>,
    %c0_i32_8 = arith.constant 0 : i32
    %9 = arith.cmpi eq, %arg2, %c0_i32_8 : i32
    %10 = arith.extui %9 : i1 to i32
    %c0_i32_9 = arith.constant 0 : i32
    %11 = arith.cmpi ne, %10, %c0_i32_9 : i32
    scf.if %11 {
      %c0_10 = arith.constant 0 : index
      %c0_11 = arith.constant 0 : index
      %12 = vector.load %arg7[%c0_10, %c0_11] : memref<2x128xf32, #tpu.memory_space<vmem>>, vector<2x128xf32>
      %c0_12 = arith.constant 0 : index
      %c0_13 = arith.constant 0 : index
      %13 = vector.load %arg5[%c0_12, %c0_13] : memref<1x128xf32, #tpu.memory_space<vmem>>, vector<1x128xf32>
      %14 = vector.broadcast %13 : vector<1x128xf32> to vector<2x128xf32>
      %15 = arith.addf %12, %14 : vector<2x128xf32>
      %cst_14 = arith.constant 0.000000e+00 : f32
      %16 = vector.broadcast %cst_14 : f32 to vector<2x128xf32>
      %17 = arith.maximumf %15, %16 : vector<2x128xf32>
      %18 = arith.truncf %17 : vector<2x128xf32> to vector<2x128xbf16>
      %c0_15 = arith.constant 0 : index
      %c0_16 = arith.constant 0 : index
      %19 = vector.load %arg6[%c0_15, %c0_16] : memref<2x128xbf16, #tpu.memory_space<vmem>>, vector<2x128xbf16>
      tpu.vector_store %arg6[%c0_15, %c0_16], %18 {strides = array<i32>} : memref<2x128xbf16, #tpu.memory_space<vmem>>, vector<2x128xbf16>,
    } else {
    }
    return
  }
  func.func @transform_0(%arg0: i32, %arg1: i32, %arg2: i32) -> (i32, i32) {
    %c0_i32 = arith.constant 0 : i32
    return %arg0, %arg2 : i32, i32
  }
  func.func @transform_1(%arg0: i32, %arg1: i32, %arg2: i32) -> (i32, i32) {
    %c0_i32 = arith.constant 0 : i32
    return %arg2, %arg1 : i32, i32
  }
  func.func @transform_2(%arg0: i32, %arg1: i32, %arg2: i32) -> (i32, i32) {
    %c0_i32 = arith.constant 0 : i32
    %c0_i32_0 = arith.constant 0 : i32
    return %c0_i32, %arg1 : i32, i32
  }
  func.func @transform_3(%arg0: i32, %arg1: i32, %arg2: i32) -> (i32, i32) {
    %c0_i32 = arith.constant 0 : i32
    return %arg0, %arg1 : i32, i32
  }
}

module attributes {stable_mosaic.version = 11 : i64} {
  func.func @_matmul_stats_kernel(%arg0: i32, %arg1: i32, %arg2: i32, %arg3: memref<16x144xbf16, #tpu.memory_space<vmem>>, %arg4: memref<144x128xbf16, #tpu.memory_space<vmem>>, %arg5: memref<1x128xf32, #tpu.memory_space<vmem>>, %arg6: memref<16x128xbf16, #tpu.memory_space<vmem>>, %arg7: memref<8x128xf32, #tpu.memory_space<vmem>>, %arg8: memref<8x128xf32, #tpu.memory_space<vmem>>, %arg9: memref<16x128xf32, #tpu.memory_space<vmem>>) attributes {dimension_semantics = [#tpu.dimension_semantics<parallel>, #tpu.dimension_semantics<parallel>, #tpu.dimension_semantics<arbitrary>], iteration_bounds = array<i64: 2, 1, 1>, scalar_prefetch = 0 : i64, scratch_operands = 1 : i64, tpu.core_type = #tpu.core_type<tc>, window_params = [{transform_indices = @transform_0, window_bounds = array<i64: 16, 144>}, {transform_indices = @transform_1, window_bounds = array<i64: 144, 128>}, {transform_indices = @transform_2, window_bounds = array<i64: 1, 128>}, {transform_indices = @transform_3, window_bounds = array<i64: 16, 128>}, {transform_indices = @transform_4, window_bounds = array<i64: 8, 128>}, {transform_indices = @transform_5, window_bounds = array<i64: 8, 128>}]} {
    %c0_i32 = arith.constant 0 : i32
    %0 = arith.cmpi eq, %arg2, %c0_i32 : i32
    %1 = arith.extui %0 : i1 to i32
    %c0_i32_0 = arith.constant 0 : i32
    %2 = arith.cmpi ne, %1, %c0_i32_0 : i32
    scf.if %2 {
      %cst_10 = arith.constant 0.000000e+00 : f32
      %12 = vector.broadcast %cst_10 : f32 to vector<16x128xf32>
      %c0_11 = arith.constant 0 : index
      %c0_12 = arith.constant 0 : index
      %13 = vector.load %arg9[%c0_11, %c0_12] : memref<16x128xf32, #tpu.memory_space<vmem>>, vector<16x128xf32>
      tpu.vector_store %arg9[%c0_11, %c0_12], %12 {strides = array<i32>} : memref<16x128xf32, #tpu.memory_space<vmem>>, vector<16x128xf32>,
    } else {
    }
    %c0 = arith.constant 0 : index
    %c0_1 = arith.constant 0 : index
    %3 = vector.load %arg9[%c0, %c0_1] : memref<16x128xf32, #tpu.memory_space<vmem>>, vector<16x128xf32>
    %c0_2 = arith.constant 0 : index
    %c0_3 = arith.constant 0 : index
    %4 = vector.load %arg3[%c0_2, %c0_3] : memref<16x144xbf16, #tpu.memory_space<vmem>>, vector<16x144xbf16>
    %c0_4 = arith.constant 0 : index
    %c0_5 = arith.constant 0 : index
    %5 = vector.load %arg4[%c0_4, %c0_5] : memref<144x128xbf16, #tpu.memory_space<vmem>>, vector<144x128xbf16>
    %cst = arith.constant dense<0.000000e+00> : vector<16x128xf32>
    %6 = tpu.matmul %4, %5, %cst {dimension_numbers = #tpu.dot_dimension_numbers<[1], [0], [0], [1], [0, 0, 1, 1], [], []>} : vector<16x144xbf16>, vector<144x128xbf16>, vector<16x128xf32> -> vector<16x128xf32>
    %7 = arith.addf %3, %6 : vector<16x128xf32>
    %c0_6 = arith.constant 0 : index
    %c0_7 = arith.constant 0 : index
    %8 = vector.load %arg9[%c0_6, %c0_7] : memref<16x128xf32, #tpu.memory_space<vmem>>, vector<16x128xf32>
    tpu.vector_store %arg9[%c0_6, %c0_7], %7 {strides = array<i32>} : memref<16x128xf32, #tpu.memory_space<vmem>>, vector<16x128xf32>,
    %c0_i32_8 = arith.constant 0 : i32
    %9 = arith.cmpi eq, %arg2, %c0_i32_8 : i32
    %10 = arith.extui %9 : i1 to i32
    %c0_i32_9 = arith.constant 0 : i32
    %11 = arith.cmpi ne, %10, %c0_i32_9 : i32
    scf.if %11 {
      %c0_10 = arith.constant 0 : index
      %c0_11 = arith.constant 0 : index
      %12 = vector.load %arg9[%c0_10, %c0_11] : memref<16x128xf32, #tpu.memory_space<vmem>>, vector<16x128xf32>
      %c0_12 = arith.constant 0 : index
      %c0_13 = arith.constant 0 : index
      %13 = vector.load %arg5[%c0_12, %c0_13] : memref<1x128xf32, #tpu.memory_space<vmem>>, vector<1x128xf32>
      %14 = vector.broadcast %13 : vector<1x128xf32> to vector<16x128xf32>
      %15 = arith.addf %12, %14 : vector<16x128xf32>
      %16 = arith.truncf %15 : vector<16x128xf32> to vector<16x128xbf16>
      %c0_14 = arith.constant 0 : index
      %c0_15 = arith.constant 0 : index
      %17 = vector.load %arg6[%c0_14, %c0_15] : memref<16x128xbf16, #tpu.memory_space<vmem>>, vector<16x128xbf16>
      tpu.vector_store %arg6[%c0_14, %c0_15], %16 {strides = array<i32>} : memref<16x128xbf16, #tpu.memory_space<vmem>>, vector<16x128xbf16>,
      %cst_16 = arith.constant dense<0.000000e+00> : vector<128xf32>
      %18 = vector.multi_reduction <add>, %15, %cst_16 [0] : vector<16x128xf32> to vector<128xf32>
      %19 = vector.shape_cast %18 : vector<128xf32> to vector<1x128xf32>
      %20 = arith.mulf %15, %15 : vector<16x128xf32>
      %cst_17 = arith.constant dense<0.000000e+00> : vector<128xf32>
      %21 = vector.multi_reduction <add>, %20, %cst_17 [0] : vector<16x128xf32> to vector<128xf32>
      %22 = vector.shape_cast %21 : vector<128xf32> to vector<1x128xf32>
      %23 = vector.shape_cast %19 : vector<1x128xf32> to vector<1x128xf32>
      %24 = vector.broadcast %23 : vector<1x128xf32> to vector<8x128xf32>
      %c0_18 = arith.constant 0 : index
      %c0_19 = arith.constant 0 : index
      %25 = vector.load %arg7[%c0_18, %c0_19] : memref<8x128xf32, #tpu.memory_space<vmem>>, vector<8x128xf32>
      tpu.vector_store %arg7[%c0_18, %c0_19], %24 {strides = array<i32>} : memref<8x128xf32, #tpu.memory_space<vmem>>, vector<8x128xf32>,
      %26 = vector.shape_cast %22 : vector<1x128xf32> to vector<1x128xf32>
      %27 = vector.broadcast %26 : vector<1x128xf32> to vector<8x128xf32>
      %c0_20 = arith.constant 0 : index
      %c0_21 = arith.constant 0 : index
      %28 = vector.load %arg8[%c0_20, %c0_21] : memref<8x128xf32, #tpu.memory_space<vmem>>, vector<8x128xf32>
      tpu.vector_store %arg8[%c0_20, %c0_21], %27 {strides = array<i32>} : memref<8x128xf32, #tpu.memory_space<vmem>>, vector<8x128xf32>,
    } else {
    }
    return
  }
  func.func @transform_0(%arg0: i32, %arg1: i32, %arg2: i32) -> (i32, i32) {
    %c0_i32 = arith.constant 0 : i32
    return %arg0, %arg2 : i32, i32
  }
  func.func @transform_1(%arg0: i32, %arg1: i32, %arg2: i32) -> (i32, i32) {
    %c0_i32 = arith.constant 0 : i32
    return %arg2, %arg1 : i32, i32
  }
  func.func @transform_2(%arg0: i32, %arg1: i32, %arg2: i32) -> (i32, i32) {
    %c0_i32 = arith.constant 0 : i32
    %c0_i32_0 = arith.constant 0 : i32
    return %c0_i32, %arg1 : i32, i32
  }
  func.func @transform_3(%arg0: i32, %arg1: i32, %arg2: i32) -> (i32, i32) {
    %c0_i32 = arith.constant 0 : i32
    return %arg0, %arg1 : i32, i32
  }
  func.func @transform_4(%arg0: i32, %arg1: i32, %arg2: i32) -> (i32, i32) {
    %c0_i32 = arith.constant 0 : i32
    return %arg0, %arg1 : i32, i32
  }
  func.func @transform_5(%arg0: i32, %arg1: i32, %arg2: i32) -> (i32, i32) {
    %c0_i32 = arith.constant 0 : i32
    return %arg0, %arg1 : i32, i32
  }
}

module attributes {stable_mosaic.version = 11 : i64} {
  func.func @_bn_act_kernel(%arg0: i32, %arg1: memref<32x128xbf16, #tpu.memory_space<vmem>>, %arg2: memref<1x128xf32, #tpu.memory_space<vmem>>, %arg3: memref<1x128xf32, #tpu.memory_space<vmem>>, %arg4: memref<32x128xbf16, #tpu.memory_space<vmem>>) attributes {dimension_semantics = [#tpu.dimension_semantics<parallel>], iteration_bounds = array<i64: 1>, scalar_prefetch = 0 : i64, scratch_operands = 0 : i64, tpu.core_type = #tpu.core_type<tc>, window_params = [{transform_indices = @transform_0, window_bounds = array<i64: 32, 128>}, {pipeline_mode = #tpu.pipeline_mode<synchronous>, transform_indices = @transform_1, window_bounds = array<i64: 1, 128>}, {pipeline_mode = #tpu.pipeline_mode<synchronous>, transform_indices = @transform_2, window_bounds = array<i64: 1, 128>}, {transform_indices = @transform_3, window_bounds = array<i64: 32, 128>}]} {
    %c0 = arith.constant 0 : index
    %c0_0 = arith.constant 0 : index
    %0 = vector.load %arg1[%c0, %c0_0] : memref<32x128xbf16, #tpu.memory_space<vmem>>, vector<32x128xbf16>
    %1 = arith.extf %0 : vector<32x128xbf16> to vector<32x128xf32>
    %c0_1 = arith.constant 0 : index
    %c0_2 = arith.constant 0 : index
    %2 = vector.load %arg2[%c0_1, %c0_2] : memref<1x128xf32, #tpu.memory_space<vmem>>, vector<1x128xf32>
    %3 = vector.broadcast %2 : vector<1x128xf32> to vector<32x128xf32>
    %4 = arith.mulf %1, %3 : vector<32x128xf32>
    %c0_3 = arith.constant 0 : index
    %c0_4 = arith.constant 0 : index
    %5 = vector.load %arg3[%c0_3, %c0_4] : memref<1x128xf32, #tpu.memory_space<vmem>>, vector<1x128xf32>
    %6 = vector.broadcast %5 : vector<1x128xf32> to vector<32x128xf32>
    %7 = arith.addf %4, %6 : vector<32x128xf32>
    %cst = arith.constant 0.000000e+00 : f32
    %8 = vector.broadcast %cst : f32 to vector<32x128xf32>
    %9 = arith.cmpf ogt, %7, %8 : vector<32x128xf32>
    %cst_5 = arith.constant 2.000000e-01 : f32
    %10 = vector.broadcast %cst_5 : f32 to vector<32x128xf32>
    %11 = arith.mulf %10, %7 : vector<32x128xf32>
    %12 = arith.select %9, %7, %11 : vector<32x128xi1>, vector<32x128xf32>
    %13 = arith.truncf %12 : vector<32x128xf32> to vector<32x128xbf16>
    %c0_6 = arith.constant 0 : index
    %c0_7 = arith.constant 0 : index
    %14 = vector.load %arg4[%c0_6, %c0_7] : memref<32x128xbf16, #tpu.memory_space<vmem>>, vector<32x128xbf16>
    tpu.vector_store %arg4[%c0_6, %c0_7], %13 {strides = array<i32>} : memref<32x128xbf16, #tpu.memory_space<vmem>>, vector<32x128xbf16>,
    return
  }
  func.func @transform_0(%arg0: i32) -> (i32, i32) {
    %c0_i32 = arith.constant 0 : i32
    %c0_i32_0 = arith.constant 0 : i32
    return %arg0, %c0_i32 : i32, i32
  }
  func.func @transform_1(%arg0: i32) -> (i32, i32) {
    %c0_i32 = arith.constant 0 : i32
    %c0_i32_0 = arith.constant 0 : i32
    %c0_i32_1 = arith.constant 0 : i32
    return %c0_i32, %c0_i32_0 : i32, i32
  }
  func.func @transform_2(%arg0: i32) -> (i32, i32) {
    %c0_i32 = arith.constant 0 : i32
    %c0_i32_0 = arith.constant 0 : i32
    %c0_i32_1 = arith.constant 0 : i32
    return %c0_i32, %c0_i32_0 : i32, i32
  }
  func.func @transform_3(%arg0: i32) -> (i32, i32) {
    %c0_i32 = arith.constant 0 : i32
    %c0_i32_0 = arith.constant 0 : i32
    return %arg0, %c0_i32 : i32, i32
  }
}

module attributes {stable_mosaic.version = 11 : i64} {
  func.func @_bn_act_skip_kernel(%arg0: i32, %arg1: memref<32x128xbf16, #tpu.memory_space<vmem>>, %arg2: memref<1x128xf32, #tpu.memory_space<vmem>>, %arg3: memref<1x128xf32, #tpu.memory_space<vmem>>, %arg4: memref<32x128xbf16, #tpu.memory_space<vmem>>, %arg5: memref<32x128xbf16, #tpu.memory_space<vmem>>) attributes {dimension_semantics = [#tpu.dimension_semantics<parallel>], iteration_bounds = array<i64: 1>, scalar_prefetch = 0 : i64, scratch_operands = 0 : i64, tpu.core_type = #tpu.core_type<tc>, window_params = [{transform_indices = @transform_0, window_bounds = array<i64: 32, 128>}, {pipeline_mode = #tpu.pipeline_mode<synchronous>, transform_indices = @transform_1, window_bounds = array<i64: 1, 128>}, {pipeline_mode = #tpu.pipeline_mode<synchronous>, transform_indices = @transform_2, window_bounds = array<i64: 1, 128>}, {transform_indices = @transform_3, window_bounds = array<i64: 32, 128>}, {transform_indices = @transform_4, window_bounds = array<i64: 32, 128>}]} {
    %c0 = arith.constant 0 : index
    %c0_0 = arith.constant 0 : index
    %0 = vector.load %arg1[%c0, %c0_0] : memref<32x128xbf16, #tpu.memory_space<vmem>>, vector<32x128xbf16>
    %1 = arith.extf %0 : vector<32x128xbf16> to vector<32x128xf32>
    %c0_1 = arith.constant 0 : index
    %c0_2 = arith.constant 0 : index
    %2 = vector.load %arg2[%c0_1, %c0_2] : memref<1x128xf32, #tpu.memory_space<vmem>>, vector<1x128xf32>
    %3 = vector.broadcast %2 : vector<1x128xf32> to vector<32x128xf32>
    %4 = arith.mulf %1, %3 : vector<32x128xf32>
    %c0_3 = arith.constant 0 : index
    %c0_4 = arith.constant 0 : index
    %5 = vector.load %arg3[%c0_3, %c0_4] : memref<1x128xf32, #tpu.memory_space<vmem>>, vector<1x128xf32>
    %6 = vector.broadcast %5 : vector<1x128xf32> to vector<32x128xf32>
    %7 = arith.addf %4, %6 : vector<32x128xf32>
    %c0_5 = arith.constant 0 : index
    %c0_6 = arith.constant 0 : index
    %8 = vector.load %arg4[%c0_5, %c0_6] : memref<32x128xbf16, #tpu.memory_space<vmem>>, vector<32x128xbf16>
    %9 = arith.extf %8 : vector<32x128xbf16> to vector<32x128xf32>
    %10 = arith.addf %7, %9 : vector<32x128xf32>
    %cst = arith.constant 0.000000e+00 : f32
    %11 = vector.broadcast %cst : f32 to vector<32x128xf32>
    %12 = arith.cmpf ogt, %10, %11 : vector<32x128xf32>
    %cst_7 = arith.constant 2.000000e-01 : f32
    %13 = vector.broadcast %cst_7 : f32 to vector<32x128xf32>
    %14 = arith.mulf %13, %10 : vector<32x128xf32>
    %15 = arith.select %12, %10, %14 : vector<32x128xi1>, vector<32x128xf32>
    %16 = arith.truncf %15 : vector<32x128xf32> to vector<32x128xbf16>
    %c0_8 = arith.constant 0 : index
    %c0_9 = arith.constant 0 : index
    %17 = vector.load %arg5[%c0_8, %c0_9] : memref<32x128xbf16, #tpu.memory_space<vmem>>, vector<32x128xbf16>
    tpu.vector_store %arg5[%c0_8, %c0_9], %16 {strides = array<i32>} : memref<32x128xbf16, #tpu.memory_space<vmem>>, vector<32x128xbf16>,
    return
  }
  func.func @transform_0(%arg0: i32) -> (i32, i32) {
    %c0_i32 = arith.constant 0 : i32
    %c0_i32_0 = arith.constant 0 : i32
    return %arg0, %c0_i32 : i32, i32
  }
  func.func @transform_1(%arg0: i32) -> (i32, i32) {
    %c0_i32 = arith.constant 0 : i32
    %c0_i32_0 = arith.constant 0 : i32
    %c0_i32_1 = arith.constant 0 : i32
    return %c0_i32, %c0_i32_0 : i32, i32
  }
  func.func @transform_2(%arg0: i32) -> (i32, i32) {
    %c0_i32 = arith.constant 0 : i32
    %c0_i32_0 = arith.constant 0 : i32
    %c0_i32_1 = arith.constant 0 : i32
    return %c0_i32, %c0_i32_0 : i32, i32
  }
  func.func @transform_3(%arg0: i32) -> (i32, i32) {
    %c0_i32 = arith.constant 0 : i32
    %c0_i32_0 = arith.constant 0 : i32
    return %arg0, %c0_i32 : i32, i32
  }
  func.func @transform_4(%arg0: i32) -> (i32, i32) {
    %c0_i32 = arith.constant 0 : i32
    %c0_i32_0 = arith.constant 0 : i32
    return %arg0, %c0_i32 : i32, i32
  }
}

module attributes {stable_mosaic.version = 11 : i64} {
  func.func @_matmul_kernel(%arg0: i32, %arg1: i32, %arg2: i32, %arg3: memref<64x16xbf16, #tpu.memory_space<vmem>>, %arg4: memref<16x128xbf16, #tpu.memory_space<vmem>>, %arg5: memref<1x128xf32, #tpu.memory_space<vmem>>, %arg6: memref<64x128xbf16, #tpu.memory_space<vmem>>, %arg7: memref<64x128xf32, #tpu.memory_space<vmem>>) attributes {dimension_semantics = [#tpu.dimension_semantics<parallel>, #tpu.dimension_semantics<parallel>, #tpu.dimension_semantics<arbitrary>], iteration_bounds = array<i64: 2, 1, 1>, scalar_prefetch = 0 : i64, scratch_operands = 1 : i64, tpu.core_type = #tpu.core_type<tc>, window_params = [{transform_indices = @transform_0, window_bounds = array<i64: 64, 16>}, {transform_indices = @transform_1, window_bounds = array<i64: 16, 128>}, {transform_indices = @transform_2, window_bounds = array<i64: 1, 128>}, {transform_indices = @transform_3, window_bounds = array<i64: 64, 128>}]} {
    %c0_i32 = arith.constant 0 : i32
    %0 = arith.cmpi eq, %arg2, %c0_i32 : i32
    %1 = arith.extui %0 : i1 to i32
    %c0_i32_0 = arith.constant 0 : i32
    %2 = arith.cmpi ne, %1, %c0_i32_0 : i32
    scf.if %2 {
      %cst_10 = arith.constant 0.000000e+00 : f32
      %12 = vector.broadcast %cst_10 : f32 to vector<64x128xf32>
      %c0_11 = arith.constant 0 : index
      %c0_12 = arith.constant 0 : index
      %13 = vector.load %arg7[%c0_11, %c0_12] : memref<64x128xf32, #tpu.memory_space<vmem>>, vector<64x128xf32>
      tpu.vector_store %arg7[%c0_11, %c0_12], %12 {strides = array<i32>} : memref<64x128xf32, #tpu.memory_space<vmem>>, vector<64x128xf32>,
    } else {
    }
    %c0 = arith.constant 0 : index
    %c0_1 = arith.constant 0 : index
    %3 = vector.load %arg7[%c0, %c0_1] : memref<64x128xf32, #tpu.memory_space<vmem>>, vector<64x128xf32>
    %c0_2 = arith.constant 0 : index
    %c0_3 = arith.constant 0 : index
    %4 = vector.load %arg3[%c0_2, %c0_3] : memref<64x16xbf16, #tpu.memory_space<vmem>>, vector<64x16xbf16>
    %c0_4 = arith.constant 0 : index
    %c0_5 = arith.constant 0 : index
    %5 = vector.load %arg4[%c0_4, %c0_5] : memref<16x128xbf16, #tpu.memory_space<vmem>>, vector<16x128xbf16>
    %cst = arith.constant dense<0.000000e+00> : vector<64x128xf32>
    %6 = tpu.matmul %4, %5, %cst {dimension_numbers = #tpu.dot_dimension_numbers<[1], [0], [0], [1], [0, 0, 1, 1], [], []>} : vector<64x16xbf16>, vector<16x128xbf16>, vector<64x128xf32> -> vector<64x128xf32>
    %7 = arith.addf %3, %6 : vector<64x128xf32>
    %c0_6 = arith.constant 0 : index
    %c0_7 = arith.constant 0 : index
    %8 = vector.load %arg7[%c0_6, %c0_7] : memref<64x128xf32, #tpu.memory_space<vmem>>, vector<64x128xf32>
    tpu.vector_store %arg7[%c0_6, %c0_7], %7 {strides = array<i32>} : memref<64x128xf32, #tpu.memory_space<vmem>>, vector<64x128xf32>,
    %c0_i32_8 = arith.constant 0 : i32
    %9 = arith.cmpi eq, %arg2, %c0_i32_8 : i32
    %10 = arith.extui %9 : i1 to i32
    %c0_i32_9 = arith.constant 0 : i32
    %11 = arith.cmpi ne, %10, %c0_i32_9 : i32
    scf.if %11 {
      %c0_10 = arith.constant 0 : index
      %c0_11 = arith.constant 0 : index
      %12 = vector.load %arg7[%c0_10, %c0_11] : memref<64x128xf32, #tpu.memory_space<vmem>>, vector<64x128xf32>
      %c0_12 = arith.constant 0 : index
      %c0_13 = arith.constant 0 : index
      %13 = vector.load %arg5[%c0_12, %c0_13] : memref<1x128xf32, #tpu.memory_space<vmem>>, vector<1x128xf32>
      %14 = vector.broadcast %13 : vector<1x128xf32> to vector<64x128xf32>
      %15 = arith.addf %12, %14 : vector<64x128xf32>
      %16 = arith.truncf %15 : vector<64x128xf32> to vector<64x128xbf16>
      %c0_14 = arith.constant 0 : index
      %c0_15 = arith.constant 0 : index
      %17 = vector.load %arg6[%c0_14, %c0_15] : memref<64x128xbf16, #tpu.memory_space<vmem>>, vector<64x128xbf16>
      tpu.vector_store %arg6[%c0_14, %c0_15], %16 {strides = array<i32>} : memref<64x128xbf16, #tpu.memory_space<vmem>>, vector<64x128xbf16>,
    } else {
    }
    return
  }
  func.func @transform_0(%arg0: i32, %arg1: i32, %arg2: i32) -> (i32, i32) {
    %c0_i32 = arith.constant 0 : i32
    return %arg0, %arg2 : i32, i32
  }
  func.func @transform_1(%arg0: i32, %arg1: i32, %arg2: i32) -> (i32, i32) {
    %c0_i32 = arith.constant 0 : i32
    return %arg2, %arg1 : i32, i32
  }
  func.func @transform_2(%arg0: i32, %arg1: i32, %arg2: i32) -> (i32, i32) {
    %c0_i32 = arith.constant 0 : i32
    %c0_i32_0 = arith.constant 0 : i32
    return %c0_i32, %arg1 : i32, i32
  }
  func.func @transform_3(%arg0: i32, %arg1: i32, %arg2: i32) -> (i32, i32) {
    %c0_i32 = arith.constant 0 : i32
    return %arg0, %arg1 : i32, i32
  }
}

module attributes {stable_mosaic.version = 11 : i64} {
  func.func @_matmul_stats_kernel(%arg0: i32, %arg1: i32, %arg2: i32, %arg3: memref<64x144xbf16, #tpu.memory_space<vmem>>, %arg4: memref<144x128xbf16, #tpu.memory_space<vmem>>, %arg5: memref<1x128xf32, #tpu.memory_space<vmem>>, %arg6: memref<64x128xbf16, #tpu.memory_space<vmem>>, %arg7: memref<8x128xf32, #tpu.memory_space<vmem>>, %arg8: memref<8x128xf32, #tpu.memory_space<vmem>>, %arg9: memref<64x128xf32, #tpu.memory_space<vmem>>) attributes {dimension_semantics = [#tpu.dimension_semantics<parallel>, #tpu.dimension_semantics<parallel>, #tpu.dimension_semantics<arbitrary>], iteration_bounds = array<i64: 2, 1, 1>, scalar_prefetch = 0 : i64, scratch_operands = 1 : i64, tpu.core_type = #tpu.core_type<tc>, window_params = [{transform_indices = @transform_0, window_bounds = array<i64: 64, 144>}, {transform_indices = @transform_1, window_bounds = array<i64: 144, 128>}, {transform_indices = @transform_2, window_bounds = array<i64: 1, 128>}, {transform_indices = @transform_3, window_bounds = array<i64: 64, 128>}, {transform_indices = @transform_4, window_bounds = array<i64: 8, 128>}, {transform_indices = @transform_5, window_bounds = array<i64: 8, 128>}]} {
    %c0_i32 = arith.constant 0 : i32
    %0 = arith.cmpi eq, %arg2, %c0_i32 : i32
    %1 = arith.extui %0 : i1 to i32
    %c0_i32_0 = arith.constant 0 : i32
    %2 = arith.cmpi ne, %1, %c0_i32_0 : i32
    scf.if %2 {
      %cst_10 = arith.constant 0.000000e+00 : f32
      %12 = vector.broadcast %cst_10 : f32 to vector<64x128xf32>
      %c0_11 = arith.constant 0 : index
      %c0_12 = arith.constant 0 : index
      %13 = vector.load %arg9[%c0_11, %c0_12] : memref<64x128xf32, #tpu.memory_space<vmem>>, vector<64x128xf32>
      tpu.vector_store %arg9[%c0_11, %c0_12], %12 {strides = array<i32>} : memref<64x128xf32, #tpu.memory_space<vmem>>, vector<64x128xf32>,
    } else {
    }
    %c0 = arith.constant 0 : index
    %c0_1 = arith.constant 0 : index
    %3 = vector.load %arg9[%c0, %c0_1] : memref<64x128xf32, #tpu.memory_space<vmem>>, vector<64x128xf32>
    %c0_2 = arith.constant 0 : index
    %c0_3 = arith.constant 0 : index
    %4 = vector.load %arg3[%c0_2, %c0_3] : memref<64x144xbf16, #tpu.memory_space<vmem>>, vector<64x144xbf16>
    %c0_4 = arith.constant 0 : index
    %c0_5 = arith.constant 0 : index
    %5 = vector.load %arg4[%c0_4, %c0_5] : memref<144x128xbf16, #tpu.memory_space<vmem>>, vector<144x128xbf16>
    %cst = arith.constant dense<0.000000e+00> : vector<64x128xf32>
    %6 = tpu.matmul %4, %5, %cst {dimension_numbers = #tpu.dot_dimension_numbers<[1], [0], [0], [1], [0, 0, 1, 1], [], []>} : vector<64x144xbf16>, vector<144x128xbf16>, vector<64x128xf32> -> vector<64x128xf32>
    %7 = arith.addf %3, %6 : vector<64x128xf32>
    %c0_6 = arith.constant 0 : index
    %c0_7 = arith.constant 0 : index
    %8 = vector.load %arg9[%c0_6, %c0_7] : memref<64x128xf32, #tpu.memory_space<vmem>>, vector<64x128xf32>
    tpu.vector_store %arg9[%c0_6, %c0_7], %7 {strides = array<i32>} : memref<64x128xf32, #tpu.memory_space<vmem>>, vector<64x128xf32>,
    %c0_i32_8 = arith.constant 0 : i32
    %9 = arith.cmpi eq, %arg2, %c0_i32_8 : i32
    %10 = arith.extui %9 : i1 to i32
    %c0_i32_9 = arith.constant 0 : i32
    %11 = arith.cmpi ne, %10, %c0_i32_9 : i32
    scf.if %11 {
      %c0_10 = arith.constant 0 : index
      %c0_11 = arith.constant 0 : index
      %12 = vector.load %arg9[%c0_10, %c0_11] : memref<64x128xf32, #tpu.memory_space<vmem>>, vector<64x128xf32>
      %c0_12 = arith.constant 0 : index
      %c0_13 = arith.constant 0 : index
      %13 = vector.load %arg5[%c0_12, %c0_13] : memref<1x128xf32, #tpu.memory_space<vmem>>, vector<1x128xf32>
      %14 = vector.broadcast %13 : vector<1x128xf32> to vector<64x128xf32>
      %15 = arith.addf %12, %14 : vector<64x128xf32>
      %16 = arith.truncf %15 : vector<64x128xf32> to vector<64x128xbf16>
      %c0_14 = arith.constant 0 : index
      %c0_15 = arith.constant 0 : index
      %17 = vector.load %arg6[%c0_14, %c0_15] : memref<64x128xbf16, #tpu.memory_space<vmem>>, vector<64x128xbf16>
      tpu.vector_store %arg6[%c0_14, %c0_15], %16 {strides = array<i32>} : memref<64x128xbf16, #tpu.memory_space<vmem>>, vector<64x128xbf16>,
      %cst_16 = arith.constant dense<0.000000e+00> : vector<128xf32>
      %18 = vector.multi_reduction <add>, %15, %cst_16 [0] : vector<64x128xf32> to vector<128xf32>
      %19 = vector.shape_cast %18 : vector<128xf32> to vector<1x128xf32>
      %20 = arith.mulf %15, %15 : vector<64x128xf32>
      %cst_17 = arith.constant dense<0.000000e+00> : vector<128xf32>
      %21 = vector.multi_reduction <add>, %20, %cst_17 [0] : vector<64x128xf32> to vector<128xf32>
      %22 = vector.shape_cast %21 : vector<128xf32> to vector<1x128xf32>
      %23 = vector.shape_cast %19 : vector<1x128xf32> to vector<1x128xf32>
      %24 = vector.broadcast %23 : vector<1x128xf32> to vector<8x128xf32>
      %c0_18 = arith.constant 0 : index
      %c0_19 = arith.constant 0 : index
      %25 = vector.load %arg7[%c0_18, %c0_19] : memref<8x128xf32, #tpu.memory_space<vmem>>, vector<8x128xf32>
      tpu.vector_store %arg7[%c0_18, %c0_19], %24 {strides = array<i32>} : memref<8x128xf32, #tpu.memory_space<vmem>>, vector<8x128xf32>,
      %26 = vector.shape_cast %22 : vector<1x128xf32> to vector<1x128xf32>
      %27 = vector.broadcast %26 : vector<1x128xf32> to vector<8x128xf32>
      %c0_20 = arith.constant 0 : index
      %c0_21 = arith.constant 0 : index
      %28 = vector.load %arg8[%c0_20, %c0_21] : memref<8x128xf32, #tpu.memory_space<vmem>>, vector<8x128xf32>
      tpu.vector_store %arg8[%c0_20, %c0_21], %27 {strides = array<i32>} : memref<8x128xf32, #tpu.memory_space<vmem>>, vector<8x128xf32>,
    } else {
    }
    return
  }
  func.func @transform_0(%arg0: i32, %arg1: i32, %arg2: i32) -> (i32, i32) {
    %c0_i32 = arith.constant 0 : i32
    return %arg0, %arg2 : i32, i32
  }
  func.func @transform_1(%arg0: i32, %arg1: i32, %arg2: i32) -> (i32, i32) {
    %c0_i32 = arith.constant 0 : i32
    return %arg2, %arg1 : i32, i32
  }
  func.func @transform_2(%arg0: i32, %arg1: i32, %arg2: i32) -> (i32, i32) {
    %c0_i32 = arith.constant 0 : i32
    %c0_i32_0 = arith.constant 0 : i32
    return %c0_i32, %arg1 : i32, i32
  }
  func.func @transform_3(%arg0: i32, %arg1: i32, %arg2: i32) -> (i32, i32) {
    %c0_i32 = arith.constant 0 : i32
    return %arg0, %arg1 : i32, i32
  }
  func.func @transform_4(%arg0: i32, %arg1: i32, %arg2: i32) -> (i32, i32) {
    %c0_i32 = arith.constant 0 : i32
    return %arg0, %arg1 : i32, i32
  }
  func.func @transform_5(%arg0: i32, %arg1: i32, %arg2: i32) -> (i32, i32) {
    %c0_i32 = arith.constant 0 : i32
    return %arg0, %arg1 : i32, i32
  }
}

module attributes {stable_mosaic.version = 11 : i64} {
  func.func @_bn_act_kernel(%arg0: i32, %arg1: memref<128x128xbf16, #tpu.memory_space<vmem>>, %arg2: memref<1x128xf32, #tpu.memory_space<vmem>>, %arg3: memref<1x128xf32, #tpu.memory_space<vmem>>, %arg4: memref<128x128xbf16, #tpu.memory_space<vmem>>) attributes {dimension_semantics = [#tpu.dimension_semantics<parallel>], iteration_bounds = array<i64: 1>, scalar_prefetch = 0 : i64, scratch_operands = 0 : i64, tpu.core_type = #tpu.core_type<tc>, window_params = [{transform_indices = @transform_0, window_bounds = array<i64: 128, 128>}, {pipeline_mode = #tpu.pipeline_mode<synchronous>, transform_indices = @transform_1, window_bounds = array<i64: 1, 128>}, {pipeline_mode = #tpu.pipeline_mode<synchronous>, transform_indices = @transform_2, window_bounds = array<i64: 1, 128>}, {transform_indices = @transform_3, window_bounds = array<i64: 128, 128>}]} {
    %c0 = arith.constant 0 : index
    %c0_0 = arith.constant 0 : index
    %0 = vector.load %arg1[%c0, %c0_0] : memref<128x128xbf16, #tpu.memory_space<vmem>>, vector<128x128xbf16>
    %1 = arith.extf %0 : vector<128x128xbf16> to vector<128x128xf32>
    %c0_1 = arith.constant 0 : index
    %c0_2 = arith.constant 0 : index
    %2 = vector.load %arg2[%c0_1, %c0_2] : memref<1x128xf32, #tpu.memory_space<vmem>>, vector<1x128xf32>
    %3 = vector.broadcast %2 : vector<1x128xf32> to vector<128x128xf32>
    %4 = arith.mulf %1, %3 : vector<128x128xf32>
    %c0_3 = arith.constant 0 : index
    %c0_4 = arith.constant 0 : index
    %5 = vector.load %arg3[%c0_3, %c0_4] : memref<1x128xf32, #tpu.memory_space<vmem>>, vector<1x128xf32>
    %6 = vector.broadcast %5 : vector<1x128xf32> to vector<128x128xf32>
    %7 = arith.addf %4, %6 : vector<128x128xf32>
    %cst = arith.constant 0.000000e+00 : f32
    %8 = vector.broadcast %cst : f32 to vector<128x128xf32>
    %9 = arith.cmpf ogt, %7, %8 : vector<128x128xf32>
    %cst_5 = arith.constant 2.000000e-01 : f32
    %10 = vector.broadcast %cst_5 : f32 to vector<128x128xf32>
    %11 = arith.mulf %10, %7 : vector<128x128xf32>
    %12 = arith.select %9, %7, %11 : vector<128x128xi1>, vector<128x128xf32>
    %13 = arith.truncf %12 : vector<128x128xf32> to vector<128x128xbf16>
    %c0_6 = arith.constant 0 : index
    %c0_7 = arith.constant 0 : index
    %14 = vector.load %arg4[%c0_6, %c0_7] : memref<128x128xbf16, #tpu.memory_space<vmem>>, vector<128x128xbf16>
    tpu.vector_store %arg4[%c0_6, %c0_7], %13 {strides = array<i32>} : memref<128x128xbf16, #tpu.memory_space<vmem>>, vector<128x128xbf16>,
    return
  }
  func.func @transform_0(%arg0: i32) -> (i32, i32) {
    %c0_i32 = arith.constant 0 : i32
    %c0_i32_0 = arith.constant 0 : i32
    return %arg0, %c0_i32 : i32, i32
  }
  func.func @transform_1(%arg0: i32) -> (i32, i32) {
    %c0_i32 = arith.constant 0 : i32
    %c0_i32_0 = arith.constant 0 : i32
    %c0_i32_1 = arith.constant 0 : i32
    return %c0_i32, %c0_i32_0 : i32, i32
  }
  func.func @transform_2(%arg0: i32) -> (i32, i32) {
    %c0_i32 = arith.constant 0 : i32
    %c0_i32_0 = arith.constant 0 : i32
    %c0_i32_1 = arith.constant 0 : i32
    return %c0_i32, %c0_i32_0 : i32, i32
  }
  func.func @transform_3(%arg0: i32) -> (i32, i32) {
    %c0_i32 = arith.constant 0 : i32
    %c0_i32_0 = arith.constant 0 : i32
    return %arg0, %c0_i32 : i32, i32
  }
}

module attributes {stable_mosaic.version = 11 : i64} {
  func.func @_bn_act_skip_kernel(%arg0: i32, %arg1: memref<128x128xbf16, #tpu.memory_space<vmem>>, %arg2: memref<1x128xf32, #tpu.memory_space<vmem>>, %arg3: memref<1x128xf32, #tpu.memory_space<vmem>>, %arg4: memref<128x128xbf16, #tpu.memory_space<vmem>>, %arg5: memref<128x128xbf16, #tpu.memory_space<vmem>>) attributes {dimension_semantics = [#tpu.dimension_semantics<parallel>], iteration_bounds = array<i64: 1>, scalar_prefetch = 0 : i64, scratch_operands = 0 : i64, tpu.core_type = #tpu.core_type<tc>, window_params = [{transform_indices = @transform_0, window_bounds = array<i64: 128, 128>}, {pipeline_mode = #tpu.pipeline_mode<synchronous>, transform_indices = @transform_1, window_bounds = array<i64: 1, 128>}, {pipeline_mode = #tpu.pipeline_mode<synchronous>, transform_indices = @transform_2, window_bounds = array<i64: 1, 128>}, {transform_indices = @transform_3, window_bounds = array<i64: 128, 128>}, {transform_indices = @transform_4, window_bounds = array<i64: 128, 128>}]} {
    %c0 = arith.constant 0 : index
    %c0_0 = arith.constant 0 : index
    %0 = vector.load %arg1[%c0, %c0_0] : memref<128x128xbf16, #tpu.memory_space<vmem>>, vector<128x128xbf16>
    %1 = arith.extf %0 : vector<128x128xbf16> to vector<128x128xf32>
    %c0_1 = arith.constant 0 : index
    %c0_2 = arith.constant 0 : index
    %2 = vector.load %arg2[%c0_1, %c0_2] : memref<1x128xf32, #tpu.memory_space<vmem>>, vector<1x128xf32>
    %3 = vector.broadcast %2 : vector<1x128xf32> to vector<128x128xf32>
    %4 = arith.mulf %1, %3 : vector<128x128xf32>
    %c0_3 = arith.constant 0 : index
    %c0_4 = arith.constant 0 : index
    %5 = vector.load %arg3[%c0_3, %c0_4] : memref<1x128xf32, #tpu.memory_space<vmem>>, vector<1x128xf32>
    %6 = vector.broadcast %5 : vector<1x128xf32> to vector<128x128xf32>
    %7 = arith.addf %4, %6 : vector<128x128xf32>
    %c0_5 = arith.constant 0 : index
    %c0_6 = arith.constant 0 : index
    %8 = vector.load %arg4[%c0_5, %c0_6] : memref<128x128xbf16, #tpu.memory_space<vmem>>, vector<128x128xbf16>
    %9 = arith.extf %8 : vector<128x128xbf16> to vector<128x128xf32>
    %10 = arith.addf %7, %9 : vector<128x128xf32>
    %cst = arith.constant 0.000000e+00 : f32
    %11 = vector.broadcast %cst : f32 to vector<128x128xf32>
    %12 = arith.cmpf ogt, %10, %11 : vector<128x128xf32>
    %cst_7 = arith.constant 2.000000e-01 : f32
    %13 = vector.broadcast %cst_7 : f32 to vector<128x128xf32>
    %14 = arith.mulf %13, %10 : vector<128x128xf32>
    %15 = arith.select %12, %10, %14 : vector<128x128xi1>, vector<128x128xf32>
    %16 = arith.truncf %15 : vector<128x128xf32> to vector<128x128xbf16>
    %c0_8 = arith.constant 0 : index
    %c0_9 = arith.constant 0 : index
    %17 = vector.load %arg5[%c0_8, %c0_9] : memref<128x128xbf16, #tpu.memory_space<vmem>>, vector<128x128xbf16>
    tpu.vector_store %arg5[%c0_8, %c0_9], %16 {strides = array<i32>} : memref<128x128xbf16, #tpu.memory_space<vmem>>, vector<128x128xbf16>,
    return
  }
  func.func @transform_0(%arg0: i32) -> (i32, i32) {
    %c0_i32 = arith.constant 0 : i32
    %c0_i32_0 = arith.constant 0 : i32
    return %arg0, %c0_i32 : i32, i32
  }
  func.func @transform_1(%arg0: i32) -> (i32, i32) {
    %c0_i32 = arith.constant 0 : i32
    %c0_i32_0 = arith.constant 0 : i32
    %c0_i32_1 = arith.constant 0 : i32
    return %c0_i32, %c0_i32_0 : i32, i32
  }
  func.func @transform_2(%arg0: i32) -> (i32, i32) {
    %c0_i32 = arith.constant 0 : i32
    %c0_i32_0 = arith.constant 0 : i32
    %c0_i32_1 = arith.constant 0 : i32
    return %c0_i32, %c0_i32_0 : i32, i32
  }
  func.func @transform_3(%arg0: i32) -> (i32, i32) {
    %c0_i32 = arith.constant 0 : i32
    %c0_i32_0 = arith.constant 0 : i32
    return %arg0, %c0_i32 : i32, i32
  }
  func.func @transform_4(%arg0: i32) -> (i32, i32) {
    %c0_i32 = arith.constant 0 : i32
    %c0_i32_0 = arith.constant 0 : i32
    return %arg0, %c0_i32 : i32, i32
  }
}

module attributes {stable_mosaic.version = 11 : i64} {
  func.func @_bn_act_kernel(%arg0: i32, %arg1: memref<512x128xbf16, #tpu.memory_space<vmem>>, %arg2: memref<1x128xf32, #tpu.memory_space<vmem>>, %arg3: memref<1x128xf32, #tpu.memory_space<vmem>>, %arg4: memref<512x128xbf16, #tpu.memory_space<vmem>>) attributes {dimension_semantics = [#tpu.dimension_semantics<parallel>], iteration_bounds = array<i64: 1>, scalar_prefetch = 0 : i64, scratch_operands = 0 : i64, tpu.core_type = #tpu.core_type<tc>, window_params = [{transform_indices = @transform_0, window_bounds = array<i64: 512, 128>}, {pipeline_mode = #tpu.pipeline_mode<synchronous>, transform_indices = @transform_1, window_bounds = array<i64: 1, 128>}, {pipeline_mode = #tpu.pipeline_mode<synchronous>, transform_indices = @transform_2, window_bounds = array<i64: 1, 128>}, {transform_indices = @transform_3, window_bounds = array<i64: 512, 128>}]} {
    %c0 = arith.constant 0 : index
    %c0_0 = arith.constant 0 : index
    %0 = vector.load %arg1[%c0, %c0_0] : memref<512x128xbf16, #tpu.memory_space<vmem>>, vector<512x128xbf16>
    %1 = arith.extf %0 : vector<512x128xbf16> to vector<512x128xf32>
    %c0_1 = arith.constant 0 : index
    %c0_2 = arith.constant 0 : index
    %2 = vector.load %arg2[%c0_1, %c0_2] : memref<1x128xf32, #tpu.memory_space<vmem>>, vector<1x128xf32>
    %3 = vector.broadcast %2 : vector<1x128xf32> to vector<512x128xf32>
    %4 = arith.mulf %1, %3 : vector<512x128xf32>
    %c0_3 = arith.constant 0 : index
    %c0_4 = arith.constant 0 : index
    %5 = vector.load %arg3[%c0_3, %c0_4] : memref<1x128xf32, #tpu.memory_space<vmem>>, vector<1x128xf32>
    %6 = vector.broadcast %5 : vector<1x128xf32> to vector<512x128xf32>
    %7 = arith.addf %4, %6 : vector<512x128xf32>
    %cst = arith.constant 0.000000e+00 : f32
    %8 = vector.broadcast %cst : f32 to vector<512x128xf32>
    %9 = arith.cmpf ogt, %7, %8 : vector<512x128xf32>
    %cst_5 = arith.constant 2.000000e-01 : f32
    %10 = vector.broadcast %cst_5 : f32 to vector<512x128xf32>
    %11 = arith.mulf %10, %7 : vector<512x128xf32>
    %12 = arith.select %9, %7, %11 : vector<512x128xi1>, vector<512x128xf32>
    %13 = arith.truncf %12 : vector<512x128xf32> to vector<512x128xbf16>
    %c0_6 = arith.constant 0 : index
    %c0_7 = arith.constant 0 : index
    %14 = vector.load %arg4[%c0_6, %c0_7] : memref<512x128xbf16, #tpu.memory_space<vmem>>, vector<512x128xbf16>
    tpu.vector_store %arg4[%c0_6, %c0_7], %13 {strides = array<i32>} : memref<512x128xbf16, #tpu.memory_space<vmem>>, vector<512x128xbf16>,
    return
  }
  func.func @transform_0(%arg0: i32) -> (i32, i32) {
    %c0_i32 = arith.constant 0 : i32
    %c0_i32_0 = arith.constant 0 : i32
    return %arg0, %c0_i32 : i32, i32
  }
  func.func @transform_1(%arg0: i32) -> (i32, i32) {
    %c0_i32 = arith.constant 0 : i32
    %c0_i32_0 = arith.constant 0 : i32
    %c0_i32_1 = arith.constant 0 : i32
    return %c0_i32, %c0_i32_0 : i32, i32
  }
  func.func @transform_2(%arg0: i32) -> (i32, i32) {
    %c0_i32 = arith.constant 0 : i32
    %c0_i32_0 = arith.constant 0 : i32
    %c0_i32_1 = arith.constant 0 : i32
    return %c0_i32, %c0_i32_0 : i32, i32
  }
  func.func @transform_3(%arg0: i32) -> (i32, i32) {
    %c0_i32 = arith.constant 0 : i32
    %c0_i32_0 = arith.constant 0 : i32
    return %arg0, %c0_i32 : i32, i32
  }
}

module attributes {stable_mosaic.version = 11 : i64} {
  func.func @_matmul_stats_kernel(%arg0: i32, %arg1: i32, %arg2: i32, %arg3: memref<256x144xbf16, #tpu.memory_space<vmem>>, %arg4: memref<144x128xbf16, #tpu.memory_space<vmem>>, %arg5: memref<1x128xf32, #tpu.memory_space<vmem>>, %arg6: memref<256x128xbf16, #tpu.memory_space<vmem>>, %arg7: memref<8x128xf32, #tpu.memory_space<vmem>>, %arg8: memref<8x128xf32, #tpu.memory_space<vmem>>, %arg9: memref<256x128xf32, #tpu.memory_space<vmem>>) attributes {dimension_semantics = [#tpu.dimension_semantics<parallel>, #tpu.dimension_semantics<parallel>, #tpu.dimension_semantics<arbitrary>], iteration_bounds = array<i64: 2, 1, 1>, scalar_prefetch = 0 : i64, scratch_operands = 1 : i64, tpu.core_type = #tpu.core_type<tc>, window_params = [{transform_indices = @transform_0, window_bounds = array<i64: 256, 144>}, {transform_indices = @transform_1, window_bounds = array<i64: 144, 128>}, {transform_indices = @transform_2, window_bounds = array<i64: 1, 128>}, {transform_indices = @transform_3, window_bounds = array<i64: 256, 128>}, {transform_indices = @transform_4, window_bounds = array<i64: 8, 128>}, {transform_indices = @transform_5, window_bounds = array<i64: 8, 128>}]} {
    %c0_i32 = arith.constant 0 : i32
    %0 = arith.cmpi eq, %arg2, %c0_i32 : i32
    %1 = arith.extui %0 : i1 to i32
    %c0_i32_0 = arith.constant 0 : i32
    %2 = arith.cmpi ne, %1, %c0_i32_0 : i32
    scf.if %2 {
      %cst_10 = arith.constant 0.000000e+00 : f32
      %12 = vector.broadcast %cst_10 : f32 to vector<256x128xf32>
      %c0_11 = arith.constant 0 : index
      %c0_12 = arith.constant 0 : index
      %13 = vector.load %arg9[%c0_11, %c0_12] : memref<256x128xf32, #tpu.memory_space<vmem>>, vector<256x128xf32>
      tpu.vector_store %arg9[%c0_11, %c0_12], %12 {strides = array<i32>} : memref<256x128xf32, #tpu.memory_space<vmem>>, vector<256x128xf32>,
    } else {
    }
    %c0 = arith.constant 0 : index
    %c0_1 = arith.constant 0 : index
    %3 = vector.load %arg9[%c0, %c0_1] : memref<256x128xf32, #tpu.memory_space<vmem>>, vector<256x128xf32>
    %c0_2 = arith.constant 0 : index
    %c0_3 = arith.constant 0 : index
    %4 = vector.load %arg3[%c0_2, %c0_3] : memref<256x144xbf16, #tpu.memory_space<vmem>>, vector<256x144xbf16>
    %c0_4 = arith.constant 0 : index
    %c0_5 = arith.constant 0 : index
    %5 = vector.load %arg4[%c0_4, %c0_5] : memref<144x128xbf16, #tpu.memory_space<vmem>>, vector<144x128xbf16>
    %cst = arith.constant dense<0.000000e+00> : vector<256x128xf32>
    %6 = tpu.matmul %4, %5, %cst {dimension_numbers = #tpu.dot_dimension_numbers<[1], [0], [0], [1], [0, 0, 1, 1], [], []>} : vector<256x144xbf16>, vector<144x128xbf16>, vector<256x128xf32> -> vector<256x128xf32>
    %7 = arith.addf %3, %6 : vector<256x128xf32>
    %c0_6 = arith.constant 0 : index
    %c0_7 = arith.constant 0 : index
    %8 = vector.load %arg9[%c0_6, %c0_7] : memref<256x128xf32, #tpu.memory_space<vmem>>, vector<256x128xf32>
    tpu.vector_store %arg9[%c0_6, %c0_7], %7 {strides = array<i32>} : memref<256x128xf32, #tpu.memory_space<vmem>>, vector<256x128xf32>,
    %c0_i32_8 = arith.constant 0 : i32
    %9 = arith.cmpi eq, %arg2, %c0_i32_8 : i32
    %10 = arith.extui %9 : i1 to i32
    %c0_i32_9 = arith.constant 0 : i32
    %11 = arith.cmpi ne, %10, %c0_i32_9 : i32
    scf.if %11 {
      %c0_10 = arith.constant 0 : index
      %c0_11 = arith.constant 0 : index
      %12 = vector.load %arg9[%c0_10, %c0_11] : memref<256x128xf32, #tpu.memory_space<vmem>>, vector<256x128xf32>
      %c0_12 = arith.constant 0 : index
      %c0_13 = arith.constant 0 : index
      %13 = vector.load %arg5[%c0_12, %c0_13] : memref<1x128xf32, #tpu.memory_space<vmem>>, vector<1x128xf32>
      %14 = vector.broadcast %13 : vector<1x128xf32> to vector<256x128xf32>
      %15 = arith.addf %12, %14 : vector<256x128xf32>
      %16 = arith.truncf %15 : vector<256x128xf32> to vector<256x128xbf16>
      %c0_14 = arith.constant 0 : index
      %c0_15 = arith.constant 0 : index
      %17 = vector.load %arg6[%c0_14, %c0_15] : memref<256x128xbf16, #tpu.memory_space<vmem>>, vector<256x128xbf16>
      tpu.vector_store %arg6[%c0_14, %c0_15], %16 {strides = array<i32>} : memref<256x128xbf16, #tpu.memory_space<vmem>>, vector<256x128xbf16>,
      %cst_16 = arith.constant dense<0.000000e+00> : vector<128xf32>
      %18 = vector.multi_reduction <add>, %15, %cst_16 [0] : vector<256x128xf32> to vector<128xf32>
      %19 = vector.shape_cast %18 : vector<128xf32> to vector<1x128xf32>
      %20 = arith.mulf %15, %15 : vector<256x128xf32>
      %cst_17 = arith.constant dense<0.000000e+00> : vector<128xf32>
      %21 = vector.multi_reduction <add>, %20, %cst_17 [0] : vector<256x128xf32> to vector<128xf32>
      %22 = vector.shape_cast %21 : vector<128xf32> to vector<1x128xf32>
      %23 = vector.shape_cast %19 : vector<1x128xf32> to vector<1x128xf32>
      %24 = vector.broadcast %23 : vector<1x128xf32> to vector<8x128xf32>
      %c0_18 = arith.constant 0 : index
      %c0_19 = arith.constant 0 : index
      %25 = vector.load %arg7[%c0_18, %c0_19] : memref<8x128xf32, #tpu.memory_space<vmem>>, vector<8x128xf32>
      tpu.vector_store %arg7[%c0_18, %c0_19], %24 {strides = array<i32>} : memref<8x128xf32, #tpu.memory_space<vmem>>, vector<8x128xf32>,
      %26 = vector.shape_cast %22 : vector<1x128xf32> to vector<1x128xf32>
      %27 = vector.broadcast %26 : vector<1x128xf32> to vector<8x128xf32>
      %c0_20 = arith.constant 0 : index
      %c0_21 = arith.constant 0 : index
      %28 = vector.load %arg8[%c0_20, %c0_21] : memref<8x128xf32, #tpu.memory_space<vmem>>, vector<8x128xf32>
      tpu.vector_store %arg8[%c0_20, %c0_21], %27 {strides = array<i32>} : memref<8x128xf32, #tpu.memory_space<vmem>>, vector<8x128xf32>,
    } else {
    }
    return
  }
  func.func @transform_0(%arg0: i32, %arg1: i32, %arg2: i32) -> (i32, i32) {
    %c0_i32 = arith.constant 0 : i32
    return %arg0, %arg2 : i32, i32
  }
  func.func @transform_1(%arg0: i32, %arg1: i32, %arg2: i32) -> (i32, i32) {
    %c0_i32 = arith.constant 0 : i32
    return %arg2, %arg1 : i32, i32
  }
  func.func @transform_2(%arg0: i32, %arg1: i32, %arg2: i32) -> (i32, i32) {
    %c0_i32 = arith.constant 0 : i32
    %c0_i32_0 = arith.constant 0 : i32
    return %c0_i32, %arg1 : i32, i32
  }
  func.func @transform_3(%arg0: i32, %arg1: i32, %arg2: i32) -> (i32, i32) {
    %c0_i32 = arith.constant 0 : i32
    return %arg0, %arg1 : i32, i32
  }
  func.func @transform_4(%arg0: i32, %arg1: i32, %arg2: i32) -> (i32, i32) {
    %c0_i32 = arith.constant 0 : i32
    return %arg0, %arg1 : i32, i32
  }
  func.func @transform_5(%arg0: i32, %arg1: i32, %arg2: i32) -> (i32, i32) {
    %c0_i32 = arith.constant 0 : i32
    return %arg0, %arg1 : i32, i32
  }
}

module attributes {stable_mosaic.version = 11 : i64} {
  func.func @_bn_act_skip_kernel(%arg0: i32, %arg1: memref<512x128xbf16, #tpu.memory_space<vmem>>, %arg2: memref<1x128xf32, #tpu.memory_space<vmem>>, %arg3: memref<1x128xf32, #tpu.memory_space<vmem>>, %arg4: memref<512x128xbf16, #tpu.memory_space<vmem>>, %arg5: memref<512x128xbf16, #tpu.memory_space<vmem>>) attributes {dimension_semantics = [#tpu.dimension_semantics<parallel>], iteration_bounds = array<i64: 1>, scalar_prefetch = 0 : i64, scratch_operands = 0 : i64, tpu.core_type = #tpu.core_type<tc>, window_params = [{transform_indices = @transform_0, window_bounds = array<i64: 512, 128>}, {pipeline_mode = #tpu.pipeline_mode<synchronous>, transform_indices = @transform_1, window_bounds = array<i64: 1, 128>}, {pipeline_mode = #tpu.pipeline_mode<synchronous>, transform_indices = @transform_2, window_bounds = array<i64: 1, 128>}, {transform_indices = @transform_3, window_bounds = array<i64: 512, 128>}, {transform_indices = @transform_4, window_bounds = array<i64: 512, 128>}]} {
    %c0 = arith.constant 0 : index
    %c0_0 = arith.constant 0 : index
    %0 = vector.load %arg1[%c0, %c0_0] : memref<512x128xbf16, #tpu.memory_space<vmem>>, vector<512x128xbf16>
    %1 = arith.extf %0 : vector<512x128xbf16> to vector<512x128xf32>
    %c0_1 = arith.constant 0 : index
    %c0_2 = arith.constant 0 : index
    %2 = vector.load %arg2[%c0_1, %c0_2] : memref<1x128xf32, #tpu.memory_space<vmem>>, vector<1x128xf32>
    %3 = vector.broadcast %2 : vector<1x128xf32> to vector<512x128xf32>
    %4 = arith.mulf %1, %3 : vector<512x128xf32>
    %c0_3 = arith.constant 0 : index
    %c0_4 = arith.constant 0 : index
    %5 = vector.load %arg3[%c0_3, %c0_4] : memref<1x128xf32, #tpu.memory_space<vmem>>, vector<1x128xf32>
    %6 = vector.broadcast %5 : vector<1x128xf32> to vector<512x128xf32>
    %7 = arith.addf %4, %6 : vector<512x128xf32>
    %c0_5 = arith.constant 0 : index
    %c0_6 = arith.constant 0 : index
    %8 = vector.load %arg4[%c0_5, %c0_6] : memref<512x128xbf16, #tpu.memory_space<vmem>>, vector<512x128xbf16>
    %9 = arith.extf %8 : vector<512x128xbf16> to vector<512x128xf32>
    %10 = arith.addf %7, %9 : vector<512x128xf32>
    %cst = arith.constant 0.000000e+00 : f32
    %11 = vector.broadcast %cst : f32 to vector<512x128xf32>
    %12 = arith.cmpf ogt, %10, %11 : vector<512x128xf32>
    %cst_7 = arith.constant 2.000000e-01 : f32
    %13 = vector.broadcast %cst_7 : f32 to vector<512x128xf32>
    %14 = arith.mulf %13, %10 : vector<512x128xf32>
    %15 = arith.select %12, %10, %14 : vector<512x128xi1>, vector<512x128xf32>
    %16 = arith.truncf %15 : vector<512x128xf32> to vector<512x128xbf16>
    %c0_8 = arith.constant 0 : index
    %c0_9 = arith.constant 0 : index
    %17 = vector.load %arg5[%c0_8, %c0_9] : memref<512x128xbf16, #tpu.memory_space<vmem>>, vector<512x128xbf16>
    tpu.vector_store %arg5[%c0_8, %c0_9], %16 {strides = array<i32>} : memref<512x128xbf16, #tpu.memory_space<vmem>>, vector<512x128xbf16>,
    return
  }
  func.func @transform_0(%arg0: i32) -> (i32, i32) {
    %c0_i32 = arith.constant 0 : i32
    %c0_i32_0 = arith.constant 0 : i32
    return %arg0, %c0_i32 : i32, i32
  }
  func.func @transform_1(%arg0: i32) -> (i32, i32) {
    %c0_i32 = arith.constant 0 : i32
    %c0_i32_0 = arith.constant 0 : i32
    %c0_i32_1 = arith.constant 0 : i32
    return %c0_i32, %c0_i32_0 : i32, i32
  }
  func.func @transform_2(%arg0: i32) -> (i32, i32) {
    %c0_i32 = arith.constant 0 : i32
    %c0_i32_0 = arith.constant 0 : i32
    %c0_i32_1 = arith.constant 0 : i32
    return %c0_i32, %c0_i32_0 : i32, i32
  }
  func.func @transform_3(%arg0: i32) -> (i32, i32) {
    %c0_i32 = arith.constant 0 : i32
    %c0_i32_0 = arith.constant 0 : i32
    return %arg0, %c0_i32 : i32, i32
  }
  func.func @transform_4(%arg0: i32) -> (i32, i32) {
    %c0_i32 = arith.constant 0 : i32
    %c0_i32_0 = arith.constant 0 : i32
    return %arg0, %c0_i32 : i32, i32
  }
}

module attributes {stable_mosaic.version = 11 : i64} {
  func.func @_matmul_kernel(%arg0: i32, %arg1: i32, %arg2: i32, %arg3: memref<256x400xbf16, #tpu.memory_space<vmem>>, %arg4: memref<400x128xbf16, #tpu.memory_space<vmem>>, %arg5: memref<1x128xf32, #tpu.memory_space<vmem>>, %arg6: memref<256x128xf32, #tpu.memory_space<vmem>>, %arg7: memref<256x128xf32, #tpu.memory_space<vmem>>) attributes {dimension_semantics = [#tpu.dimension_semantics<parallel>, #tpu.dimension_semantics<parallel>, #tpu.dimension_semantics<arbitrary>], iteration_bounds = array<i64: 2, 1, 1>, scalar_prefetch = 0 : i64, scratch_operands = 1 : i64, tpu.core_type = #tpu.core_type<tc>, window_params = [{transform_indices = @transform_0, window_bounds = array<i64: 256, 400>}, {transform_indices = @transform_1, window_bounds = array<i64: 400, 128>}, {transform_indices = @transform_2, window_bounds = array<i64: 1, 128>}, {transform_indices = @transform_3, window_bounds = array<i64: 256, 128>}]} {
    %c0_i32 = arith.constant 0 : i32
    %0 = arith.cmpi eq, %arg2, %c0_i32 : i32
    %1 = arith.extui %0 : i1 to i32
    %c0_i32_0 = arith.constant 0 : i32
    %2 = arith.cmpi ne, %1, %c0_i32_0 : i32
    scf.if %2 {
      %cst_10 = arith.constant 0.000000e+00 : f32
      %12 = vector.broadcast %cst_10 : f32 to vector<256x128xf32>
      %c0_11 = arith.constant 0 : index
      %c0_12 = arith.constant 0 : index
      %13 = vector.load %arg7[%c0_11, %c0_12] : memref<256x128xf32, #tpu.memory_space<vmem>>, vector<256x128xf32>
      tpu.vector_store %arg7[%c0_11, %c0_12], %12 {strides = array<i32>} : memref<256x128xf32, #tpu.memory_space<vmem>>, vector<256x128xf32>,
    } else {
    }
    %c0 = arith.constant 0 : index
    %c0_1 = arith.constant 0 : index
    %3 = vector.load %arg7[%c0, %c0_1] : memref<256x128xf32, #tpu.memory_space<vmem>>, vector<256x128xf32>
    %c0_2 = arith.constant 0 : index
    %c0_3 = arith.constant 0 : index
    %4 = vector.load %arg3[%c0_2, %c0_3] : memref<256x400xbf16, #tpu.memory_space<vmem>>, vector<256x400xbf16>
    %c0_4 = arith.constant 0 : index
    %c0_5 = arith.constant 0 : index
    %5 = vector.load %arg4[%c0_4, %c0_5] : memref<400x128xbf16, #tpu.memory_space<vmem>>, vector<400x128xbf16>
    %cst = arith.constant dense<0.000000e+00> : vector<256x128xf32>
    %6 = tpu.matmul %4, %5, %cst {dimension_numbers = #tpu.dot_dimension_numbers<[1], [0], [0], [1], [0, 0, 1, 1], [], []>} : vector<256x400xbf16>, vector<400x128xbf16>, vector<256x128xf32> -> vector<256x128xf32>
    %7 = arith.addf %3, %6 : vector<256x128xf32>
    %c0_6 = arith.constant 0 : index
    %c0_7 = arith.constant 0 : index
    %8 = vector.load %arg7[%c0_6, %c0_7] : memref<256x128xf32, #tpu.memory_space<vmem>>, vector<256x128xf32>
    tpu.vector_store %arg7[%c0_6, %c0_7], %7 {strides = array<i32>} : memref<256x128xf32, #tpu.memory_space<vmem>>, vector<256x128xf32>,
    %c0_i32_8 = arith.constant 0 : i32
    %9 = arith.cmpi eq, %arg2, %c0_i32_8 : i32
    %10 = arith.extui %9 : i1 to i32
    %c0_i32_9 = arith.constant 0 : i32
    %11 = arith.cmpi ne, %10, %c0_i32_9 : i32
    scf.if %11 {
      %c0_10 = arith.constant 0 : index
      %c0_11 = arith.constant 0 : index
      %12 = vector.load %arg7[%c0_10, %c0_11] : memref<256x128xf32, #tpu.memory_space<vmem>>, vector<256x128xf32>
      %c0_12 = arith.constant 0 : index
      %c0_13 = arith.constant 0 : index
      %13 = vector.load %arg5[%c0_12, %c0_13] : memref<1x128xf32, #tpu.memory_space<vmem>>, vector<1x128xf32>
      %14 = vector.broadcast %13 : vector<1x128xf32> to vector<256x128xf32>
      %15 = arith.addf %12, %14 : vector<256x128xf32>
      %c0_14 = arith.constant 0 : index
      %c0_15 = arith.constant 0 : index
      %16 = vector.load %arg6[%c0_14, %c0_15] : memref<256x128xf32, #tpu.memory_space<vmem>>, vector<256x128xf32>
      tpu.vector_store %arg6[%c0_14, %c0_15], %15 {strides = array<i32>} : memref<256x128xf32, #tpu.memory_space<vmem>>, vector<256x128xf32>,
    } else {
    }
    return
  }
  func.func @transform_0(%arg0: i32, %arg1: i32, %arg2: i32) -> (i32, i32) {
    %c0_i32 = arith.constant 0 : i32
    return %arg0, %arg2 : i32, i32
  }
  func.func @transform_1(%arg0: i32, %arg1: i32, %arg2: i32) -> (i32, i32) {
    %c0_i32 = arith.constant 0 : i32
    return %arg2, %arg1 : i32, i32
  }
  func.func @transform_2(%arg0: i32, %arg1: i32, %arg2: i32) -> (i32, i32) {
    %c0_i32 = arith.constant 0 : i32
    %c0_i32_0 = arith.constant 0 : i32
    return %c0_i32, %arg1 : i32, i32
  }
  func.func @transform_3(%arg0: i32, %arg1: i32, %arg2: i32) -> (i32, i32) {
    %c0_i32 = arith.constant 0 : i32
    return %arg0, %arg1 : i32, i32
  }
}

</mosaic_0001>

<bundles_post_ra>
// kernel: _lambda_.15
= control target key start
LH: loop header
LB: loop body
LE: loop exit
PB: predicated region body
PF: predicated region fallthrough
CT: control target
= control target key end

     0   :  { %8 = vsyncpa [#allocation4], 0  ;;  %s881_s0 = inlined_call_operand.vmem [shape: bf16[2,16], index: 0, kind: input, shape index: {}]   ;;  %s882_s1 = inlined_call_operand.hbm [shape: bf16[16,256], index: 1, kind: input, shape index: {}]   ;;  %s883_s2 = inlined_call_operand.hbm [shape: f32[1,256], index: 2, kind: input, shape index: {}]   ;;  %s884_s3 = inlined_call_operand.vmem [shape: bf16[2,256], index: 3, kind: output, shape index: {}]  }
   0x1   :  { %10 = vsyncpa [#allocation4 + $0x1], 0 }
   0x2   :  { %11 = vsyncpa [#allocation6], 0 }
   0x3   :  { %13 = vsyncpa [#allocation6 + $0x1], 0  ;;  %s712_s12 = smov 0   ;;  %s714_s13 = smov 0  }
   0x4   :  { %s716_s14 = smov 0   ;;  %s718_s15 = smov 0  }
   0x5   :  { %s720_s16 = smov 0   ;;  %s722_s17 = smov 0  }
   0x6 LB: > { %s480_s18 = sadd.s32 4294967295, %s683_s17   ;;  %s34_s19 = sadd.s32 1, %s679_s16  ;;  %s683_s17 = sphi %s722_s17, %s19_s17   ;;  %s679_s16 = sphi %s720_s16, %s897_s16   ;;  %s675_s15 = sphi %s718_s15, %s896_s15   ;;  %s671_s14 = sphi %s716_s14, %s895_s14   ;;  %s667_s13 = sphi %s714_s13, %s894_s13   ;;  %s663_s12 = sphi %s712_s12, %s893_s12  }
   0x7   : > { %p36_p0 = scmp.ge.s32.totalorder %s34_s19, 2  ;;  %s75_s20 = sadd.s32 1, %s671_s14 }
   0x8   : > { %p82_p1 = scmp.ne.s32.totalorder %s671_s14, %s667_s13  ;;  %p83_p2 = scmp.eq.s32.totalorder %s683_s17, 0 }
   0x9   : > { %s899_s19 = smov (%p36_p0, %s34_s19), 0  ;;  %p88_p4 = scmp.ne.s32.totalorder %s667_s13, %s663_s12 }
   0xa   : > { %p748_p3 = por %p83_p2, %p82_p1  ;;  %s71_s22 = ssub.s32 %s679_s16, %s899_s19 }
   0xb   : > { %p89_p5 = scmp.eq.s32.totalorder %s480_s18, 0  ;;  %p73_p6 = scmp.eq.s32.totalorder %s71_s22, 0 }
   0xc   : > { %p514_p8 = scmp.lt.s32.totalorder %s683_s17, 2  ;;  %s764_s25 = sand.u32 1, %s671_s14  }
   0xd   : > { %p755_p7 = por %p89_p5, %p88_p4  ;;  %s486_s26 = sshll.u32 %s679_s16, 6 }
   0xe   : > { %s761_s24 = scalar_select %p73_p6, %s671_s14, %s75_s20  }
   0xf   : > { %s887_s23 = scalar_select %p755_p7, 1, 0 }
  0x10   : > { %s485_s27 = sshll.u32 %s764_s25, 3  ;;  %s771_s30 = scalar_lea.hbm %s882_s1, %s486_s26 }
  0x11   : > { %s179_s4 = scalar_lea.vmem [#allocation3], %s485_s27  ;;  %p775_p9 = pnand %p514_p8, %p748_p3 }
  0x12   : > { %s188_s5 = sshll.u32 %s179_s4, 4  ;;  %s176_s7 = scalar_lea.sflag [#allocation4], %s764_s25  ;;  %s779_s5 = int_to_ptr.vmem [resolvable:$true] %s188_s5 }
  0x13   : > { %s569_s8 = scalar_lea.hbm %s771_s30, 128  ;;  %p571_p12 = pneg %p775_p9 }
  0x14   : > { %p570_p11 = scmp.ne.s32.totalorder %s771_s30, %s569_s8  ;;  %s574_s11 = scalar_lea.hbm %s882_s1, 256 }
  0x15   : > { %p575_p1 = scmp.lt.u32.totalorder %s771_s30, %s882_s1  ;;  %p576_p2 = scmp.lt.u32.totalorder %s574_s11, %s569_s8 }
  0x16   : > { %p572_p13 = pnand %p571_p12, %p570_p11  ;;  %p578_p4 = scmp.lt.u32.totalorder %s569_s8, %s771_s30 }
  0x17   : > { %p577_p3 = por %p576_p2, %p575_p1 }
  0x18   : > { %p573_p0 = pneg %p572_p13 }
  0x19   : > { %p579_p5 = por %p578_p4, %p577_p3 }
  0x1b   : > { %p580_p6 = pnand %p579_p5, %p573_p0 }
  0x1d   : > { %583 = shalt.err (!%p580_p6)
}
  0x1e   : > { %s584_s20 = scalar_lea.vmem %s779_s5, 128  ;;  %s685_s21 = smov [#allocation3]  }
  0x1f   : > { %p585_p8 = scmp.ne.s32.totalorder %s779_s5, %s584_s20  ;;  %s589_s22 = sshll.u32 %s685_s21, 4  ;;  %s590_s22 = int_to_ptr.vmem [resolvable:$false] %s589_s22 }
  0x20   : > { %s591_s26 = scalar_lea.vmem %s590_s22, 256  ;;  %p592_p10 = scmp.lt.s32.totalorder %s779_s5, %s590_s22 }
  0x21   : > { %p587_p11 = pnand %p585_p8, %p571_p12  ;;  %p593_p1 = scmp.lt.s32.totalorder %s591_s26, %s584_s20 }
  0x23   : > { %p588_p13 = pneg %p587_p11  ;;  %p594_p2 = por %p593_p1, %p592_p10 }
  0x25   : > { %p595_p3 = pnand %p594_p2, %p588_p13 }
  0x27   : > { %598 = shalt.err (!%p595_p3)
}
  0x28   : > { %s686_s27 = smov 128   ;;  %s687_s28 = smov 64  }
  0x29   : > { %s688_s29 = smov 4   ;;  %p213_p0 = scmp.lt.s32.totalorder %s683_s17, 3 }
  0x2a   : > { %510 = dma.hbm_to_vmem [thread:$0]  (!%p775_p9), %s771_s30, 128, %s779_s5, %s176_s7, %s686_s27, %s687_s28, %s688_s29  }
  0x2b   : > { %s487_s4 = sshll.u32 %s679_s16, 4  ;;  %p889_p10 = scmp.ge.s32.totalorder %s683_s17, 1 }
  0x2c   : > { %s821_s11 = scalar_lea.hbm %s883_s2, %s487_s4  ;;  %s201_s12 = scalar_lea.vmem [#allocation5], %s764_s25 }
  0x2d   : > { %p814_p4 = pnand %p889_p10, %p213_p0  ;;  %s208_s18 = sshll.u32 %s201_s12, 4  ;;  %s209_s18 = int_to_ptr.vmem [resolvable:$true] %s208_s18 }
  0x2e   : > { %s199_s30 = scalar_lea.sflag [#allocation6], %s764_s25  ;;  %s599_s5 = scalar_lea.hbm %s821_s11, 16 }
  0x2f   : > { %s890_s8 = scalar_select %p814_p4, 1, 0 }
  0x30   : > { %p600_p5 = scmp.ne.s32.totalorder %s821_s11, %s599_s5  ;;  %s604_s21 = scalar_lea.hbm %s883_s2, 32 }
  0x31   : > { %p605_p11 = scmp.lt.u32.totalorder %s821_s11, %s883_s2  ;;  %p606_p13 = scmp.lt.u32.totalorder %s604_s21, %s599_s5 }
  0x32   : > { %p602_p6 = pnand %p600_p5, %p571_p12  ;;  %p608_p2 = scmp.lt.u32.totalorder %s599_s5, %s821_s11 }
  0x33   : > { %p607_p1 = por %p606_p13, %p605_p11 }
  0x34   : > { %p603_p8 = pneg %p602_p6 }
  0x35   : > { %p609_p3 = por %p608_p2, %p607_p1 }
  0x37   : > { %p610_p0 = pnand %p609_p3, %p603_p8 }
  0x39   : > { %613 = shalt.err (!%p610_p0)
}
  0x3a   : > { %s614_s25 = scalar_lea.vmem %s209_s18, 16  ;;  %s689_s27 = smov [#allocation5]  }
  0x3b   : > { %p615_p10 = scmp.ne.s32.totalorder %s209_s18, %s614_s25  ;;  %s619_s28 = sshll.u32 %s689_s27, 4  ;;  %s620_s28 = int_to_ptr.vmem [resolvable:$false] %s619_s28 }
  0x3c   : > { %s621_s29 = scalar_lea.vmem %s620_s28, 32  ;;  %p622_p7 = scmp.lt.s32.totalorder %s209_s18, %s620_s28 }
  0x3d   : > { %p617_p5 = pnand %p615_p10, %p571_p12  ;;  %p623_p4 = scmp.lt.s32.totalorder %s621_s29, %s614_s25 }
  0x3f   : > { %p618_p6 = pneg %p617_p5  ;;  %p624_p11 = por %p623_p4, %p622_p7 }
  0x41   : > { %p625_p13 = pnand %p624_p11, %p618_p6 }
  0x43   : > { %628 = shalt.err (!%p625_p13)
}
  0x44   : > { %513 = dma.hbm_to_vmem [thread:$0]  (!%p775_p9), %s821_s11, 16, %s209_s18, %s199_s30  }
  0x45   : > { %p891_p8 = scmp.ne.s32.totalorder %s890_s8, 0 }
  0x46   : > { %s219_s4 = sand.u32 (!%p891_p8), 1, %s667_s13   ;;  %p892_p12 = scmp.ne.s32.totalorder (!%p891_p8), %s887_s23, 0 }
  0x47   : > { %217 = sbr.rel (%p891_p8) target bundleno = 315 (0x13b), region = 32  ;;  %s489_s9 = sshll.u32 (!%p891_p8), %s219_s4, 3 }
  0x48   : > { %s220_s10 = scalar_lea.sflag (!%p891_p8), [#allocation4], %s219_s4  ;;  %s223_s12 = scalar_lea.vmem (!%p891_p8), [#allocation3], %s489_s9 }
  0x4e   : > { %654 = dma.done.wait (%p892_p12), %s220_s10, 128  }
  0x4f   : > { %656 = vsyncadd (%p892_p12), %s220_s10, 4294967168  ;;  %s229_s5 = scalar_lea.sflag [#allocation6], %s219_s4  ;;  %s231_s7 = scalar_lea.vmem [#allocation5], %s219_s4 }
  0x50   : > { %658 = dma.done.wait (%p892_p12), %s229_s5, 16  }
  0x51   : > { %660 = vsyncadd (%p892_p12), %s229_s5, 4294967280  ;;  %v690_v0 = vmov 0.0   ;;  %vm691_vm0 = vmmov 0   ;;  %v568_v1 = vld [vmem:[%s223_s12] sm:$0xff]   ;;  %v287_v2 = vld [vmem:[%s881_s0] sm:$0x1] }
  0x52   : > { %285 = vst [vmem:[#allocation2] sm:$0x3] %v690_v0  ;;  %497 = vmatprep.subr.bf16.mxu0 %v690_v0  ;;  %499 = vmatprep.mubr.msk.bf16.mxu0 %vm691_vm0, %v690_v0  ;;  %vm296_vm1 = vcmask 130048   ;;  %p275_p7 = scmp.lt.s32.totalorder %s675_s15, 1  ;;  %v492_v9 = vld [vmem:[%s231_s7] ss:$0 sm:$0xff] }
  0x53   : > { %498 = vmatpush3.bf16.msra.mxu0 %v568_v1 }
  0x54   : > { %s901_s15 = smov (!%p275_p7, %s675_s15), 1 }
  0x55   : > { %s279_s18 = scalar_lea.vmem %s884_s3, %s901_s15 }
  0x56   : > { %500 = vmatmul.mubr.msk.bf16.vlgmr.msra.gmra.mrb[0].mxu0 %vm296_vm1, %v287_v2 }
  0x59   : > { %v286_v3 = vld [vmem:[#allocation2] sm:$0x3] }
 0x129   : > { %v334_v4 = vpop.f32.mrb[0].mxu0 }
 0x12a   : > { %v340_v5 = vadd.f32 %v334_v4, %v286_v3  ;;  %v501_v6 = vpop.f32.mrb[1].mxu0 }
 0x12b   : > { %v337_v7 = vpop.f32.mrb[2].mxu0 }
 0x12c   : > { %341 = vst [vmem:[#allocation2] sm:$0x3] %v340_v5  ;;  %v502_v8 = vpop.f32.mrb[3].mxu0 }
 0x133   : > { %v345_v10 = vld [vmem:[#allocation2] sm:$0x3] }
 0x134   : > { %v353_v11 = vadd.f32 %v492_v9, %v345_v10 }
 0x136   : > { %v354_v12 = vmax.f32 %v353_v11, 0.0 }
 0x138   : > { %v355_v13 = vpack.c.bf16 %v354_v12, %v354_v12 }
 0x13a   : > { %356 = vst [vmem:[%s279_s18] sm:$0x1] %v355_v13 }
 0x13b PF: > { %s19_s17 = sadd.s32 1, %s683_s17   ;;  %s893_s12 = smov %s667_s13 }
 0x13c   : > { %p16_p9 = scmp.ge.s32.totalorder %s19_s17, 4   ;;  %s894_s13 = smov %s671_s14 }
 0x13d   : > { %s895_s14 = smov %s761_s24  ;;  %s896_s15 = smov %s679_s16 }
 0x13e   : > { %s897_s16 = smov %s899_s19  ;;  %18 = sbr.rel (!%p16_p9) target bundleno = 6 (0x6), region = 96 }
 0x145   :  { %382 = vsyncpa [#allocation4], 1 }
 0x146   :  { %384 = vsyncpa [#allocation4 + $0x1], 1 }
 0x147   :  { %385 = vsyncpa [#allocation6], 1 }
 0x148   :  { %387 = vsyncpa [#allocation6 + $0x1], 1 }

// kernel: _lambda_.16
= control target key start
LH: loop header
LB: loop body
LE: loop exit
PB: predicated region body
PF: predicated region fallthrough
CT: control target
= control target key end

     0   :  { %11 = vsyncpa [#allocation4], 0  ;;  %s1084_s0 = inlined_call_operand.vmem [shape: bf16[32,144], index: 0, kind: input, shape index: {}]   ;;  %s1085_s1 = inlined_call_operand.hbm [shape: bf16[144,128], index: 1, kind: input, shape index: {}]   ;;  %s1086_s2 = inlined_call_operand.hbm [shape: f32[1,128], index: 2, kind: input, shape index: {}]   ;;  %s1087_s3 = inlined_call_operand.vmem [shape: bf16[32,128], index: 3, kind: output, shape index: {0}]   ;;  %s1088_s4 = inlined_call_operand.vmem [shape: f32[16,128], index: 4, kind: output, shape index: {1}]   ;;  %s1089_s5 = inlined_call_operand.vmem [shape: f32[16,128], index: 5, kind: output, shape index: {2}]  }
   0x1   :  { %12 = vsyncpa [#allocation6], 0  ;;  %s959_s18 = smov 0   ;;  %s961_s19 = smov 0  }
   0x2   :  { %s963_s20 = smov 0  }
   0x3 LB: > { %s735_s21 = sadd.s32 4294967295, %s922_s20   ;;  %s37_s22 = sadd.s32 1, %s918_s19  ;;  %s922_s20 = sphi %s963_s20, %s18_s20   ;;  %s918_s19 = sphi %s961_s19, %s1099_s19   ;;  %s914_s18 = sphi %s959_s18, %s1098_s18  }
   0x4   : > { %p39_p0 = scmp.ge.s32.totalorder %s37_s22, 2  ;;  %p737_p1 = scmp.ge.s32.totalorder %s922_s20, 1 }
   0x5   : > { %p208_p2 = scmp.lt.s32.totalorder %s922_s20, 3  ;;  %p984_p4 = scmp.eq.s32.totalorder %s735_s21, 0 }
   0x6   : > { %s1101_s22 = smov (%p39_p0, %s37_s22), 0  ;;  %s924_s25 = smov [#allocation3]  }
   0x7   : > { %p980_p3 = pnand %p737_p1, %p208_p2  ;;  %s224_s26 = sshll.u32 %s924_s25, 4  ;;  %s225_s26 = int_to_ptr.vmem [resolvable:$true] %s224_s26 }
   0x8   : > { %s1094_s24 = scalar_select %p984_p4, 1, 0 }
   0x9   : > { %s1093_s23 = scalar_select %p980_p3, 1, 0 }
   0xa   : > { %p784_p5 = pneg %p980_p3  ;;  %s925_s28 = smov [#allocation5]  }
   0xb   : > { %s240_s29 = sshll.u32 %s925_s28, 4  ;;  %s836_s7 = scalar_lea.hbm %s1085_s1, 1152  ;;  %s996_s29 = int_to_ptr.vmem [resolvable:$true] %s240_s29 }
   0xc   : > { %p992_p6 = pnand %p984_p4, %p784_p5  ;;  %p837_p7 = scmp.ne.s32.totalorder %s1085_s1, %s836_s7 }
   0xd   : > { %p843_p11 = scmp.lt.u32.totalorder %s836_s7, %s1085_s1 }
   0xe   : > { %p838_p8 = pneg %p992_p6 }
  0x10   : > { %p839_p9 = pnand %p838_p8, %p837_p7 }
  0x12   : > { %p840_p10 = pneg %p839_p9 }
  0x14   : > { %p845_p12 = pnand %p843_p11, %p840_p10 }
  0x16   : > { %848 = shalt.err (!%p845_p12)
}
  0x17   : > { %s849_s12 = scalar_lea.vmem %s225_s26, 1152  ;;  %p857_p2 = scmp.lt.s32.totalorder %s225_s26, %s225_s26 }
  0x18   : > { %p850_p13 = scmp.ne.s32.totalorder %s225_s26, %s849_s12  ;;  %p858_p5 = scmp.lt.s32.totalorder %s849_s12, %s849_s12 }
  0x1a   : > { %p852_p0 = pnand %p850_p13, %p838_p8  ;;  %p859_p4 = por %p858_p5, %p857_p2 }
  0x1c   : > { %p853_p1 = pneg %p852_p0 }
  0x1e   : > { %p860_p3 = pnand %p859_p4, %p853_p1 }
  0x20   : > { %863 = shalt.err (!%p860_p3)
}
  0x21   : > { %s926_s13 = smov 64   ;;  %s927_s14 = smov 4  }
  0x22   : > { %787 = dma.hbm_to_vmem [thread:$0]  (!%p992_p6), %s1085_s1, 1152, %s225_s26, [#allocation4], %s926_s13, %s926_s13, %s927_s14  }
  0x23   : > { %s864_s25 = scalar_lea.hbm %s1086_s2, 16 }
  0x24   : > { %p865_p7 = scmp.ne.s32.totalorder %s1086_s2, %s864_s25  ;;  %p871_p9 = scmp.lt.u32.totalorder %s864_s25, %s1086_s2 }
  0x26   : > { %p867_p3 = pnand %p865_p7, %p838_p8 }
  0x28   : > { %p868_p4 = pneg %p867_p3 }
  0x2a   : > { %p873_p10 = pnand %p871_p9, %p868_p4 }
  0x2c   : > { %876 = shalt.err (!%p873_p10)
}
  0x2d   : > { %s877_s26 = scalar_lea.vmem %s996_s29, 16  ;;  %s884_s8 = scalar_lea.vmem %s996_s29, 32 }
  0x2e   : > { %p878_p11 = scmp.ne.s32.totalorder %s996_s29, %s877_s26  ;;  %p885_p0 = scmp.lt.s32.totalorder %s996_s29, %s996_s29 }
  0x2f   : > { %p886_p1 = scmp.lt.s32.totalorder %s884_s8, %s877_s26 }
  0x30   : > { %p880_p12 = pnand %p878_p11, %p838_p8 }
  0x31   : > { %p887_p2 = por %p886_p1, %p885_p0 }
  0x32   : > { %p881_p13 = pneg %p880_p12 }
  0x34   : > { %p888_p5 = pnand %p887_p2, %p881_p13 }
  0x36   : > { %891 = shalt.err (!%p888_p5)
}
  0x37   : > { %790 = dma.hbm_to_vmem [thread:$0]  (!%p992_p6), %s1086_s2, 16, %s996_s29, [#allocation6]  }
  0x38   : > { %p1096_p7 = scmp.ne.s32.totalorder %s1093_s23, 0 }
  0x39   : > { %p1097_p8 = scmp.ne.s32.totalorder (!%p1096_p7), %s1094_s24, 0 }
  0x3a   : > { %268 = sbr.rel (%p1096_p7) target bundleno = 338 (0x152), region = 32 }
  0x41   : > { %905 = dma.done.wait (%p1097_p8), [#allocation4], 1152  }
  0x42   : > { %907 = vsyncadd (%p1097_p8), [#allocation4], 4294966144 }
  0x43   : > { %909 = dma.done.wait (%p1097_p8), [#allocation6], 16  }
  0x44   : > { %911 = vsyncadd (%p1097_p8), [#allocation6], 4294967280  ;;  %s744_s27 = sshll.u32 %s914_s18, 1  ;;  %v928_v0 = vmov 0   ;;  %v824_v1 = vld [vmem:[#allocation3] sm:$0xff]   ;;  %v825_v2 = vld [vmem:[#allocation3 + $0x8] sm:$0xff]  }
  0x45   : > { %454 = vmatprep.subr.bf16.mxu0 %v928_v0  ;;  %p324_p6 = scmp.lt.s32.totalorder %s744_s27, 3  ;;  %v826_v3 = vld [vmem:[#allocation3 + $0x10] sm:$0xff]   ;;  %vm450_vm0 = vcmask 130048   ;;  %v827_v4 = vld [vmem:[#allocation3 + $0x18] sm:$0xff]   ;;  %v828_v6 = vld [vmem:[#allocation3 + $0x20] sm:$0xff]   ;;  %p344_p3 = scmp.lt.s32.totalorder %s914_s18, 1 }
  0x46   : > { %455 = vmatpush1.bf16.msra.mxu0 %v824_v1  ;;  %v829_v7 = vld [vmem:[#allocation3 + $0x28] sm:$0xff]   ;;  %v830_v8 = vld [vmem:[#allocation3 + $0x30] sm:$0xff]   ;;  %v831_v9 = vld [vmem:[#allocation3 + $0x38] sm:$0xff]  }
  0x47   : > { %s1103_s27 = smov (!%p324_p6, %s744_s27), 3  ;;  %456 = vmatprep.subr.bf16.mxu0 %v928_v0  ;;  %v832_v10 = vld [vmem:[#allocation3 + $0x40] sm:$0xff]   ;;  %v763_v12 = vld [vmem:[#allocation5] ss:$0 sm:$0xff]  ;;  %s1105_s18 = smov (!%p344_p3, %s914_s18), 1 }
  0x48   : > { %s768_s23 = sshll.u32 %s1103_s27, 3  ;;  %s748_s12 = sshll.u32 %s1103_s27, 2 }
  0x49   : > { %s331_s24 = scalar_lea.vmem %s1084_s0, %s768_s23  ;;  %s342_s15 = scalar_lea.vmem %s1087_s3, %s748_s12 }
  0x4a   : > { %457 = vmatpush1.bf16.msra.mxu0 %v825_v2  ;;  %v835_v5 = vld [vmem:[%s331_s24 + $0x4] ss:$8 sps:$4 sm:$0xff]   ;;  %v833_v11 = vld [vmem:[%s331_s24] ss:$8 sps:$4 sm:$0xff]   ;;  %s749_s16 = sshll.u32 %s1105_s18, 3 }
  0x4b   : > { %458 = vmatprep.subr.bf16.mxu0 %v928_v0  ;;  %762 = vmatprep.mubr.msk.bf16.mxu0 %vm450_vm0, %v835_v5  ;;  %s350_s25 = scalar_lea.vmem %s1088_s4, %s749_s16  ;;  %s357_s6 = scalar_lea.vmem %s1089_s5, %s749_s16 }
  0x4e   : > { %459 = vmatpush1.bf16.msra.mxu0 %v826_v3 }
  0x4f   : > { %460 = vmatprep.subr.bf16.mxu0 %v928_v0 }
  0x52   : > { %461 = vmatpush1.bf16.msra.mxu0 %v827_v4 }
  0x53   : > { %462 = vmatprep.subr.bf16.mxu0 %v928_v0 }
  0x56   : > { %463 = vmatpush1.bf16.msra.mxu0 %v828_v6 }
  0x57   : > { %464 = vmatprep.subr.bf16.mxu0 %v928_v0 }
  0x5a   : > { %465 = vmatpush1.bf16.msra.mxu0 %v829_v7 }
  0x5b   : > { %466 = vmatprep.subr.bf16.mxu0 %v928_v0 }
  0x5e   : > { %467 = vmatpush1.bf16.msra.mxu0 %v830_v8 }
  0x5f   : > { %468 = vmatprep.subr.bf16.mxu0 %v928_v0 }
  0x62   : > { %469 = vmatpush1.bf16.msra.mxu0 %v831_v9 }
  0x63   : > { %470 = vmatprep.subr.bf16.mxu0 %v928_v0 }
  0x66   : > { %471 = vmatpush1.bf16.msra.mxu0 %v832_v10 }
  0x69   : > { %487 = vmatmul.mubr.bf16.vlgmr.msra.gmra.mrb[0].mxu0 %v833_v11 }
 0x13c   : > { %v488_v13 = vpop.f32.mrb[0].mxu0 }
 0x13d   : > { %v511_v14 = vadd.f32 %v763_v12, %v488_v13  ;;  %v490_v15 = vpop.f32.mrb[1].mxu0 }
 0x13e   : > { %v491_v16 = vpop.f32.mrb[2].mxu0 }
 0x13f   : > { %v512_v17 = vadd.f32 %v763_v12, %v491_v16  ;;  %v493_v18 = vpop.f32.mrb[3].mxu0  ;;  %v530_v19 = vmul.f32 %v511_v14, %v511_v14 }
 0x141   : > { %v774_v20 = vpack.c.bf16 %v512_v17, %v511_v14  ;;  %v523_v21 = vadd.f32 %v512_v17, %v511_v14  ;;  %v531_v22 = vmul.f32 %v512_v17, %v512_v17 }
 0x143   : > { %775 = vst [vmem:[%s342_s15] sm:$0xff] %v774_v20   ;;  %v524_v23 = vrot.slane %v523_v21, 4  ;;  %v532_v24 = vadd.f32 %v531_v22, %v530_v19 }
 0x145   : > { %v525_v25 = vadd.f32 %v524_v23, %v523_v21  ;;  %v533_v26 = vrot.slane %v532_v24, 4 }
 0x147   : > { %v526_v27 = vrot.slane %v525_v25, 2  ;;  %v534_v28 = vadd.f32 %v533_v26, %v532_v24 }
 0x149   : > { %v527_v29 = vadd.f32 %v526_v27, %v525_v25  ;;  %v535_v30 = vrot.slane %v534_v28, 2 }
 0x14b   : > { %v528_v31 = vrot.slane %v527_v29, 1  ;;  %v536_v32 = vadd.f32 %v535_v30, %v534_v28 }
 0x14d   : > { %v529_v33 = vadd.f32 %v528_v31, %v527_v29  ;;  %v537_v34 = vrot.slane %v536_v32, 1 }
 0x14f   : > { %v538_v35 = vadd.f32 %v537_v34, %v536_v32  ;;  %539 = vst [vmem:[%s350_s25] sm:$0xff] %v529_v33 }
 0x151   : > { %540 = vst [vmem:[%s357_s6] sm:$0xff] %v538_v35 }
 0x152 PF: > { %s18_s20 = sadd.s32 1, %s922_s20   ;;  %s1098_s18 = smov %s918_s19 }
 0x153   : > { %p15_p4 = scmp.ge.s32.totalorder %s18_s20, 4   ;;  %s1099_s19 = smov %s1101_s22 }
 0x155   :  { %17 = sbr.rel (!%p15_p4) target bundleno = 3 (0x3), region = 105 }
 0x15c   :  { %609 = vsyncpa [#allocation4], 1 }
 0x15d   :  { %611 = vsyncpa [#allocation4 + $0x1], 1 }
 0x15e   :  { %612 = vsyncpa [#allocation6], 1 }

// kernel: _lambda_.17
= control target key start
LH: loop header
LB: loop body
LE: loop exit
PB: predicated region body
PF: predicated region fallthrough
CT: control target
= control target key end

     0   :  { %s148_s0 = inlined_call_operand.vmem [shape: bf16[32,128], index: 0, kind: input, shape index: {}]   ;;  %s149_s1 = inlined_call_operand.vmem [shape: f32[1,128], index: 1, kind: input, shape index: {}]   ;;  %s150_s2 = inlined_call_operand.vmem [shape: f32[1,128], index: 2, kind: input, shape index: {}]   ;;  %s151_s3 = inlined_call_operand.vmem [shape: bf16[32,128], index: 3, kind: output, shape index: {}]  }
   0x1   :  { %v91_v0 = vld [vmem:[%s148_s0] sm:$0xff]   ;;  %v108_v4 = vld [vmem:[%s148_s0 + $0x8] sm:$0xff]  }
   0x2   :  { %v80_v1 = vld [vmem:[%s149_s1] ss:$0 sm:$0xff]  ;;  %v92_v2 = vunpack.c.l.bf16 %v91_v0  ;;  %v93_v3 = vunpack.c.h.bf16 %v91_v0  ;;  %v96_v6 = vunpack.c.l.bf16 %v108_v4  ;;  %v97_v7 = vunpack.c.h.bf16 %v108_v4 }
   0x3   :  { %v81_v5 = vld [vmem:[%s150_s2] ss:$0 sm:$0xff] }
   0x4   :  { %v29_v8 = vmul.f32 %v92_v2, %v80_v1  ;;  %v30_v9 = vmul.f32 %v93_v3, %v80_v1  ;;  %v31_v10 = vmul.f32 %v96_v6, %v80_v1  ;;  %v32_v11 = vmul.f32 %v97_v7, %v80_v1 }
   0x6   :  { %v40_v12 = vadd.f32 %v81_v5, %v29_v8  ;;  %v41_v13 = vadd.f32 %v81_v5, %v30_v9  ;;  %v42_v14 = vadd.f32 %v81_v5, %v31_v10  ;;  %v43_v15 = vadd.f32 %v81_v5, %v32_v11 }
   0x8   :  { %vm44_vm0 = vcmp.gt.f32.partialorder %v40_v12, 0.0  ;;  %vm45_vm1 = vcmp.gt.f32.partialorder %v41_v13, 0.0  ;;  %v48_v16 = vmul.f32 0.2, %v40_v12  ;;  %v49_v17 = vmul.f32 0.2, %v41_v13 }
   0x9   :  { %vm46_vm2 = vcmp.gt.f32.partialorder %v42_v14, 0.0  ;;  %vm47_vm3 = vcmp.gt.f32.partialorder %v43_v15, 0.0  ;;  %v50_v18 = vmul.f32 0.2, %v42_v14  ;;  %v51_v19 = vmul.f32 0.2, %v43_v15 }
   0xa   :  { %v52_v20 = vsel %vm44_vm0, %v40_v12, %v48_v16  ;;  %v53_v21 = vsel %vm45_vm1, %v41_v13, %v49_v17 }
   0xb   :  { %v101_v22 = vpack.c.bf16 %v53_v21, %v52_v20  ;;  %v54_v23 = vsel %vm46_vm2, %v42_v14, %v50_v18  ;;  %v55_v24 = vsel %vm47_vm3, %v43_v15, %v51_v19 }
   0xc   :  { %v106_v25 = vpack.c.bf16 %v55_v24, %v54_v23 }
   0xd   :  { %102 = vst [vmem:[%s151_s3] sm:$0xff] %v101_v22  }
   0xe   :  { %109 = vst [vmem:[%s151_s3 + $0x8] sm:$0xff] %v106_v25  }

// kernel: _lambda_.19
= control target key start
LH: loop header
LB: loop body
LE: loop exit
PB: predicated region body
PF: predicated region fallthrough
CT: control target
= control target key end

     0   :  { %s183_s0 = inlined_call_operand.vmem [shape: bf16[32,128], index: 0, kind: input, shape index: {}]   ;;  %s184_s1 = inlined_call_operand.vmem [shape: f32[1,128], index: 1, kind: input, shape index: {}]   ;;  %s185_s2 = inlined_call_operand.vmem [shape: f32[1,128], index: 2, kind: input, shape index: {}]   ;;  %s186_s3 = inlined_call_operand.vmem [shape: bf16[32,128], index: 3, kind: input, shape index: {}]   ;;  %s187_s4 = inlined_call_operand.vmem [shape: bf16[32,128], index: 4, kind: output, shape index: {}]  }
   0x1   :  { %v106_v0 = vld [vmem:[%s183_s0] sm:$0xff]   ;;  %v131_v5 = vld [vmem:[%s183_s0 + $0x8] sm:$0xff]  }
   0x2   :  { %v95_v1 = vld [vmem:[%s184_s1] ss:$0 sm:$0xff]  ;;  %v107_v2 = vunpack.c.l.bf16 %v106_v0  ;;  %v108_v3 = vunpack.c.h.bf16 %v106_v0  ;;  %v132_v6 = vld [vmem:[%s186_s3 + $0x8] sm:$0xff]   ;;  %v111_v8 = vunpack.c.l.bf16 %v131_v5  ;;  %v112_v9 = vunpack.c.h.bf16 %v131_v5 }
   0x3   :  { %v114_v4 = vld [vmem:[%s186_s3] sm:$0xff]   ;;  %v119_v16 = vunpack.c.l.bf16 %v132_v6  ;;  %v120_v17 = vunpack.c.h.bf16 %v132_v6 }
   0x4   :  { %v96_v7 = vld [vmem:[%s185_s2] ss:$0 sm:$0xff]  ;;  %v32_v10 = vmul.f32 %v107_v2, %v95_v1  ;;  %v33_v11 = vmul.f32 %v108_v3, %v95_v1  ;;  %v115_v12 = vunpack.c.l.bf16 %v114_v4  ;;  %v116_v13 = vunpack.c.h.bf16 %v114_v4 }
   0x5   :  { %v34_v14 = vmul.f32 %v111_v8, %v95_v1  ;;  %v35_v15 = vmul.f32 %v112_v9, %v95_v1 }
   0x6   :  { %v43_v18 = vadd.f32 %v96_v7, %v32_v10  ;;  %v44_v19 = vadd.f32 %v96_v7, %v33_v11 }
   0x7   :  { %v45_v20 = vadd.f32 %v96_v7, %v34_v14  ;;  %v46_v21 = vadd.f32 %v96_v7, %v35_v15 }
   0x8   :  { %v55_v22 = vadd.f32 %v115_v12, %v43_v18  ;;  %v56_v23 = vadd.f32 %v116_v13, %v44_v19 }
   0x9   :  { %v57_v24 = vadd.f32 %v119_v16, %v45_v20  ;;  %v58_v25 = vadd.f32 %v120_v17, %v46_v21 }
   0xa   :  { %vm59_vm0 = vcmp.gt.f32.partialorder %v55_v22, 0.0  ;;  %vm60_vm1 = vcmp.gt.f32.partialorder %v56_v23, 0.0  ;;  %v63_v26 = vmul.f32 0.2, %v55_v22  ;;  %v64_v27 = vmul.f32 0.2, %v56_v23 }
   0xb   :  { %vm61_vm2 = vcmp.gt.f32.partialorder %v57_v24, 0.0  ;;  %vm62_vm3 = vcmp.gt.f32.partialorder %v58_v25, 0.0  ;;  %v65_v28 = vmul.f32 0.2, %v57_v24  ;;  %v66_v29 = vmul.f32 0.2, %v58_v25 }
   0xc   :  { %v67_v30 = vsel %vm59_vm0, %v55_v22, %v63_v26  ;;  %v68_v31 = vsel %vm60_vm1, %v56_v23, %v64_v27 }
   0xd   :  { %v124_v32 = vpack.c.bf16 %v68_v31, %v67_v30  ;;  %v69_v33 = vsel %vm61_vm2, %v57_v24, %v65_v28  ;;  %v70_v34 = vsel %vm62_vm3, %v58_v25, %v66_v29 }
   0xe   :  { %v129_v35 = vpack.c.bf16 %v70_v34, %v69_v33 }
   0xf   :  { %125 = vst [vmem:[%s187_s4] sm:$0xff] %v124_v32  }
  0x10   :  { %133 = vst [vmem:[%s187_s4 + $0x8] sm:$0xff] %v129_v35  }

// kernel: _lambda_.20
= control target key start
LH: loop header
LB: loop body
LE: loop exit
PB: predicated region body
PF: predicated region fallthrough
CT: control target
= control target key end

     0   :  { %8 = vsyncpa [#allocation4], 0  ;;  %s950_s0 = inlined_call_operand.vmem [shape: bf16[128,16], index: 0, kind: input, shape index: {}]   ;;  %s951_s1 = inlined_call_operand.hbm [shape: bf16[16,128], index: 1, kind: input, shape index: {}]   ;;  %s952_s2 = inlined_call_operand.hbm [shape: f32[1,128], index: 2, kind: input, shape index: {}]   ;;  %s953_s3 = inlined_call_operand.vmem [shape: bf16[128,128], index: 3, kind: output, shape index: {}]  }
   0x1   :  { %9 = vsyncpa [#allocation6], 0  ;;  %s830_s12 = smov 0   ;;  %s832_s13 = smov 0  }
   0x2   :  { %s834_s14 = smov 0  }
   0x3 LB: > { %s585_s15 = sadd.s32 4294967295, %s804_s14   ;;  %s34_s16 = sadd.s32 1, %s800_s13  ;;  %s804_s14 = sphi %s834_s14, %s15_s14   ;;  %s800_s13 = sphi %s832_s13, %s963_s13   ;;  %s796_s12 = sphi %s830_s12, %s962_s12  }
   0x4   : > { %p36_p0 = scmp.ge.s32.totalorder %s34_s16, 2  ;;  %p587_p1 = scmp.ge.s32.totalorder %s804_s14, 1 }
   0x5   : > { %p149_p2 = scmp.lt.s32.totalorder %s804_s14, 3  ;;  %p855_p4 = scmp.eq.s32.totalorder %s585_s15, 0 }
   0x6   : > { %s965_s16 = smov (%p36_p0, %s34_s16), 0  ;;  %s806_s19 = smov [#allocation3]  }
   0x7   : > { %p851_p3 = pnand %p587_p1, %p149_p2  ;;  %s165_s20 = sshll.u32 %s806_s19, 4  ;;  %s166_s20 = int_to_ptr.vmem [resolvable:$true] %s165_s20 }
   0x8   : > { %s958_s18 = scalar_select %p855_p4, 1, 0 }
   0x9   : > { %s957_s17 = scalar_select %p851_p3, 1, 0 }
   0xa   : > { %p674_p5 = pneg %p851_p3  ;;  %s807_s22 = smov [#allocation5]  }
   0xb   : > { %s181_s23 = sshll.u32 %s807_s22, 4  ;;  %s718_s26 = scalar_lea.hbm %s951_s1, 128  ;;  %s867_s23 = int_to_ptr.vmem [resolvable:$true] %s181_s23 }
   0xc   : > { %p863_p6 = pnand %p855_p4, %p674_p5  ;;  %p719_p7 = scmp.ne.s32.totalorder %s951_s1, %s718_s26 }
   0xd   : > { %p725_p11 = scmp.lt.u32.totalorder %s718_s26, %s951_s1 }
   0xe   : > { %p720_p8 = pneg %p863_p6 }
  0x10   : > { %p721_p9 = pnand %p720_p8, %p719_p7 }
  0x12   : > { %p722_p10 = pneg %p721_p9 }
  0x14   : > { %p727_p12 = pnand %p725_p11, %p722_p10 }
  0x16   : > { %730 = shalt.err (!%p727_p12)
}
  0x17   : > { %s731_s4 = scalar_lea.vmem %s166_s20, 128  ;;  %p739_p2 = scmp.lt.s32.totalorder %s166_s20, %s166_s20 }
  0x18   : > { %p732_p13 = scmp.ne.s32.totalorder %s166_s20, %s731_s4  ;;  %p740_p5 = scmp.lt.s32.totalorder %s731_s4, %s731_s4 }
  0x1a   : > { %p734_p0 = pnand %p732_p13, %p720_p8  ;;  %p741_p4 = por %p740_p5, %p739_p2 }
  0x1c   : > { %p735_p1 = pneg %p734_p0 }
  0x1e   : > { %p742_p3 = pnand %p741_p4, %p735_p1 }
  0x20   : > { %745 = shalt.err (!%p742_p3)
}
  0x21   : > { %s808_s5 = smov 64   ;;  %s809_s6 = smov 4  }
  0x22   : > { %677 = dma.hbm_to_vmem [thread:$0]  (!%p863_p6), %s951_s1, 128, %s166_s20, [#allocation4], %s808_s5, %s808_s5, %s809_s6  }
  0x23   : > { %s746_s11 = scalar_lea.hbm %s952_s2, 16 }
  0x24   : > { %p747_p7 = scmp.ne.s32.totalorder %s952_s2, %s746_s11  ;;  %p753_p9 = scmp.lt.u32.totalorder %s746_s11, %s952_s2 }
  0x26   : > { %p749_p3 = pnand %p747_p7, %p720_p8 }
  0x28   : > { %p750_p4 = pneg %p749_p3 }
  0x2a   : > { %p755_p10 = pnand %p753_p9, %p750_p4 }
  0x2c   : > { %758 = shalt.err (!%p755_p10)
}
  0x2d   : > { %s759_s20 = scalar_lea.vmem %s867_s23, 16  ;;  %s766_s25 = scalar_lea.vmem %s867_s23, 32 }
  0x2e   : > { %p760_p11 = scmp.ne.s32.totalorder %s867_s23, %s759_s20  ;;  %p767_p0 = scmp.lt.s32.totalorder %s867_s23, %s867_s23 }
  0x2f   : > { %p768_p1 = scmp.lt.s32.totalorder %s766_s25, %s759_s20 }
  0x30   : > { %p762_p12 = pnand %p760_p11, %p720_p8 }
  0x31   : > { %p769_p2 = por %p768_p1, %p767_p0 }
  0x32   : > { %p763_p13 = pneg %p762_p12 }
  0x34   : > { %p770_p5 = pnand %p769_p2, %p763_p13 }
  0x36   : > { %773 = shalt.err (!%p770_p5)
}
  0x37   : > { %680 = dma.hbm_to_vmem [thread:$0]  (!%p863_p6), %s952_s2, 16, %s867_s23, [#allocation6]  }
  0x38   : > { %p960_p7 = scmp.ne.s32.totalorder %s957_s17, 0 }
  0x39   : > { %p961_p8 = scmp.ne.s32.totalorder (!%p960_p7), %s958_s18, 0 }
  0x3a   : > { %206 = sbr.rel (%p960_p7) target bundleno = 296 (0x128), region = 32 }
  0x41   : > { %787 = dma.done.wait (%p961_p8), [#allocation4], 128  }
  0x42   : > { %789 = vsyncadd (%p961_p8), [#allocation4], 4294967168 }
  0x43   : > { %791 = dma.done.wait (%p961_p8), [#allocation6], 16  }
  0x44   : > { %793 = vsyncadd (%p961_p8), [#allocation6], 4294967280  ;;  %s594_s21 = sshll.u32 %s796_s12, 3  ;;  %v713_v0 = vld [vmem:[#allocation3] sm:$0xff]   ;;  %vm316_vm0 = vcmask 130048  }
  0x45   : > { %p241_p3 = scmp.lt.s32.totalorder %s594_s21, 15  ;;  %654 = vmatprep.subr.bf16.mxu0 %v713_v0  ;;  %664 = vmatprep.subr.bf16.mxu1 %v713_v0  ;;  %v607_v6 = vld [vmem:[#allocation5] ss:$0 sm:$0xff] }
  0x46   : > { %655 = vmatpush3.bf16.msra.mxu0 %v713_v0  ;;  %665 = vmatpush3.bf16.msra.mxu1 %v713_v0 }
  0x47   : > { %s967_s21 = smov (!%p241_p3, %s594_s21), 15 }
  0x48   : > { %s595_s17 = sshll.u32 %s967_s21, 2 }
  0x49   : > { %s247_s29 = scalar_lea.vmem %s950_s0, %s595_s17  ;;  %s257_s30 = scalar_lea.vmem %s953_s3, %s595_s17 }
  0x4a   : > { %v714_v1 = vld [vmem:[%s247_s29] sm:$0xff]   ;;  %v715_v2 = vld [vmem:[%s247_s29 + $0x10] sm:$0xff]   ;;  %v716_v3 = vld [vmem:[%s247_s29 + $0x8] sm:$0xff]  }
  0x4b   : > { %656 = vmatprep.mubr.msk.bf16.mxu0 %vm316_vm0, %v714_v1  ;;  %660 = vmatprep.mubr.msk.bf16.mxu1 %vm316_vm0, %v715_v2  ;;  %v717_v4 = vld [vmem:[%s247_s29 + $0x18] sm:$0xff]  }
  0x4c   : > { %657 = vmatmul.mubr.msk.bf16.vlgmr.msra.gmra.mrb[0].mxu0 %vm316_vm0, %v716_v3  ;;  %661 = vmatmul.mubr.msk.bf16.vlgmr.msra.gmra.mrb[0].mxu1 %vm316_vm0, %v717_v4 }
 0x11f   : > { %v658_v5 = vpop.f32.mrb[0].mxu0  ;;  %v662_v7 = vpop.f32.mrb[0].mxu1 }
 0x120   : > { %v363_v8 = vpop.f32.mrb[1].mxu0  ;;  %v379_v9 = vpop.f32.mrb[1].mxu1  ;;  %v430_v12 = vadd.f32 %v658_v5, %v607_v6  ;;  %v434_v13 = vadd.f32 %v662_v7, %v607_v6 }
 0x121   : > { %v659_v10 = vpop.f32.mrb[2].mxu0  ;;  %v663_v11 = vpop.f32.mrb[2].mxu1  ;;  %v428_v18 = vadd.f32 %v607_v6, %v363_v8  ;;  %v432_v19 = vadd.f32 %v607_v6, %v379_v9 }
 0x122   : > { %v431_v14 = vadd.f32 %v659_v10, %v607_v6  ;;  %v435_v15 = vadd.f32 %v663_v11, %v607_v6  ;;  %v366_v16 = vpop.f32.mrb[3].mxu0  ;;  %v382_v17 = vpop.f32.mrb[3].mxu1 }
 0x123   : > { %v429_v20 = vadd.f32 %v607_v6, %v366_v16  ;;  %v433_v21 = vadd.f32 %v607_v6, %v382_v17 }
 0x124   : > { %v634_v22 = vpack.c.bf16 %v431_v14, %v430_v12  ;;  %v644_v23 = vpack.c.bf16 %v435_v15, %v434_v13 }
 0x125   : > { %v629_v24 = vpack.c.bf16 %v429_v20, %v428_v18  ;;  %v639_v25 = vpack.c.bf16 %v433_v21, %v432_v19 }
 0x126   : > { %646 = vst [vmem:[%s257_s30 + $0x8] sm:$0xff] %v634_v22   ;;  %648 = vst [vmem:[%s257_s30 + $0x18] sm:$0xff] %v644_v23  }
 0x127   : > { %630 = vst [vmem:[%s257_s30] sm:$0xff] %v629_v24   ;;  %647 = vst [vmem:[%s257_s30 + $0x10] sm:$0xff] %v639_v25  }
 0x128 PF: > { %s15_s14 = sadd.s32 1, %s804_s14   ;;  %s962_s12 = smov %s800_s13 }
 0x129   : > { %p12_p6 = scmp.ge.s32.totalorder %s15_s14, 4   ;;  %s963_s13 = smov %s965_s16 }
 0x12b   :  { %14 = sbr.rel (!%p12_p6) target bundleno = 3 (0x3), region = 81 }
 0x132   :  { %504 = vsyncpa [#allocation4], 1 }
 0x133   :  { %506 = vsyncpa [#allocation4 + $0x1], 1 }
 0x134   :  { %507 = vsyncpa [#allocation6], 1 }

// kernel: _lambda_.21
= control target key start
LH: loop header
LB: loop body
LE: loop exit
PB: predicated region body
PF: predicated region fallthrough
CT: control target
= control target key end

     0   :  { %s1084_s18 = smov 0   ;;  %s1086_s19 = smov 0   ;;  %s1182_s0 = inlined_call_operand.vmem [shape: bf16[128,144], index: 0, kind: input, shape index: {}]   ;;  %s1183_s1 = inlined_call_operand.vmem [shape: bf16[144,128], index: 1, kind: input, shape index: {}]   ;;  %s1184_s2 = inlined_call_operand.vmem [shape: f32[1,128], index: 2, kind: input, shape index: {}]   ;;  %s1185_s3 = inlined_call_operand.vmem [shape: bf16[128,128], index: 3, kind: output, shape index: {0}]   ;;  %s1186_s4 = inlined_call_operand.vmem [shape: f32[16,128], index: 4, kind: output, shape index: {1}]   ;;  %s1187_s5 = inlined_call_operand.vmem [shape: f32[16,128], index: 5, kind: output, shape index: {2}]  }
   0x1   :  { %s1088_s20 = smov 0  }
   0x2 LB: > { %s35_s21 = sadd.s32 1, %s1047_s19  ;;  %p893_p0 = scmp.ge.s32.totalorder %s1051_s20, 1  ;;  %s1051_s20 = sphi %s1088_s20, %s16_s20   ;;  %s1047_s19 = sphi %s1086_s19, %s1189_s19   ;;  %s1043_s18 = sphi %s1084_s18, %s1188_s18  }
   0x3   : > { %p37_p1 = scmp.ge.s32.totalorder %s35_s21, 2  ;;  %p250_p2 = scmp.lt.s32.totalorder %s1051_s20, 3 }
   0x5   : > { %s1191_s21 = smov (%p37_p1, %s35_s21), 0  ;;  %p251_p3 = pnand %p893_p0, %p250_p2 }
   0x6   : > { %v1008_v0 = vld [vmem:[%s1183_s1] sm:$0xff] (!%p251_p3)   ;;  %v1053_v1 = vmov (!%p251_p3), 0   ;;  %s894_s24 = sshll.u32 (!%p251_p3), %s1043_s18, 3  ;;  %v1009_v2 = vld [vmem:[%s1183_s1 + $0x8] sm:$0xff] (!%p251_p3)   ;;  %v1010_v3 = vld [vmem:[%s1183_s1 + $0x10] sm:$0xff] (!%p251_p3)   ;;  %vm495_vm0 = vcmask (!%p251_p3), 130048  }
   0x7   : > { %254 = sbr.rel (%p251_p3) target bundleno = 292 (0x124), region = 32  ;;  %508 = vmatprep.subr.bf16.mxu0 (!%p251_p3), %v1053_v1  ;;  %965 = vmatprep.subr.bf16.mxu1 (!%p251_p3), %v1053_v1  ;;  %p313_p4 = scmp.lt.s32.totalorder (!%p251_p3), %s894_s24, 15  ;;  %v1011_v4 = vld [vmem:[%s1183_s1 + $0x18] sm:$0xff] (!%p251_p3)   ;;  %v1012_v7 = vld [vmem:[%s1183_s1 + $0x20] sm:$0xff] (!%p251_p3)   ;;  %v1013_v8 = vld [vmem:[%s1183_s1 + $0x28] sm:$0xff] (!%p251_p3)  }
   0x8   : > { %509 = vmatpush1.bf16.msra.mxu0 (!%p251_p3), %v1008_v0  ;;  %974 = vmatpush1.bf16.msra.mxu1 (!%p251_p3), %v1008_v0  ;;  %v1014_v9 = vld [vmem:[%s1183_s1 + $0x30] sm:$0xff] (!%p251_p3)   ;;  %v1015_v10 = vld [vmem:[%s1183_s1 + $0x38] sm:$0xff] (!%p251_p3)   ;;  %v1016_v11 = vld [vmem:[%s1183_s1 + $0x40] sm:$0xff] (!%p251_p3)   ;;  %p344_p5 = scmp.lt.s32.totalorder (!%p251_p3), %s1043_s18, 1 }
   0x9   : > { %510 = vmatprep.subr.bf16.mxu0 (!%p251_p3), %v1053_v1  ;;  %966 = vmatprep.subr.bf16.mxu1 (!%p251_p3), %v1053_v1  ;;  %v922_v18 = vld [vmem:[%s1184_s2] ss:$0 sm:$0xff] (!%p251_p3) }
   0xc   : > { %511 = vmatpush1.bf16.msra.mxu0 (!%p251_p3), %v1009_v2  ;;  %975 = vmatpush1.bf16.msra.mxu1 (!%p251_p3), %v1009_v2 }
   0xd   : > { %512 = vmatprep.subr.bf16.mxu0 (!%p251_p3), %v1053_v1  ;;  %967 = vmatprep.subr.bf16.mxu1 (!%p251_p3), %v1053_v1 }
   0xe   : > { %s1193_s24 = smov (!%p313_p4, %s894_s24), 15  ;;  %s1195_s18 = smov (!%p344_p5, %s1043_s18), 1 }
   0xf   : > { %s933_s29 = sshll.u32 %s1193_s24, 3  ;;  %s898_s27 = sshll.u32 %s1193_s24, 2 }
  0x10   : > { %s1120_s7 = scalar_lea.vmem %s1182_s0, %s933_s29  ;;  %513 = vmatpush1.bf16.msra.mxu0 %v1010_v3  ;;  %976 = vmatpush1.bf16.msra.mxu1 %v1010_v3  ;;  %s1159_s30 = scalar_lea.vmem %s1185_s3, %s898_s27 }
  0x11   : > { %v1019_v5 = vld [vmem:[%s1120_s7 + $0x4] ss:$8 sps:$4 sm:$0xff]   ;;  %514 = vmatprep.subr.bf16.mxu0 %v1053_v1  ;;  %968 = vmatprep.subr.bf16.mxu1 %v1053_v1  ;;  %v1017_v12 = vld [vmem:[%s1120_s7] ss:$8 sps:$4 sm:$0xff]   ;;  %v1023_v14 = vld [vmem:[%s1120_s7 + $0x14] ss:$8 sps:$4 sm:$0xff]  }
  0x12   : > { %v1022_v6 = vld [vmem:[%s1120_s7 + $0x24] ss:$8 sps:$4 sm:$0xff]   ;;  %918 = vmatprep.mubr.msk.bf16.mxu0 %vm495_vm0, %v1019_v5  ;;  %v1020_v13 = vld [vmem:[%s1120_s7 + $0x20] ss:$8 sps:$4 sm:$0xff]   ;;  %v1026_v15 = vld [vmem:[%s1120_s7 + $0x34] ss:$8 sps:$4 sm:$0xff]  }
  0x13   : > { %920 = vmatprep.mubr.msk.bf16.mxu1 %vm495_vm0, %v1022_v6  ;;  %v1025_v16 = vld [vmem:[%s1120_s7 + $0x10] ss:$8 sps:$4 sm:$0xff]   ;;  %s899_s24 = sshll.u32 %s1195_s18, 3 }
  0x14   : > { %515 = vmatpush1.bf16.msra.mxu0 %v1011_v4  ;;  %977 = vmatpush1.bf16.msra.mxu1 %v1011_v4  ;;  %v1028_v17 = vld [vmem:[%s1120_s7 + $0x30] ss:$8 sps:$4 sm:$0xff]   ;;  %s350_s8 = scalar_lea.vmem %s1186_s4, %s899_s24  ;;  %s357_s11 = scalar_lea.vmem %s1187_s5, %s899_s24 }
  0x15   : > { %516 = vmatprep.subr.bf16.mxu0 %v1053_v1  ;;  %969 = vmatprep.subr.bf16.mxu1 %v1053_v1 }
  0x18   : > { %517 = vmatpush1.bf16.msra.mxu0 %v1012_v7  ;;  %978 = vmatpush1.bf16.msra.mxu1 %v1012_v7 }
  0x19   : > { %518 = vmatprep.subr.bf16.mxu0 %v1053_v1  ;;  %970 = vmatprep.subr.bf16.mxu1 %v1053_v1 }
  0x1c   : > { %519 = vmatpush1.bf16.msra.mxu0 %v1013_v8  ;;  %979 = vmatpush1.bf16.msra.mxu1 %v1013_v8 }
  0x1d   : > { %520 = vmatprep.subr.bf16.mxu0 %v1053_v1  ;;  %971 = vmatprep.subr.bf16.mxu1 %v1053_v1 }
  0x20   : > { %521 = vmatpush1.bf16.msra.mxu0 %v1014_v9  ;;  %980 = vmatpush1.bf16.msra.mxu1 %v1014_v9 }
  0x21   : > { %522 = vmatprep.subr.bf16.mxu0 %v1053_v1  ;;  %972 = vmatprep.subr.bf16.mxu1 %v1053_v1 }
  0x24   : > { %523 = vmatpush1.bf16.msra.mxu0 %v1015_v10  ;;  %981 = vmatpush1.bf16.msra.mxu1 %v1015_v10 }
  0x25   : > { %524 = vmatprep.subr.bf16.mxu0 %v1053_v1  ;;  %973 = vmatprep.subr.bf16.mxu1 %v1053_v1 }
  0x28   : > { %525 = vmatpush1.bf16.msra.mxu0 %v1016_v11  ;;  %982 = vmatpush1.bf16.msra.mxu1 %v1016_v11 }
  0x2b   : > { %541 = vmatmul.mubr.bf16.vlgmr.msra.gmra.mrb[0].mxu0 %v1017_v12  ;;  %557 = vmatmul.mubr.bf16.vlgmr.msra.gmra.mrb[0].mxu1 %v1020_v13 }
  0x2c   : > { %919 = vmatprep.mubr.msk.bf16.mxu0 %vm495_vm0, %v1023_v14  ;;  %921 = vmatprep.mubr.msk.bf16.mxu1 %vm495_vm0, %v1026_v15 }
  0x33   : > { %549 = vmatmul.mubr.bf16.gmra.mrb[4].mxu0 %v1025_v16  ;;  %565 = vmatmul.mubr.bf16.gmra.mrb[4].mxu1 %v1028_v17 }
  0xfe   : > { %v542_v19 = vpop.f32.mrb[0].mxu0  ;;  %v558_v20 = vpop.f32.mrb[0].mxu1 }
  0xff   : > { %v607_v21 = vadd.f32 %v922_v18, %v542_v19  ;;  %v544_v22 = vpop.f32.mrb[1].mxu0  ;;  %v611_v23 = vadd.f32 %v922_v18, %v558_v20  ;;  %v560_v24 = vpop.f32.mrb[1].mxu1 }
 0x100   : > { %v545_v25 = vpop.f32.mrb[2].mxu0  ;;  %v561_v26 = vpop.f32.mrb[2].mxu1 }
 0x101   : > { %v608_v27 = vadd.f32 %v922_v18, %v545_v25  ;;  %v547_v28 = vpop.f32.mrb[3].mxu0  ;;  %v612_v29 = vadd.f32 %v922_v18, %v561_v26  ;;  %v563_v30 = vpop.f32.mrb[3].mxu1  ;;  %v668_v31 = vmul.f32 %v607_v21, %v607_v21  ;;  %v672_v56 = vmul.f32 %v611_v23, %v611_v23 }
 0x103   : > { %v945_v32 = vpack.c.bf16 %v608_v27, %v607_v21  ;;  %v655_v33 = vadd.f32 %v608_v27, %v607_v21  ;;  %v669_v34 = vmul.f32 %v608_v27, %v608_v27  ;;  %v955_v35 = vpack.c.bf16 %v612_v29, %v611_v23 }
 0x104   : > { %v673_v59 = vmul.f32 %v612_v29, %v612_v29 }
 0x105   : > { %946 = vst [vmem:[%s1159_s30] sm:$0xff] %v945_v32   ;;  %v676_v36 = vadd.f32 %v669_v34, %v668_v31  ;;  %963 = vst [vmem:[%s1159_s30 + $0x10] sm:$0xff] %v955_v35  }
 0x106   : > { %v550_v37 = vpop.f32.mrb[4].mxu0  ;;  %v566_v38 = vpop.f32.mrb[4].mxu1 }
 0x107   : > { %v609_v39 = vadd.f32 %v922_v18, %v550_v37  ;;  %v552_v40 = vpop.f32.mrb[5].mxu0  ;;  %v568_v41 = vpop.f32.mrb[5].mxu1  ;;  %v613_v43 = vadd.f32 %v922_v18, %v566_v38 }
 0x108   : > { %v553_v42 = vpop.f32.mrb[6].mxu0  ;;  %v569_v44 = vpop.f32.mrb[6].mxu1 }
 0x109   : > { %v656_v45 = vadd.f32 %v655_v33, %v609_v39  ;;  %v670_v46 = vmul.f32 %v609_v39, %v609_v39  ;;  %v610_v47 = vadd.f32 %v922_v18, %v553_v42  ;;  %v555_v48 = vpop.f32.mrb[7].mxu0  ;;  %v571_v49 = vpop.f32.mrb[7].mxu1  ;;  %v614_v50 = vadd.f32 %v922_v18, %v569_v44 }
 0x10a   : > { %v674_v62 = vmul.f32 %v613_v43, %v613_v43 }
 0x10b   : > { %v677_v51 = vadd.f32 %v676_v36, %v670_v46  ;;  %v950_v52 = vpack.c.bf16 %v610_v47, %v609_v39  ;;  %v657_v53 = vadd.f32 %v656_v45, %v610_v47  ;;  %v671_v54 = vmul.f32 %v610_v47, %v610_v47 }
 0x10c   : > { %v960_v55 = vpack.c.bf16 %v614_v50, %v613_v43  ;;  %v675_v3 = vmul.f32 %v614_v50, %v614_v50 }
 0x10d   : > { %962 = vst [vmem:[%s1159_s30 + $0x8] sm:$0xff] %v950_v52   ;;  %v658_v57 = vadd.f32 %v657_v53, %v611_v23  ;;  %v678_v58 = vadd.f32 %v677_v51, %v671_v54 }
 0x10e   : > { %964 = vst [vmem:[%s1159_s30 + $0x18] sm:$0xff] %v960_v55  }
 0x10f   : > { %v679_v60 = vadd.f32 %v678_v58, %v672_v56  ;;  %v659_v61 = vadd.f32 %v658_v57, %v612_v29 }
 0x111   : > { %v660_v63 = vadd.f32 %v659_v61, %v613_v43  ;;  %v680_v0 = vadd.f32 %v679_v60, %v673_v59 }
 0x113   : > { %v681_v1 = vadd.f32 %v680_v0, %v674_v62  ;;  %v661_v2 = vadd.f32 %v660_v63, %v614_v50 }
 0x115   : > { %v662_v4 = vrot.slane %v661_v2, 4  ;;  %v682_v5 = vadd.f32 %v681_v1, %v675_v3 }
 0x117   : > { %v663_v6 = vadd.f32 %v662_v4, %v661_v2  ;;  %v683_v7 = vrot.slane %v682_v5, 4 }
 0x119   : > { %v664_v8 = vrot.slane %v663_v6, 2  ;;  %v684_v9 = vadd.f32 %v683_v7, %v682_v5 }
 0x11b   : > { %v665_v10 = vadd.f32 %v664_v8, %v663_v6  ;;  %v685_v11 = vrot.slane %v684_v9, 2 }
 0x11d   : > { %v666_v12 = vrot.slane %v665_v10, 1  ;;  %v686_v13 = vadd.f32 %v685_v11, %v684_v9 }
 0x11f   : > { %v667_v14 = vadd.f32 %v666_v12, %v665_v10  ;;  %v687_v15 = vrot.slane %v686_v13, 1 }
 0x121   : > { %v688_v16 = vadd.f32 %v687_v15, %v686_v13  ;;  %689 = vst [vmem:[%s350_s8] sm:$0xff] %v667_v14 }
 0x123   : > { %690 = vst [vmem:[%s357_s11] sm:$0xff] %v688_v16 }
 0x124 PF: > { %s16_s20 = sadd.s32 1, %s1051_s20   ;;  %s1188_s18 = smov %s1047_s19 }
 0x125   : > { %p13_p6 = scmp.ge.s32.totalorder %s16_s20, 4   ;;  %s1189_s19 = smov %s1191_s21 }
 0x127   :  { %15 = sbr.rel (!%p13_p6) target bundleno = 2 (0x2), region = 100 }

// kernel: _lambda_.22
= control target key start
LH: loop header
LB: loop body
LE: loop exit
PB: predicated region body
PF: predicated region fallthrough
CT: control target
= control target key end

     0   :  { %s455_s0 = inlined_call_operand.vmem [shape: bf16[128,128], index: 0, kind: input, shape index: {}]   ;;  %s456_s1 = inlined_call_operand.vmem [shape: f32[1,128], index: 1, kind: input, shape index: {}]   ;;  %s457_s2 = inlined_call_operand.vmem [shape: f32[1,128], index: 2, kind: input, shape index: {}]   ;;  %s458_s3 = inlined_call_operand.vmem [shape: bf16[128,128], index: 3, kind: output, shape index: {}]  }
   0x1   :  { %v259_v0 = vld [vmem:[%s455_s0] sm:$0xff]   ;;  %v330_v4 = vld [vmem:[%s455_s0 + $0x8] sm:$0xff]   ;;  %v331_v5 = vld [vmem:[%s455_s0 + $0x10] sm:$0xff]  }
   0x2   :  { %v370_v1 = vld [vmem:[%s456_s1] ss:$0 sm:$0xff]  ;;  %v260_v2 = vunpack.c.l.bf16 %v259_v0  ;;  %v261_v3 = vunpack.c.h.bf16 %v259_v0  ;;  %v332_v6 = vld [vmem:[%s455_s0 + $0x18] sm:$0xff]   ;;  %v264_v8 = vunpack.c.l.bf16 %v330_v4  ;;  %v265_v9 = vunpack.c.h.bf16 %v330_v4  ;;  %v334_v35 = vld [vmem:[%s455_s0 + $0x28] sm:$0xff]  }
   0x3   :  { %v384_v7 = vld [vmem:[%s457_s2] ss:$0 sm:$0xff]  ;;  %v268_v10 = vunpack.c.l.bf16 %v331_v5  ;;  %v269_v11 = vunpack.c.h.bf16 %v331_v5  ;;  %v272_v14 = vunpack.c.l.bf16 %v332_v6  ;;  %v273_v15 = vunpack.c.h.bf16 %v332_v6  ;;  %v335_v48 = vld [vmem:[%s455_s0 + $0x30] sm:$0xff]   ;;  %v336_v4 = vld [vmem:[%s455_s0 + $0x38] sm:$0xff]  }
   0x4   :  { %v53_v12 = vmul.f32 %v260_v2, %v370_v1  ;;  %v54_v13 = vmul.f32 %v261_v3, %v370_v1  ;;  %v55_v16 = vmul.f32 %v264_v8, %v370_v1  ;;  %v56_v17 = vmul.f32 %v265_v9, %v370_v1  ;;  %v333_v34 = vld [vmem:[%s455_s0 + $0x20] sm:$0xff]  }
   0x5   :  { %v57_v18 = vmul.f32 %v268_v10, %v370_v1  ;;  %v58_v19 = vmul.f32 %v269_v11, %v370_v1  ;;  %v59_v22 = vmul.f32 %v272_v14, %v370_v1  ;;  %v60_v23 = vmul.f32 %v273_v15, %v370_v1 }
   0x6   :  { %v76_v20 = vadd.f32 %v384_v7, %v53_v12  ;;  %v77_v21 = vadd.f32 %v384_v7, %v54_v13  ;;  %v78_v24 = vadd.f32 %v384_v7, %v55_v16  ;;  %v79_v25 = vadd.f32 %v384_v7, %v56_v17 }
   0x7   :  { %v80_v26 = vadd.f32 %v384_v7, %v57_v18  ;;  %v81_v27 = vadd.f32 %v384_v7, %v58_v19  ;;  %v82_v42 = vadd.f32 %v384_v7, %v59_v22  ;;  %v83_v43 = vadd.f32 %v384_v7, %v60_v23 }
   0x8   :  { %vm92_vm0 = vcmp.gt.f32.partialorder %v76_v20, 0.0  ;;  %vm93_vm1 = vcmp.gt.f32.partialorder %v77_v21, 0.0  ;;  %v108_v28 = vmul.f32 0.2, %v76_v20  ;;  %v109_v29 = vmul.f32 0.2, %v77_v21 }
   0x9   :  { %vm94_vm2 = vcmp.gt.f32.partialorder %v78_v24, 0.0  ;;  %vm95_vm3 = vcmp.gt.f32.partialorder %v79_v25, 0.0  ;;  %v110_v30 = vmul.f32 0.2, %v78_v24  ;;  %v111_v31 = vmul.f32 0.2, %v79_v25 }
   0xa   :  { %v124_v32 = vsel %vm92_vm0, %v76_v20, %v108_v28  ;;  %v125_v33 = vsel %vm93_vm1, %v77_v21, %v109_v29  ;;  %vm96_vm4 = vcmp.gt.f32.partialorder %v80_v26, 0.0  ;;  %vm97_vm5 = vcmp.gt.f32.partialorder %v81_v27, 0.0 }
   0xb   :  { %v293_v36 = vpack.c.bf16 %v125_v33, %v124_v32  ;;  %v126_v37 = vsel %vm94_vm2, %v78_v24, %v110_v30  ;;  %v127_v38 = vsel %vm95_vm3, %v79_v25, %v111_v31  ;;  %v112_v39 = vmul.f32 0.2, %v80_v26 }
   0xc   :  { %v298_v40 = vpack.c.bf16 %v127_v38, %v126_v37  ;;  %v113_v41 = vmul.f32 0.2, %v81_v27  ;;  %v276_v45 = vunpack.c.l.bf16 %v333_v34  ;;  %v277_v46 = vunpack.c.h.bf16 %v333_v34 }
   0xd   :  { %294 = vst [vmem:[%s458_s3] sm:$0xff] %v293_v36   ;;  %v128_v44 = vsel %vm96_vm4, %v80_v26, %v112_v39  ;;  %v280_v47 = vunpack.c.l.bf16 %v334_v35  ;;  %vm98_vm6 = vcmp.gt.f32.partialorder %v82_v42, 0.0  ;;  %vm99_vm7 = vcmp.gt.f32.partialorder %v83_v43, 0.0 }
   0xe   :  { %337 = vst [vmem:[%s458_s3 + $0x8] sm:$0xff] %v298_v40   ;;  %v129_v49 = vsel %vm97_vm5, %v81_v27, %v113_v41  ;;  %v114_v50 = vmul.f32 0.2, %v82_v42  ;;  %v115_v52 = vmul.f32 0.2, %v83_v43  ;;  %v61_v53 = vmul.f32 %v276_v45, %v370_v1 }
   0xf   :  { %v303_v51 = vpack.c.bf16 %v129_v49, %v128_v44  ;;  %v62_v54 = vmul.f32 %v277_v46, %v370_v1  ;;  %v281_v56 = vunpack.c.h.bf16 %v334_v35  ;;  %v63_v57 = vmul.f32 %v280_v47, %v370_v1 }
  0x10   :  { %v130_v55 = vsel %vm98_vm6, %v82_v42, %v114_v50  ;;  %v284_v58 = vunpack.c.l.bf16 %v335_v48  ;;  %v131_v59 = vsel %vm99_vm7, %v83_v43, %v115_v52  ;;  %v84_v60 = vadd.f32 %v384_v7, %v61_v53 }
  0x11   :  { %338 = vst [vmem:[%s458_s3 + $0x10] sm:$0xff] %v303_v51   ;;  %v85_v61 = vadd.f32 %v384_v7, %v62_v54  ;;  %v285_v62 = vunpack.c.h.bf16 %v335_v48  ;;  %v308_v63 = vpack.c.bf16 %v131_v59, %v130_v55  ;;  %v64_v0 = vmul.f32 %v281_v56, %v370_v1 }
  0x12   :  { %v86_v2 = vadd.f32 %v384_v7, %v63_v57  ;;  %v65_v3 = vmul.f32 %v284_v58, %v370_v1  ;;  %vm100_vm8 = vcmp.gt.f32.partialorder %v84_v60, 0.0  ;;  %v116_v5 = vmul.f32 0.2, %v84_v60 }
  0x13   :  { %vm101_vm9 = vcmp.gt.f32.partialorder %v85_v61, 0.0  ;;  %v117_v6 = vmul.f32 0.2, %v85_v61  ;;  %339 = vst [vmem:[%s458_s3 + $0x18] sm:$0xff] %v308_v63   ;;  %v87_v8 = vadd.f32 %v384_v7, %v64_v0  ;;  %v66_v10 = vmul.f32 %v285_v62, %v370_v1 }
  0x14   :  { %vm102_vm10 = vcmp.gt.f32.partialorder %v86_v2, 0.0  ;;  %v118_v9 = vmul.f32 0.2, %v86_v2  ;;  %v132_v11 = vsel %vm100_vm8, %v84_v60, %v116_v5  ;;  %v88_v13 = vadd.f32 %v384_v7, %v65_v3 }
  0x15   :  { %v133_v12 = vsel %vm101_vm9, %v85_v61, %v117_v6  ;;  %v288_v14 = vunpack.c.l.bf16 %v336_v4  ;;  %vm103_vm11 = vcmp.gt.f32.partialorder %v87_v8, 0.0  ;;  %v119_v16 = vmul.f32 0.2, %v87_v8 }
  0x16   :  { %v313_v15 = vpack.c.bf16 %v133_v12, %v132_v11  ;;  %v134_v17 = vsel %vm102_vm10, %v86_v2, %v118_v9  ;;  %v89_v18 = vadd.f32 %v384_v7, %v66_v10  ;;  %vm104_vm12 = vcmp.gt.f32.partialorder %v88_v13, 0.0 }
  0x17   :  { %v120_v19 = vmul.f32 0.2, %v88_v13  ;;  %v289_v20 = vunpack.c.h.bf16 %v336_v4  ;;  %v135_v21 = vsel %vm103_vm11, %v87_v8, %v119_v16  ;;  %v67_v22 = vmul.f32 %v288_v14, %v370_v1 }
  0x18   :  { %340 = vst [vmem:[%s458_s3 + $0x20] sm:$0xff] %v313_v15   ;;  %v318_v23 = vpack.c.bf16 %v135_v21, %v134_v17  ;;  %vm105_vm13 = vcmp.gt.f32.partialorder %v89_v18, 0.0  ;;  %v121_v24 = vmul.f32 0.2, %v89_v18 }
  0x19   :  { %v136_v25 = vsel %vm104_vm12, %v88_v13, %v120_v19  ;;  %v68_v26 = vmul.f32 %v289_v20, %v370_v1  ;;  %v90_v27 = vadd.f32 %v384_v7, %v67_v22 }
  0x1a   :  { %341 = vst [vmem:[%s458_s3 + $0x28] sm:$0xff] %v318_v23   ;;  %v137_v28 = vsel %vm105_vm13, %v89_v18, %v121_v24 }
  0x1b   :  { %v323_v29 = vpack.c.bf16 %v137_v28, %v136_v25  ;;  %v91_v30 = vadd.f32 %v384_v7, %v68_v26  ;;  %vm106_vm14 = vcmp.gt.f32.partialorder %v90_v27, 0.0  ;;  %v122_v31 = vmul.f32 0.2, %v90_v27 }
  0x1d   :  { %342 = vst [vmem:[%s458_s3 + $0x30] sm:$0xff] %v323_v29   ;;  %vm107_vm15 = vcmp.gt.f32.partialorder %v91_v30, 0.0  ;;  %v123_v32 = vmul.f32 0.2, %v91_v30  ;;  %v138_v33 = vsel %vm106_vm14, %v90_v27, %v122_v31 }
  0x1f   :  { %v139_v1 = vsel %vm107_vm15, %v91_v30, %v123_v32 }
  0x20   :  { %v328_v34 = vpack.c.bf16 %v139_v1, %v138_v33 }
  0x22   :  { %343 = vst [vmem:[%s458_s3 + $0x38] sm:$0xff] %v328_v34  }

// kernel: _lambda_.24
= control target key start
LH: loop header
LB: loop body
LE: loop exit
PB: predicated region body
PF: predicated region fallthrough
CT: control target
= control target key end

     0   :  { %s573_s0 = inlined_call_operand.vmem [shape: bf16[128,128], index: 0, kind: input, shape index: {}]   ;;  %s574_s1 = inlined_call_operand.vmem [shape: f32[1,128], index: 1, kind: input, shape index: {}]   ;;  %s575_s2 = inlined_call_operand.vmem [shape: f32[1,128], index: 2, kind: input, shape index: {}]   ;;  %s576_s3 = inlined_call_operand.vmem [shape: bf16[128,128], index: 3, kind: input, shape index: {}]   ;;  %s577_s4 = inlined_call_operand.vmem [shape: bf16[128,128], index: 4, kind: output, shape index: {}]  }
   0x1   :  { %v310_v0 = vld [vmem:[%s573_s0] sm:$0xff]   ;;  %v413_v5 = vld [vmem:[%s573_s0 + $0x8] sm:$0xff]   ;;  %v414_v12 = vld [vmem:[%s573_s0 + $0x10] sm:$0xff]  }
   0x2   :  { %v465_v1 = vld [vmem:[%s574_s1] ss:$0 sm:$0xff]  ;;  %v311_v2 = vunpack.c.l.bf16 %v310_v0  ;;  %v312_v3 = vunpack.c.h.bf16 %v310_v0  ;;  %v420_v6 = vld [vmem:[%s576_s3 + $0x8] sm:$0xff]   ;;  %v315_v10 = vunpack.c.l.bf16 %v413_v5  ;;  %v316_v11 = vunpack.c.h.bf16 %v413_v5  ;;  %v421_v13 = vld [vmem:[%s576_s3 + $0x10] sm:$0xff]  }
   0x3   :  { %v342_v4 = vld [vmem:[%s576_s3] sm:$0xff]   ;;  %v347_v16 = vunpack.c.l.bf16 %v420_v6  ;;  %v348_v17 = vunpack.c.h.bf16 %v420_v6  ;;  %v319_v20 = vunpack.c.l.bf16 %v414_v12  ;;  %v320_v21 = vunpack.c.h.bf16 %v414_v12  ;;  %v415_v22 = vld [vmem:[%s573_s0 + $0x18] sm:$0xff]   ;;  %v417_v0 = vld [vmem:[%s573_s0 + $0x28] sm:$0xff]  }
   0x4   :  { %v479_v7 = vld [vmem:[%s575_s2] ss:$0 sm:$0xff]  ;;  %v343_v8 = vunpack.c.l.bf16 %v342_v4  ;;  %v344_v9 = vunpack.c.h.bf16 %v342_v4  ;;  %v56_v14 = vmul.f32 %v311_v2, %v465_v1  ;;  %v57_v15 = vmul.f32 %v312_v3, %v465_v1  ;;  %v422_v47 = vld [vmem:[%s576_s3 + $0x18] sm:$0xff]   ;;  %v424_v6 = vld [vmem:[%s576_s3 + $0x28] sm:$0xff]  }
   0x5   :  { %v58_v18 = vmul.f32 %v315_v10, %v465_v1  ;;  %v59_v19 = vmul.f32 %v316_v11, %v465_v1  ;;  %v351_v25 = vunpack.c.l.bf16 %v421_v13  ;;  %v352_v26 = vunpack.c.h.bf16 %v421_v13  ;;  %v416_v52 = vld [vmem:[%s573_s0 + $0x20] sm:$0xff]  }
   0x6   :  { %v79_v23 = vadd.f32 %v479_v7, %v56_v14  ;;  %v80_v24 = vadd.f32 %v479_v7, %v57_v15  ;;  %v60_v29 = vmul.f32 %v319_v20, %v465_v1  ;;  %v61_v30 = vmul.f32 %v320_v21, %v465_v1  ;;  %v423_v55 = vld [vmem:[%s576_s3 + $0x20] sm:$0xff]  }
   0x7   :  { %v81_v27 = vadd.f32 %v479_v7, %v58_v18  ;;  %v82_v28 = vadd.f32 %v479_v7, %v59_v19  ;;  %v323_v33 = vunpack.c.l.bf16 %v415_v22  ;;  %v324_v34 = vunpack.c.h.bf16 %v415_v22  ;;  %v418_v19 = vld [vmem:[%s573_s0 + $0x30] sm:$0xff]  }
   0x8   :  { %v127_v31 = vadd.f32 %v343_v8, %v79_v23  ;;  %v128_v32 = vadd.f32 %v344_v9, %v80_v24  ;;  %v83_v37 = vadd.f32 %v479_v7, %v60_v29  ;;  %v84_v38 = vadd.f32 %v479_v7, %v61_v30 }
   0x9   :  { %v129_v35 = vadd.f32 %v347_v16, %v81_v27  ;;  %v130_v36 = vadd.f32 %v348_v17, %v82_v28  ;;  %v62_v51 = vmul.f32 %v323_v33, %v465_v1  ;;  %v63_v57 = vmul.f32 %v324_v34, %v465_v1 }
   0xa   :  { %vm143_vm0 = vcmp.gt.f32.partialorder %v127_v31, 0.0  ;;  %vm144_vm1 = vcmp.gt.f32.partialorder %v128_v32, 0.0  ;;  %v159_v39 = vmul.f32 0.2, %v127_v31  ;;  %v160_v40 = vmul.f32 0.2, %v128_v32 }
   0xb   :  { %vm145_vm2 = vcmp.gt.f32.partialorder %v129_v35, 0.0  ;;  %vm146_vm3 = vcmp.gt.f32.partialorder %v130_v36, 0.0  ;;  %v161_v41 = vmul.f32 0.2, %v129_v35  ;;  %v162_v42 = vmul.f32 0.2, %v130_v36 }
   0xc   :  { %v175_v43 = vsel %vm143_vm0, %v127_v31, %v159_v39  ;;  %v176_v44 = vsel %vm144_vm1, %v128_v32, %v160_v40  ;;  %v131_v45 = vadd.f32 %v351_v25, %v83_v37  ;;  %v132_v46 = vadd.f32 %v352_v26, %v84_v38  ;;  %v425_v31 = vld [vmem:[%s576_s3 + $0x30] sm:$0xff]   ;;  %v419_v38 = vld [vmem:[%s573_s0 + $0x38] sm:$0xff]  }
   0xd   :  { %v376_v48 = vpack.c.bf16 %v176_v44, %v175_v43  ;;  %v177_v49 = vsel %vm145_vm2, %v129_v35, %v161_v41  ;;  %v178_v50 = vsel %vm146_vm3, %v130_v36, %v162_v42  ;;  %v85_v58 = vadd.f32 %v479_v7, %v62_v51 }
   0xe   :  { %v381_v53 = vpack.c.bf16 %v178_v50, %v177_v49  ;;  %vm147_vm4 = vcmp.gt.f32.partialorder %v131_v45, 0.0  ;;  %vm148_vm5 = vcmp.gt.f32.partialorder %v132_v46, 0.0  ;;  %v163_v54 = vmul.f32 0.2, %v131_v45  ;;  %v426_v50 = vld [vmem:[%s576_s3 + $0x38] sm:$0xff]  }
   0xf   :  { %377 = vst [vmem:[%s577_s4] sm:$0xff] %v376_v48   ;;  %v164_v56 = vmul.f32 0.2, %v132_v46  ;;  %v355_v59 = vunpack.c.l.bf16 %v422_v47  ;;  %v356_v61 = vunpack.c.h.bf16 %v422_v47  ;;  %v327_v62 = vunpack.c.l.bf16 %v416_v52 }
  0x10   :  { %427 = vst [vmem:[%s577_s4 + $0x8] sm:$0xff] %v381_v53   ;;  %v179_v60 = vsel %vm147_vm4, %v131_v45, %v163_v54  ;;  %v328_v63 = vunpack.c.h.bf16 %v416_v52  ;;  %v86_v3 = vadd.f32 %v479_v7, %v63_v57  ;;  %v359_v5 = vunpack.c.l.bf16 %v423_v55 }
  0x11   :  { %v180_v2 = vsel %vm148_vm5, %v132_v46, %v164_v56  ;;  %v133_v4 = vadd.f32 %v355_v59, %v85_v58  ;;  %v64_v9 = vmul.f32 %v327_v62, %v465_v1  ;;  %v360_v11 = vunpack.c.h.bf16 %v423_v55 }
  0x12   :  { %v386_v8 = vpack.c.bf16 %v180_v2, %v179_v60  ;;  %v65_v10 = vmul.f32 %v328_v63, %v465_v1  ;;  %v134_v12 = vadd.f32 %v356_v61, %v86_v3  ;;  %v331_v14 = vunpack.c.l.bf16 %v417_v0 }
  0x13   :  { %vm149_vm6 = vcmp.gt.f32.partialorder %v133_v4, 0.0  ;;  %v165_v13 = vmul.f32 0.2, %v133_v4  ;;  %v87_v15 = vadd.f32 %v479_v7, %v64_v9  ;;  %v332_v17 = vunpack.c.h.bf16 %v417_v0 }
  0x14   :  { %428 = vst [vmem:[%s577_s4 + $0x10] sm:$0xff] %v386_v8   ;;  %v88_v16 = vadd.f32 %v479_v7, %v65_v10  ;;  %v363_v18 = vunpack.c.l.bf16 %v424_v6  ;;  %vm150_vm7 = vcmp.gt.f32.partialorder %v134_v12, 0.0  ;;  %v166_v20 = vmul.f32 0.2, %v134_v12 }
  0x15   :  { %v181_v21 = vsel %vm149_vm6, %v133_v4, %v165_v13  ;;  %v66_v22 = vmul.f32 %v331_v14, %v465_v1  ;;  %v135_v23 = vadd.f32 %v359_v5, %v87_v15  ;;  %v67_v25 = vmul.f32 %v332_v17, %v465_v1 }
  0x16   :  { %v136_v24 = vadd.f32 %v360_v11, %v88_v16  ;;  %v364_v26 = vunpack.c.h.bf16 %v424_v6  ;;  %v182_v27 = vsel %vm150_vm7, %v134_v12, %v166_v20  ;;  %v335_v29 = vunpack.c.l.bf16 %v418_v19 }
  0x17   :  { %v89_v28 = vadd.f32 %v479_v7, %v66_v22  ;;  %v336_v30 = vunpack.c.h.bf16 %v418_v19  ;;  %v391_v32 = vpack.c.bf16 %v182_v27, %v181_v21  ;;  %vm151_vm8 = vcmp.gt.f32.partialorder %v135_v23, 0.0 }
  0x18   :  { %vm152_vm9 = vcmp.gt.f32.partialorder %v136_v24, 0.0  ;;  %v167_v33 = vmul.f32 0.2, %v135_v23  ;;  %v168_v34 = vmul.f32 0.2, %v136_v24  ;;  %v90_v35 = vadd.f32 %v479_v7, %v67_v25 }
  0x19   :  { %v137_v36 = vadd.f32 %v363_v18, %v89_v28  ;;  %v68_v37 = vmul.f32 %v335_v29, %v465_v1  ;;  %429 = vst [vmem:[%s577_s4 + $0x18] sm:$0xff] %v391_v32   ;;  %v69_v40 = vmul.f32 %v336_v30, %v465_v1  ;;  %v367_v41 = vunpack.c.l.bf16 %v425_v31 }
  0x1a   :  { %v183_v39 = vsel %vm151_vm8, %v135_v23, %v167_v33  ;;  %v368_v42 = vunpack.c.h.bf16 %v425_v31  ;;  %v184_v43 = vsel %vm152_vm9, %v136_v24, %v168_v34  ;;  %v138_v44 = vadd.f32 %v364_v26, %v90_v35 }
  0x1b   :  { %vm153_vm10 = vcmp.gt.f32.partialorder %v137_v36, 0.0  ;;  %v169_v45 = vmul.f32 0.2, %v137_v36  ;;  %v396_v46 = vpack.c.bf16 %v184_v43, %v183_v39  ;;  %v91_v47 = vadd.f32 %v479_v7, %v68_v37 }
  0x1c   :  { %v92_v48 = vadd.f32 %v479_v7, %v69_v40  ;;  %v339_v49 = vunpack.c.l.bf16 %v419_v38  ;;  %vm154_vm11 = vcmp.gt.f32.partialorder %v138_v44, 0.0  ;;  %v170_v51 = vmul.f32 0.2, %v138_v44 }
  0x1d   :  { %v185_v52 = vsel %vm153_vm10, %v137_v36, %v169_v45  ;;  %v340_v53 = vunpack.c.h.bf16 %v419_v38  ;;  %430 = vst [vmem:[%s577_s4 + $0x20] sm:$0xff] %v396_v46   ;;  %v139_v54 = vadd.f32 %v367_v41, %v91_v47  ;;  %v371_v59 = vunpack.c.l.bf16 %v426_v50 }
  0x1e   :  { %v140_v55 = vadd.f32 %v368_v42, %v92_v48  ;;  %v70_v56 = vmul.f32 %v339_v49, %v465_v1  ;;  %v186_v57 = vsel %vm154_vm11, %v138_v44, %v170_v51  ;;  %v372_v60 = vunpack.c.h.bf16 %v426_v50 }
  0x1f   :  { %v71_v58 = vmul.f32 %v340_v53, %v465_v1  ;;  %v401_v61 = vpack.c.bf16 %v186_v57, %v185_v52  ;;  %vm155_vm12 = vcmp.gt.f32.partialorder %v139_v54, 0.0  ;;  %v171_v62 = vmul.f32 0.2, %v139_v54 }
  0x20   :  { %vm156_vm13 = vcmp.gt.f32.partialorder %v140_v55, 0.0  ;;  %v172_v63 = vmul.f32 0.2, %v140_v55  ;;  %v93_v0 = vadd.f32 %v479_v7, %v70_v56 }
  0x21   :  { %v94_v2 = vadd.f32 %v479_v7, %v71_v58  ;;  %431 = vst [vmem:[%s577_s4 + $0x28] sm:$0xff] %v401_v61   ;;  %v187_v3 = vsel %vm155_vm12, %v139_v54, %v171_v62 }
  0x22   :  { %v188_v4 = vsel %vm156_vm13, %v140_v55, %v172_v63  ;;  %v141_v5 = vadd.f32 %v371_v59, %v93_v0 }
  0x23   :  { %v142_v6 = vadd.f32 %v372_v60, %v94_v2  ;;  %v406_v1 = vpack.c.bf16 %v188_v4, %v187_v3 }
  0x24   :  { %vm157_vm14 = vcmp.gt.f32.partialorder %v141_v5, 0.0  ;;  %v173_v8 = vmul.f32 0.2, %v141_v5 }
  0x25   :  { %vm158_vm15 = vcmp.gt.f32.partialorder %v142_v6, 0.0  ;;  %v174_v9 = vmul.f32 0.2, %v142_v6  ;;  %432 = vst [vmem:[%s577_s4 + $0x30] sm:$0xff] %v406_v1  }
  0x26   :  { %v189_v10 = vsel %vm157_vm14, %v141_v5, %v173_v8 }
  0x27   :  { %v190_v11 = vsel %vm158_vm15, %v142_v6, %v174_v9 }
  0x28   :  { %v411_v7 = vpack.c.bf16 %v190_v11, %v189_v10 }
  0x2a   :  { %433 = vst [vmem:[%s577_s4 + $0x38] sm:$0xff] %v411_v7  }

// kernel: _lambda_.26
= control target key start
LH: loop header
LB: loop body
LE: loop exit
PB: predicated region body
PF: predicated region fallthrough
CT: control target
= control target key end

     0   :  { %s1631_s0 = inlined_call_operand.vmem [shape: bf16[512,128], index: 0, kind: input, shape index: {}]   ;;  %s1632_s1 = inlined_call_operand.vmem [shape: f32[1,128], index: 1, kind: input, shape index: {}]   ;;  %s1633_s2 = inlined_call_operand.vmem [shape: f32[1,128], index: 2, kind: input, shape index: {}]   ;;  %s1634_s3 = inlined_call_operand.vmem [shape: bf16[512,128], index: 3, kind: output, shape index: {}]  }
   0x1   :  { %v931_v0 = vld [vmem:[%s1631_s0] sm:$0xff]   ;;  %v1218_v4 = vld [vmem:[%s1631_s0 + $0x8] sm:$0xff]   ;;  %v1219_v5 = vld [vmem:[%s1631_s0 + $0x10] sm:$0xff]  }
   0x2   :  { %v1306_v1 = vld [vmem:[%s1632_s1] ss:$0 sm:$0xff]  ;;  %v932_v2 = vunpack.c.l.bf16 %v931_v0  ;;  %v933_v3 = vunpack.c.h.bf16 %v931_v0  ;;  %v1220_v6 = vld [vmem:[%s1631_s0 + $0x18] sm:$0xff]   ;;  %v936_v8 = vunpack.c.l.bf16 %v1218_v4  ;;  %v937_v9 = vunpack.c.h.bf16 %v1218_v4  ;;  %v1222_v35 = vld [vmem:[%s1631_s0 + $0x28] sm:$0xff]  }
   0x3   :  { %v1320_v7 = vld [vmem:[%s1633_s2] ss:$0 sm:$0xff]  ;;  %v940_v10 = vunpack.c.l.bf16 %v1219_v5  ;;  %v941_v11 = vunpack.c.h.bf16 %v1219_v5  ;;  %v944_v14 = vunpack.c.l.bf16 %v1220_v6  ;;  %v945_v15 = vunpack.c.h.bf16 %v1220_v6  ;;  %v1223_v48 = vld [vmem:[%s1631_s0 + $0x30] sm:$0xff]   ;;  %v1224_v4 = vld [vmem:[%s1631_s0 + $0x38] sm:$0xff]  }
   0x4   :  { %v149_v12 = vmul.f32 %v932_v2, %v1306_v1  ;;  %v150_v13 = vmul.f32 %v933_v3, %v1306_v1  ;;  %v151_v16 = vmul.f32 %v936_v8, %v1306_v1  ;;  %v152_v17 = vmul.f32 %v937_v9, %v1306_v1  ;;  %v1221_v34 = vld [vmem:[%s1631_s0 + $0x20] sm:$0xff]  }
   0x5   :  { %v153_v18 = vmul.f32 %v940_v10, %v1306_v1  ;;  %v154_v19 = vmul.f32 %v941_v11, %v1306_v1  ;;  %v155_v22 = vmul.f32 %v944_v14, %v1306_v1  ;;  %v156_v23 = vmul.f32 %v945_v15, %v1306_v1  ;;  %v1225_v15 = vld [vmem:[%s1631_s0 + $0x40] sm:$0xff]  }
   0x6   :  { %v220_v20 = vadd.f32 %v1320_v7, %v149_v12  ;;  %v221_v21 = vadd.f32 %v1320_v7, %v150_v13  ;;  %v222_v24 = vadd.f32 %v1320_v7, %v151_v16  ;;  %v223_v25 = vadd.f32 %v1320_v7, %v152_v17 }
   0x7   :  { %v224_v26 = vadd.f32 %v1320_v7, %v153_v18  ;;  %v225_v27 = vadd.f32 %v1320_v7, %v154_v19  ;;  %v226_v42 = vadd.f32 %v1320_v7, %v155_v22  ;;  %v227_v43 = vadd.f32 %v1320_v7, %v156_v23 }
   0x8   :  { %vm284_vm0 = vcmp.gt.f32.partialorder %v220_v20, 0.0  ;;  %vm285_vm1 = vcmp.gt.f32.partialorder %v221_v21, 0.0  ;;  %v348_v28 = vmul.f32 0.2, %v220_v20  ;;  %v349_v29 = vmul.f32 0.2, %v221_v21 }
   0x9   :  { %vm286_vm2 = vcmp.gt.f32.partialorder %v222_v24, 0.0  ;;  %vm287_vm3 = vcmp.gt.f32.partialorder %v223_v25, 0.0  ;;  %v350_v30 = vmul.f32 0.2, %v222_v24  ;;  %v351_v31 = vmul.f32 0.2, %v223_v25 }
   0xa   :  { %v412_v32 = vsel %vm284_vm0, %v220_v20, %v348_v28  ;;  %v413_v33 = vsel %vm285_vm1, %v221_v21, %v349_v29  ;;  %vm288_vm4 = vcmp.gt.f32.partialorder %v224_v26, 0.0  ;;  %vm289_vm5 = vcmp.gt.f32.partialorder %v225_v27, 0.0 }
   0xb   :  { %v1061_v36 = vpack.c.bf16 %v413_v33, %v412_v32  ;;  %v414_v37 = vsel %vm286_vm2, %v222_v24, %v350_v30  ;;  %v415_v38 = vsel %vm287_vm3, %v223_v25, %v351_v31  ;;  %v352_v39 = vmul.f32 0.2, %v224_v26 }
   0xc   :  { %v1066_v40 = vpack.c.bf16 %v415_v38, %v414_v37  ;;  %v353_v41 = vmul.f32 0.2, %v225_v27  ;;  %v948_v45 = vunpack.c.l.bf16 %v1221_v34  ;;  %v949_v46 = vunpack.c.h.bf16 %v1221_v34 }
   0xd   :  { %1062 = vst [vmem:[%s1634_s3] sm:$0xff] %v1061_v36   ;;  %v416_v44 = vsel %vm288_vm4, %v224_v26, %v352_v39  ;;  %v952_v47 = vunpack.c.l.bf16 %v1222_v35  ;;  %vm290_vm6 = vcmp.gt.f32.partialorder %v226_v42, 0.0  ;;  %vm291_vm7 = vcmp.gt.f32.partialorder %v227_v43, 0.0  ;;  %v1226_v26 = vld [vmem:[%s1631_s0 + $0x48] sm:$0xff]  }
   0xe   :  { %1249 = vst [vmem:[%s1634_s3 + $0x8] sm:$0xff] %v1066_v40   ;;  %v417_v49 = vsel %vm289_vm5, %v225_v27, %v353_v41  ;;  %v354_v50 = vmul.f32 0.2, %v226_v42  ;;  %v355_v52 = vmul.f32 0.2, %v227_v43  ;;  %v157_v53 = vmul.f32 %v948_v45, %v1306_v1  ;;  %v1227_v27 = vld [vmem:[%s1631_s0 + $0x50] sm:$0xff]  }
   0xf   :  { %v1071_v51 = vpack.c.bf16 %v417_v49, %v416_v44  ;;  %v158_v54 = vmul.f32 %v949_v46, %v1306_v1  ;;  %v953_v56 = vunpack.c.h.bf16 %v1222_v35  ;;  %v159_v57 = vmul.f32 %v952_v47, %v1306_v1 }
  0x10   :  { %v418_v55 = vsel %vm290_vm6, %v226_v42, %v354_v50  ;;  %v956_v58 = vunpack.c.l.bf16 %v1223_v48  ;;  %v419_v59 = vsel %vm291_vm7, %v227_v43, %v355_v52  ;;  %v228_v60 = vadd.f32 %v1320_v7, %v157_v53 }
  0x11   :  { %1250 = vst [vmem:[%s1634_s3 + $0x10] sm:$0xff] %v1071_v51   ;;  %v229_v61 = vadd.f32 %v1320_v7, %v158_v54  ;;  %v957_v62 = vunpack.c.h.bf16 %v1223_v48  ;;  %v1076_v63 = vpack.c.bf16 %v419_v59, %v418_v55  ;;  %v160_v0 = vmul.f32 %v953_v56, %v1306_v1  ;;  %v1228_v55 = vld [vmem:[%s1631_s0 + $0x58] sm:$0xff]  }
  0x12   :  { %v230_v2 = vadd.f32 %v1320_v7, %v159_v57  ;;  %v161_v3 = vmul.f32 %v956_v58, %v1306_v1  ;;  %vm292_vm8 = vcmp.gt.f32.partialorder %v228_v60, 0.0  ;;  %v356_v5 = vmul.f32 0.2, %v228_v60 }
  0x13   :  { %vm293_vm9 = vcmp.gt.f32.partialorder %v229_v61, 0.0  ;;  %v357_v6 = vmul.f32 0.2, %v229_v61  ;;  %1251 = vst [vmem:[%s1634_s3 + $0x18] sm:$0xff] %v1076_v63   ;;  %v231_v8 = vadd.f32 %v1320_v7, %v160_v0  ;;  %v162_v10 = vmul.f32 %v957_v62, %v1306_v1 }
  0x14   :  { %vm294_vm10 = vcmp.gt.f32.partialorder %v230_v2, 0.0  ;;  %v358_v9 = vmul.f32 0.2, %v230_v2  ;;  %v420_v11 = vsel %vm292_vm8, %v228_v60, %v356_v5  ;;  %v232_v13 = vadd.f32 %v1320_v7, %v161_v3  ;;  %v1229_v60 = vld [vmem:[%s1631_s0 + $0x60] sm:$0xff]  }
  0x15   :  { %v421_v12 = vsel %vm293_vm9, %v229_v61, %v357_v6  ;;  %v960_v14 = vunpack.c.l.bf16 %v1224_v4  ;;  %vm295_vm11 = vcmp.gt.f32.partialorder %v231_v8, 0.0  ;;  %v359_v17 = vmul.f32 0.2, %v231_v8 }
  0x16   :  { %v1081_v16 = vpack.c.bf16 %v421_v12, %v420_v11  ;;  %v422_v18 = vsel %vm294_vm10, %v230_v2, %v358_v9  ;;  %v233_v19 = vadd.f32 %v1320_v7, %v162_v10  ;;  %vm296_vm12 = vcmp.gt.f32.partialorder %v232_v13, 0.0  ;;  %v1230_v9 = vld [vmem:[%s1631_s0 + $0x68] sm:$0xff]  }
  0x17   :  { %v360_v20 = vmul.f32 0.2, %v232_v13  ;;  %v961_v21 = vunpack.c.h.bf16 %v1224_v4  ;;  %v423_v22 = vsel %vm295_vm11, %v231_v8, %v359_v17  ;;  %v163_v23 = vmul.f32 %v960_v14, %v1306_v1 }
  0x18   :  { %1252 = vst [vmem:[%s1634_s3 + $0x20] sm:$0xff] %v1081_v16   ;;  %v964_v24 = vunpack.c.l.bf16 %v1225_v15  ;;  %v965_v25 = vunpack.c.h.bf16 %v1225_v15  ;;  %v1086_v28 = vpack.c.bf16 %v423_v22, %v422_v18  ;;  %vm297_vm13 = vcmp.gt.f32.partialorder %v233_v19, 0.0 }
  0x19   :  { %v361_v29 = vmul.f32 0.2, %v233_v19  ;;  %v424_v30 = vsel %vm296_vm12, %v232_v13, %v360_v20  ;;  %v164_v31 = vmul.f32 %v961_v21, %v1306_v1  ;;  %v234_v32 = vadd.f32 %v1320_v7, %v163_v23 }
  0x1a   :  { %v165_v33 = vmul.f32 %v964_v24, %v1306_v1  ;;  %v166_v34 = vmul.f32 %v965_v25, %v1306_v1  ;;  %1253 = vst [vmem:[%s1634_s3 + $0x28] sm:$0xff] %v1086_v28   ;;  %v968_v36 = vunpack.c.l.bf16 %v1226_v26  ;;  %v969_v37 = vunpack.c.h.bf16 %v1226_v26  ;;  %v1231_v28 = vld [vmem:[%s1631_s0 + $0x70] sm:$0xff]  }
  0x1b   :  { %v425_v35 = vsel %vm297_vm13, %v233_v19, %v361_v29  ;;  %v972_v38 = vunpack.c.l.bf16 %v1227_v27  ;;  %v235_v40 = vadd.f32 %v1320_v7, %v164_v31  ;;  %vm298_vm14 = vcmp.gt.f32.partialorder %v234_v32, 0.0 }
  0x1c   :  { %v1091_v39 = vpack.c.bf16 %v425_v35, %v424_v30  ;;  %v362_v41 = vmul.f32 0.2, %v234_v32  ;;  %v236_v42 = vadd.f32 %v1320_v7, %v165_v33  ;;  %v237_v43 = vadd.f32 %v1320_v7, %v166_v34 }
  0x1d   :  { %v167_v44 = vmul.f32 %v968_v36, %v1306_v1  ;;  %v168_v45 = vmul.f32 %v969_v37, %v1306_v1  ;;  %vm299_vm15 = vcmp.gt.f32.partialorder %v235_v40, 0.0  ;;  %v363_v46 = vmul.f32 0.2, %v235_v40  ;;  %v1232_v37 = vld [vmem:[%s1631_s0 + $0x78] sm:$0xff]  }
  0x1e   :  { %1254 = vst [vmem:[%s1634_s3 + $0x30] sm:$0xff] %v1091_v39   ;;  %v426_v47 = vsel %vm298_vm14, %v234_v32, %v362_v41  ;;  %v973_v48 = vunpack.c.h.bf16 %v1227_v27  ;;  %vm300_vm0 = vcmp.gt.f32.partialorder %v236_v42, 0.0  ;;  %vm301_vm1 = vcmp.gt.f32.partialorder %v237_v43, 0.0 }
  0x1f   :  { %v364_v49 = vmul.f32 0.2, %v236_v42  ;;  %v365_v50 = vmul.f32 0.2, %v237_v43  ;;  %v427_v51 = vsel %vm299_vm15, %v235_v40, %v363_v46  ;;  %v238_v52 = vadd.f32 %v1320_v7, %v167_v44 }
  0x20   :  { %v239_v53 = vadd.f32 %v1320_v7, %v168_v45  ;;  %v169_v54 = vmul.f32 %v972_v38, %v1306_v1  ;;  %v1096_v56 = vpack.c.bf16 %v427_v51, %v426_v47  ;;  %v170_v59 = vmul.f32 %v973_v48, %v1306_v1 }
  0x21   :  { %v428_v57 = vsel %vm300_vm0, %v236_v42, %v364_v49  ;;  %v429_v58 = vsel %vm301_vm1, %v237_v43, %v365_v50  ;;  %vm302_vm2 = vcmp.gt.f32.partialorder %v238_v52, 0.0  ;;  %v366_v62 = vmul.f32 0.2, %v238_v52  ;;  %v1233_v42 = vld [vmem:[%s1631_s0 + $0x80] sm:$0xff]   ;;  %v1234_v50 = vld [vmem:[%s1631_s0 + $0x88] sm:$0xff]  }
  0x22   :  { %v1101_v61 = vpack.c.bf16 %v429_v58, %v428_v57  ;;  %vm303_vm3 = vcmp.gt.f32.partialorder %v239_v53, 0.0  ;;  %1255 = vst [vmem:[%s1634_s3 + $0x38] sm:$0xff] %v1096_v56   ;;  %v367_v63 = vmul.f32 0.2, %v239_v53  ;;  %v240_v0 = vadd.f32 %v1320_v7, %v169_v54 }
  0x23   :  { %v241_v2 = vadd.f32 %v1320_v7, %v170_v59  ;;  %v976_v3 = vunpack.c.l.bf16 %v1228_v55  ;;  %v430_v4 = vsel %vm302_vm2, %v238_v52, %v366_v62  ;;  %v977_v5 = vunpack.c.h.bf16 %v1228_v55 }
  0x24   :  { %1256 = vst [vmem:[%s1634_s3 + $0x40] sm:$0xff] %v1101_v61   ;;  %v980_v6 = vunpack.c.l.bf16 %v1229_v60  ;;  %v981_v8 = vunpack.c.h.bf16 %v1229_v60  ;;  %v431_v10 = vsel %vm303_vm3, %v239_v53, %v367_v63  ;;  %vm304_vm4 = vcmp.gt.f32.partialorder %v240_v0, 0.0 }
  0x25   :  { %vm305_vm5 = vcmp.gt.f32.partialorder %v241_v2, 0.0  ;;  %v368_v11 = vmul.f32 0.2, %v240_v0  ;;  %v1106_v12 = vpack.c.bf16 %v431_v10, %v430_v4  ;;  %v369_v13 = vmul.f32 0.2, %v241_v2 }
  0x26   :  { %v171_v14 = vmul.f32 %v976_v3, %v1306_v1  ;;  %v172_v15 = vmul.f32 %v977_v5, %v1306_v1  ;;  %v173_v17 = vmul.f32 %v980_v6, %v1306_v1  ;;  %v174_v18 = vmul.f32 %v981_v8, %v1306_v1 }
  0x27   :  { %v432_v16 = vsel %vm304_vm4, %v240_v0, %v368_v11  ;;  %v984_v19 = vunpack.c.l.bf16 %v1230_v9  ;;  %1257 = vst [vmem:[%s1634_s3 + $0x48] sm:$0xff] %v1106_v12   ;;  %v433_v20 = vsel %vm305_vm5, %v241_v2, %v369_v13  ;;  %v985_v23 = vunpack.c.h.bf16 %v1230_v9 }
  0x28   :  { %v242_v21 = vadd.f32 %v1320_v7, %v171_v14  ;;  %v243_v22 = vadd.f32 %v1320_v7, %v172_v15  ;;  %v1111_v24 = vpack.c.bf16 %v433_v20, %v432_v16  ;;  %v244_v25 = vadd.f32 %v1320_v7, %v173_v17  ;;  %v1235_v15 = vld [vmem:[%s1631_s0 + $0x90] sm:$0xff]   ;;  %v1236_v20 = vld [vmem:[%s1631_s0 + $0x98] sm:$0xff]  }
  0x29   :  { %v245_v26 = vadd.f32 %v1320_v7, %v174_v18  ;;  %v175_v27 = vmul.f32 %v984_v19, %v1306_v1  ;;  %v176_v35 = vmul.f32 %v985_v23, %v1306_v1  ;;  %v988_v41 = vunpack.c.l.bf16 %v1231_v28 }
  0x2a   :  { %vm306_vm6 = vcmp.gt.f32.partialorder %v242_v21, 0.0  ;;  %vm307_vm7 = vcmp.gt.f32.partialorder %v243_v22, 0.0  ;;  %v370_v29 = vmul.f32 0.2, %v242_v21  ;;  %v371_v30 = vmul.f32 0.2, %v243_v22 }
  0x2b   :  { %1258 = vst [vmem:[%s1634_s3 + $0x50] sm:$0xff] %v1111_v24   ;;  %vm308_vm8 = vcmp.gt.f32.partialorder %v244_v25, 0.0  ;;  %vm309_vm9 = vcmp.gt.f32.partialorder %v245_v26, 0.0  ;;  %v372_v31 = vmul.f32 0.2, %v244_v25  ;;  %v246_v36 = vadd.f32 %v1320_v7, %v175_v27 }
  0x2c   :  { %v373_v32 = vmul.f32 0.2, %v245_v26  ;;  %v434_v33 = vsel %vm306_vm6, %v242_v21, %v370_v29  ;;  %v435_v34 = vsel %vm307_vm7, %v243_v22, %v371_v30  ;;  %v247_v44 = vadd.f32 %v1320_v7, %v176_v35  ;;  %v1237_v21 = vld [vmem:[%s1631_s0 + $0xa0] sm:$0xff]  }
  0x2d   :  { %v1116_v38 = vpack.c.bf16 %v435_v34, %v434_v33  ;;  %v436_v39 = vsel %vm308_vm8, %v244_v25, %v372_v31  ;;  %vm310_vm10 = vcmp.gt.f32.partialorder %v246_v36, 0.0  ;;  %v374_v45 = vmul.f32 0.2, %v246_v36 }
  0x2e   :  { %v437_v40 = vsel %vm309_vm9, %v245_v26, %v373_v32  ;;  %v989_v46 = vunpack.c.h.bf16 %v1231_v28  ;;  %v177_v47 = vmul.f32 %v988_v41, %v1306_v1  ;;  %v992_v48 = vunpack.c.l.bf16 %v1232_v37 }
  0x2f   :  { %v1121_v43 = vpack.c.bf16 %v437_v40, %v436_v39  ;;  %1259 = vst [vmem:[%s1634_s3 + $0x58] sm:$0xff] %v1116_v38   ;;  %v993_v49 = vunpack.c.h.bf16 %v1232_v37  ;;  %vm311_vm11 = vcmp.gt.f32.partialorder %v247_v44, 0.0  ;;  %v375_v51 = vmul.f32 0.2, %v247_v44  ;;  %v1238_v40 = vld [vmem:[%s1631_s0 + $0xa8] sm:$0xff]  }
  0x30   :  { %v438_v52 = vsel %vm310_vm10, %v246_v36, %v374_v45  ;;  %v996_v53 = vunpack.c.l.bf16 %v1233_v42  ;;  %v178_v54 = vmul.f32 %v989_v46, %v1306_v1  ;;  %v248_v55 = vadd.f32 %v1320_v7, %v177_v47 }
  0x31   :  { %1260 = vst [vmem:[%s1634_s3 + $0x60] sm:$0xff] %v1121_v43   ;;  %v179_v56 = vmul.f32 %v992_v48, %v1306_v1  ;;  %v180_v57 = vmul.f32 %v993_v49, %v1306_v1  ;;  %v439_v58 = vsel %vm311_vm11, %v247_v44, %v375_v51  ;;  %v997_v59 = vunpack.c.h.bf16 %v1233_v42 }
  0x32   :  { %v181_v60 = vmul.f32 %v996_v53, %v1306_v1  ;;  %v1000_v61 = vunpack.c.l.bf16 %v1234_v50  ;;  %v1126_v62 = vpack.c.bf16 %v439_v58, %v438_v52  ;;  %v249_v63 = vadd.f32 %v1320_v7, %v178_v54 }
  0x33   :  { %vm312_vm12 = vcmp.gt.f32.partialorder %v248_v55, 0.0  ;;  %v376_v0 = vmul.f32 0.2, %v248_v55  ;;  %v250_v2 = vadd.f32 %v1320_v7, %v179_v56  ;;  %v251_v3 = vadd.f32 %v1320_v7, %v180_v57 }
  0x34   :  { %v182_v4 = vmul.f32 %v997_v59, %v1306_v1  ;;  %v252_v5 = vadd.f32 %v1320_v7, %v181_v60  ;;  %1261 = vst [vmem:[%s1634_s3 + $0x68] sm:$0xff] %v1126_v62   ;;  %vm313_vm13 = vcmp.gt.f32.partialorder %v249_v63, 0.0  ;;  %v377_v6 = vmul.f32 0.2, %v249_v63 }
  0x35   :  { %v440_v8 = vsel %vm312_vm12, %v248_v55, %v376_v0  ;;  %v1001_v9 = vunpack.c.h.bf16 %v1234_v50  ;;  %vm314_vm14 = vcmp.gt.f32.partialorder %v250_v2, 0.0  ;;  %vm315_vm15 = vcmp.gt.f32.partialorder %v251_v3, 0.0  ;;  %v1239_v0 = vld [vmem:[%s1631_s0 + $0xb0] sm:$0xff]  }
  0x36   :  { %v378_v10 = vmul.f32 0.2, %v250_v2  ;;  %v379_v11 = vmul.f32 0.2, %v251_v3  ;;  %v441_v12 = vsel %vm313_vm13, %v249_v63, %v377_v6  ;;  %v253_v13 = vadd.f32 %v1320_v7, %v182_v4 }
  0x37   :  { %vm316_vm0 = vcmp.gt.f32.partialorder %v252_v5, 0.0  ;;  %v380_v14 = vmul.f32 0.2, %v252_v5  ;;  %v1131_v16 = vpack.c.bf16 %v441_v12, %v440_v8  ;;  %v183_v19 = vmul.f32 %v1000_v61, %v1306_v1 }
  0x38   :  { %v442_v17 = vsel %vm314_vm14, %v250_v2, %v378_v10  ;;  %v443_v18 = vsel %vm315_vm15, %v251_v3, %v379_v11  ;;  %vm317_vm1 = vcmp.gt.f32.partialorder %v253_v13, 0.0  ;;  %v381_v23 = vmul.f32 0.2, %v253_v13  ;;  %v1240_v2 = vld [vmem:[%s1631_s0 + $0xb8] sm:$0xff]  }
  0x39   :  { %v1136_v22 = vpack.c.bf16 %v443_v18, %v442_v17  ;;  %v444_v24 = vsel %vm316_vm0, %v252_v5, %v380_v14  ;;  %1262 = vst [vmem:[%s1634_s3 + $0x70] sm:$0xff] %v1131_v16   ;;  %v184_v25 = vmul.f32 %v1001_v9, %v1306_v1  ;;  %v254_v26 = vadd.f32 %v1320_v7, %v183_v19  ;;  %v1241_v18 = vld [vmem:[%s1631_s0 + $0xc0] sm:$0xff]  }
  0x3a   :  { %v1004_v27 = vunpack.c.l.bf16 %v1235_v15  ;;  %v1005_v28 = vunpack.c.h.bf16 %v1235_v15  ;;  %v445_v29 = vsel %vm317_vm1, %v253_v13, %v381_v23  ;;  %v1008_v30 = vunpack.c.l.bf16 %v1236_v20 }
  0x3b   :  { %1263 = vst [vmem:[%s1634_s3 + $0x78] sm:$0xff] %v1136_v22   ;;  %v1009_v31 = vunpack.c.h.bf16 %v1236_v20  ;;  %v1012_v32 = vunpack.c.l.bf16 %v1237_v21  ;;  %v1141_v33 = vpack.c.bf16 %v445_v29, %v444_v24  ;;  %v255_v34 = vadd.f32 %v1320_v7, %v184_v25 }
  0x3c   :  { %vm318_vm2 = vcmp.gt.f32.partialorder %v254_v26, 0.0  ;;  %v382_v35 = vmul.f32 0.2, %v254_v26  ;;  %v185_v36 = vmul.f32 %v1004_v27, %v1306_v1  ;;  %v186_v37 = vmul.f32 %v1005_v28, %v1306_v1 }
  0x3d   :  { %v187_v38 = vmul.f32 %v1008_v30, %v1306_v1  ;;  %v188_v39 = vmul.f32 %v1009_v31, %v1306_v1  ;;  %1264 = vst [vmem:[%s1634_s3 + $0x80] sm:$0xff] %v1141_v33   ;;  %vm319_vm3 = vcmp.gt.f32.partialorder %v255_v34, 0.0  ;;  %v383_v41 = vmul.f32 0.2, %v255_v34 }
  0x3e   :  { %v446_v42 = vsel %vm318_vm2, %v254_v26, %v382_v35  ;;  %v1013_v43 = vunpack.c.h.bf16 %v1237_v21  ;;  %v256_v44 = vadd.f32 %v1320_v7, %v185_v36  ;;  %v257_v45 = vadd.f32 %v1320_v7, %v186_v37  ;;  %v1242_v36 = vld [vmem:[%s1631_s0 + $0xc8] sm:$0xff]  }
  0x3f   :  { %v258_v46 = vadd.f32 %v1320_v7, %v187_v38  ;;  %v259_v47 = vadd.f32 %v1320_v7, %v188_v39  ;;  %v447_v48 = vsel %vm319_vm3, %v255_v34, %v383_v41  ;;  %v189_v49 = vmul.f32 %v1012_v32, %v1306_v1 }
  0x40   :  { %v190_v50 = vmul.f32 %v1013_v43, %v1306_v1  ;;  %v1016_v51 = vunpack.c.l.bf16 %v1238_v40  ;;  %v1146_v52 = vpack.c.bf16 %v447_v48, %v446_v42  ;;  %vm320_vm4 = vcmp.gt.f32.partialorder %v256_v44, 0.0  ;;  %v1243_v42 = vld [vmem:[%s1631_s0 + $0xd0] sm:$0xff]  }
  0x41   :  { %vm321_vm5 = vcmp.gt.f32.partialorder %v257_v45, 0.0  ;;  %v384_v53 = vmul.f32 0.2, %v256_v44  ;;  %v385_v54 = vmul.f32 0.2, %v257_v45  ;;  %vm322_vm6 = vcmp.gt.f32.partialorder %v258_v46, 0.0 }
  0x42   :  { %vm323_vm7 = vcmp.gt.f32.partialorder %v259_v47, 0.0  ;;  %v386_v55 = vmul.f32 0.2, %v258_v46  ;;  %1265 = vst [vmem:[%s1634_s3 + $0x88] sm:$0xff] %v1146_v52   ;;  %v387_v57 = vmul.f32 0.2, %v259_v47  ;;  %v260_v58 = vadd.f32 %v1320_v7, %v189_v49 }
  0x43   :  { %v448_v56 = vsel %vm320_vm4, %v256_v44, %v384_v53  ;;  %v261_v59 = vadd.f32 %v1320_v7, %v190_v50  ;;  %v449_v60 = vsel %vm321_vm5, %v257_v45, %v385_v54  ;;  %v1017_v62 = vunpack.c.h.bf16 %v1238_v40 }
  0x44   :  { %v450_v61 = vsel %vm322_vm6, %v258_v46, %v386_v55  ;;  %v191_v63 = vmul.f32 %v1016_v51, %v1306_v1  ;;  %v1151_v3 = vpack.c.bf16 %v449_v60, %v448_v56  ;;  %v451_v4 = vsel %vm323_vm7, %v259_v47, %v387_v57  ;;  %v1244_v55 = vld [vmem:[%s1631_s0 + $0xd8] sm:$0xff]  }
  0x45   :  { %vm324_vm8 = vcmp.gt.f32.partialorder %v260_v58, 0.0  ;;  %vm325_vm9 = vcmp.gt.f32.partialorder %v261_v59, 0.0  ;;  %v1156_v5 = vpack.c.bf16 %v451_v4, %v450_v61  ;;  %v388_v6 = vmul.f32 0.2, %v260_v58 }
  0x46   :  { %v389_v8 = vmul.f32 0.2, %v261_v59  ;;  %v192_v9 = vmul.f32 %v1017_v62, %v1306_v1  ;;  %1266 = vst [vmem:[%s1634_s3 + $0x90] sm:$0xff] %v1151_v3   ;;  %v262_v10 = vadd.f32 %v1320_v7, %v191_v63  ;;  %v1020_v11 = vunpack.c.l.bf16 %v1239_v0 }
  0x47   :  { %v1021_v12 = vunpack.c.h.bf16 %v1239_v0  ;;  %v1024_v13 = vunpack.c.l.bf16 %v1240_v2  ;;  %1267 = vst [vmem:[%s1634_s3 + $0x98] sm:$0xff] %v1156_v5   ;;  %v452_v14 = vsel %vm324_vm8, %v260_v58, %v388_v6  ;;  %v1025_v17 = vunpack.c.h.bf16 %v1240_v2 }
  0x48   :  { %v453_v15 = vsel %vm325_vm9, %v261_v59, %v389_v8  ;;  %v263_v16 = vadd.f32 %v1320_v7, %v192_v9  ;;  %vm326_vm10 = vcmp.gt.f32.partialorder %v262_v10, 0.0  ;;  %v390_v20 = vmul.f32 0.2, %v262_v10 }
  0x49   :  { %v1161_v19 = vpack.c.bf16 %v453_v15, %v452_v14  ;;  %v193_v21 = vmul.f32 %v1020_v11, %v1306_v1  ;;  %v194_v23 = vmul.f32 %v1021_v12, %v1306_v1  ;;  %v195_v24 = vmul.f32 %v1024_v13, %v1306_v1  ;;  %v1246_v14 = vld [vmem:[%s1631_s0 + $0xe8] sm:$0xff]  }
  0x4a   :  { %vm327_vm11 = vcmp.gt.f32.partialorder %v263_v16, 0.0  ;;  %v391_v22 = vmul.f32 0.2, %v263_v16  ;;  %v454_v25 = vsel %vm326_vm10, %v262_v10, %v390_v20  ;;  %v196_v27 = vmul.f32 %v1025_v17, %v1306_v1  ;;  %v1245_v10 = vld [vmem:[%s1631_s0 + $0xe0] sm:$0xff]  }
  0x4b   :  { %1268 = vst [vmem:[%s1634_s3 + $0xa0] sm:$0xff] %v1161_v19   ;;  %v264_v26 = vadd.f32 %v1320_v7, %v193_v21  ;;  %v1028_v28 = vunpack.c.l.bf16 %v1241_v18  ;;  %v265_v30 = vadd.f32 %v1320_v7, %v194_v23  ;;  %v266_v31 = vadd.f32 %v1320_v7, %v195_v24 }
  0x4c   :  { %v455_v29 = vsel %vm327_vm11, %v263_v16, %v391_v22  ;;  %v1029_v32 = vunpack.c.h.bf16 %v1241_v18  ;;  %v267_v35 = vadd.f32 %v1320_v7, %v196_v27  ;;  %v1032_v46 = vunpack.c.l.bf16 %v1242_v36 }
  0x4d   :  { %v1166_v33 = vpack.c.bf16 %v455_v29, %v454_v25  ;;  %vm328_vm12 = vcmp.gt.f32.partialorder %v264_v26, 0.0  ;;  %v392_v34 = vmul.f32 0.2, %v264_v26  ;;  %vm329_vm13 = vcmp.gt.f32.partialorder %v265_v30, 0.0 }
  0x4e   :  { %v393_v37 = vmul.f32 0.2, %v265_v30  ;;  %vm330_vm14 = vcmp.gt.f32.partialorder %v266_v31, 0.0  ;;  %v394_v38 = vmul.f32 0.2, %v266_v31  ;;  %vm331_vm15 = vcmp.gt.f32.partialorder %v267_v35, 0.0 }
  0x4f   :  { %1269 = vst [vmem:[%s1634_s3 + $0xa8] sm:$0xff] %v1166_v33   ;;  %v456_v39 = vsel %vm328_vm12, %v264_v26, %v392_v34  ;;  %v395_v40 = vmul.f32 0.2, %v267_v35  ;;  %v197_v41 = vmul.f32 %v1028_v28, %v1306_v1  ;;  %v198_v45 = vmul.f32 %v1029_v32, %v1306_v1 }
  0x50   :  { %v457_v43 = vsel %vm329_vm13, %v265_v30, %v393_v37  ;;  %v458_v44 = vsel %vm330_vm14, %v266_v31, %v394_v38  ;;  %v1033_v50 = vunpack.c.h.bf16 %v1242_v36  ;;  %v199_v53 = vmul.f32 %v1032_v46, %v1306_v1  ;;  %v1247_v30 = vld [vmem:[%s1631_s0 + $0xf0] sm:$0xff]  }
  0x51   :  { %v1171_v47 = vpack.c.bf16 %v457_v43, %v456_v39  ;;  %v459_v48 = vsel %vm331_vm15, %v267_v35, %v395_v40  ;;  %v268_v49 = vadd.f32 %v1320_v7, %v197_v41  ;;  %v269_v52 = vadd.f32 %v1320_v7, %v198_v45 }
  0x52   :  { %v1176_v51 = vpack.c.bf16 %v459_v48, %v458_v44  ;;  %v1036_v54 = vunpack.c.l.bf16 %v1243_v42  ;;  %v200_v57 = vmul.f32 %v1033_v50, %v1306_v1  ;;  %v1037_v58 = vunpack.c.h.bf16 %v1243_v42  ;;  %v1248_v44 = vld [vmem:[%s1631_s0 + $0xf8] sm:$0xff]  }
  0x53   :  { %1270 = vst [vmem:[%s1634_s3 + $0xb0] sm:$0xff] %v1171_v47   ;;  %vm332_vm0 = vcmp.gt.f32.partialorder %v268_v49, 0.0  ;;  %v396_v56 = vmul.f32 0.2, %v268_v49  ;;  %vm333_vm1 = vcmp.gt.f32.partialorder %v269_v52, 0.0  ;;  %v270_v60 = vadd.f32 %v1320_v7, %v199_v53 }
  0x54   :  { %1271 = vst [vmem:[%s1634_s3 + $0xb8] sm:$0xff] %v1176_v51   ;;  %v397_v59 = vmul.f32 0.2, %v269_v52  ;;  %v201_v61 = vmul.f32 %v1036_v54, %v1306_v1  ;;  %v271_v63 = vadd.f32 %v1320_v7, %v200_v57  ;;  %v202_v0 = vmul.f32 %v1037_v58, %v1306_v1 }
  0x55   :  { %v460_v62 = vsel %vm332_vm0, %v268_v49, %v396_v56  ;;  %v1040_v2 = vunpack.c.l.bf16 %v1244_v55  ;;  %vm334_vm2 = vcmp.gt.f32.partialorder %v270_v60, 0.0  ;;  %v398_v4 = vmul.f32 0.2, %v270_v60 }
  0x56   :  { %v461_v3 = vsel %vm333_vm1, %v269_v52, %v397_v59  ;;  %v272_v5 = vadd.f32 %v1320_v7, %v201_v61  ;;  %vm335_vm3 = vcmp.gt.f32.partialorder %v271_v63, 0.0  ;;  %v399_v8 = vmul.f32 0.2, %v271_v63 }
  0x57   :  { %v1181_v6 = vpack.c.bf16 %v461_v3, %v460_v62  ;;  %v273_v9 = vadd.f32 %v1320_v7, %v202_v0  ;;  %v462_v11 = vsel %vm334_vm2, %v270_v60, %v398_v4  ;;  %v1041_v13 = vunpack.c.h.bf16 %v1244_v55 }
  0x58   :  { %vm336_vm4 = vcmp.gt.f32.partialorder %v272_v5, 0.0  ;;  %v400_v12 = vmul.f32 0.2, %v272_v5  ;;  %v463_v15 = vsel %vm335_vm3, %v271_v63, %v399_v8  ;;  %v203_v17 = vmul.f32 %v1040_v2, %v1306_v1 }
  0x59   :  { %1272 = vst [vmem:[%s1634_s3 + $0xc0] sm:$0xff] %v1181_v6   ;;  %vm337_vm5 = vcmp.gt.f32.partialorder %v273_v9, 0.0  ;;  %v401_v16 = vmul.f32 0.2, %v273_v9  ;;  %v1186_v18 = vpack.c.bf16 %v463_v15, %v462_v11  ;;  %v204_v20 = vmul.f32 %v1041_v13, %v1306_v1 }
  0x5a   :  { %v464_v19 = vsel %vm336_vm4, %v272_v5, %v400_v12  ;;  %v1044_v21 = vunpack.c.l.bf16 %v1245_v10  ;;  %v274_v23 = vadd.f32 %v1320_v7, %v203_v17  ;;  %v1045_v24 = vunpack.c.h.bf16 %v1245_v10 }
  0x5b   :  { %v465_v22 = vsel %vm337_vm5, %v273_v9, %v401_v16  ;;  %v1048_v25 = vunpack.c.l.bf16 %v1246_v14  ;;  %1273 = vst [vmem:[%s1634_s3 + $0xc8] sm:$0xff] %v1186_v18   ;;  %v275_v27 = vadd.f32 %v1320_v7, %v204_v20  ;;  %v1049_v29 = vunpack.c.h.bf16 %v1246_v14 }
  0x5c   :  { %v1191_v26 = vpack.c.bf16 %v465_v22, %v464_v19  ;;  %v205_v28 = vmul.f32 %v1044_v21, %v1306_v1  ;;  %vm338_vm6 = vcmp.gt.f32.partialorder %v274_v23, 0.0  ;;  %v402_v31 = vmul.f32 0.2, %v274_v23 }
  0x5d   :  { %v206_v32 = vmul.f32 %v1045_v24, %v1306_v1  ;;  %v207_v33 = vmul.f32 %v1048_v25, %v1306_v1  ;;  %vm339_vm7 = vcmp.gt.f32.partialorder %v275_v27, 0.0  ;;  %v403_v34 = vmul.f32 0.2, %v275_v27 }
  0x5e   :  { %1274 = vst [vmem:[%s1634_s3 + $0xd0] sm:$0xff] %v1191_v26   ;;  %v276_v35 = vadd.f32 %v1320_v7, %v205_v28  ;;  %v208_v36 = vmul.f32 %v1049_v29, %v1306_v1  ;;  %v466_v37 = vsel %vm338_vm6, %v274_v23, %v402_v31  ;;  %v1052_v40 = vunpack.c.l.bf16 %v1247_v30 }
  0x5f   :  { %v277_v38 = vadd.f32 %v1320_v7, %v206_v32  ;;  %v278_v39 = vadd.f32 %v1320_v7, %v207_v33  ;;  %v467_v41 = vsel %vm339_vm7, %v275_v27, %v403_v34  ;;  %v1053_v51 = vunpack.c.h.bf16 %v1247_v30 }
  0x60   :  { %vm340_vm8 = vcmp.gt.f32.partialorder %v276_v35, 0.0  ;;  %v404_v42 = vmul.f32 0.2, %v276_v35  ;;  %v279_v43 = vadd.f32 %v1320_v7, %v208_v36  ;;  %v1196_v45 = vpack.c.bf16 %v467_v41, %v466_v37 }
  0x61   :  { %vm341_vm9 = vcmp.gt.f32.partialorder %v277_v38, 0.0  ;;  %v405_v46 = vmul.f32 0.2, %v277_v38  ;;  %vm342_vm10 = vcmp.gt.f32.partialorder %v278_v39, 0.0  ;;  %v406_v48 = vmul.f32 0.2, %v278_v39 }
  0x62   :  { %v468_v47 = vsel %vm340_vm8, %v276_v35, %v404_v42  ;;  %vm343_vm11 = vcmp.gt.f32.partialorder %v279_v43, 0.0  ;;  %v407_v49 = vmul.f32 0.2, %v279_v43  ;;  %1275 = vst [vmem:[%s1634_s3 + $0xd8] sm:$0xff] %v1196_v45   ;;  %v209_v52 = vmul.f32 %v1052_v40, %v1306_v1 }
  0x63   :  { %v469_v50 = vsel %vm341_vm9, %v277_v38, %v405_v46  ;;  %v1056_v53 = vunpack.c.l.bf16 %v1248_v44  ;;  %v470_v55 = vsel %vm342_vm10, %v278_v39, %v406_v48  ;;  %v1057_v57 = vunpack.c.h.bf16 %v1248_v44 }
  0x64   :  { %v1201_v54 = vpack.c.bf16 %v469_v50, %v468_v47  ;;  %v471_v56 = vsel %vm343_vm11, %v279_v43, %v407_v49  ;;  %v210_v59 = vmul.f32 %v1053_v51, %v1306_v1  ;;  %v280_v60 = vadd.f32 %v1320_v7, %v209_v52 }
  0x65   :  { %v1206_v58 = vpack.c.bf16 %v471_v56, %v470_v55  ;;  %v211_v61 = vmul.f32 %v1056_v53, %v1306_v1  ;;  %v212_v62 = vmul.f32 %v1057_v57, %v1306_v1 }
  0x66   :  { %1276 = vst [vmem:[%s1634_s3 + $0xe0] sm:$0xff] %v1201_v54   ;;  %v281_v63 = vadd.f32 %v1320_v7, %v210_v59  ;;  %vm344_vm12 = vcmp.gt.f32.partialorder %v280_v60, 0.0  ;;  %v408_v0 = vmul.f32 0.2, %v280_v60 }
  0x67   :  { %1277 = vst [vmem:[%s1634_s3 + $0xe8] sm:$0xff] %v1206_v58   ;;  %v282_v2 = vadd.f32 %v1320_v7, %v211_v61  ;;  %v283_v3 = vadd.f32 %v1320_v7, %v212_v62 }
  0x68   :  { %vm345_vm13 = vcmp.gt.f32.partialorder %v281_v63, 0.0  ;;  %v409_v4 = vmul.f32 0.2, %v281_v63  ;;  %v472_v5 = vsel %vm344_vm12, %v280_v60, %v408_v0 }
  0x69   :  { %vm346_vm14 = vcmp.gt.f32.partialorder %v282_v2, 0.0  ;;  %vm347_vm15 = vcmp.gt.f32.partialorder %v283_v3, 0.0  ;;  %v410_v6 = vmul.f32 0.2, %v282_v2  ;;  %v411_v8 = vmul.f32 0.2, %v283_v3 }
  0x6a   :  { %v473_v1 = vsel %vm345_vm13, %v281_v63, %v409_v4 }
  0x6b   :  { %v1211_v9 = vpack.c.bf16 %v473_v1, %v472_v5  ;;  %v474_v10 = vsel %vm346_vm14, %v282_v2, %v410_v6  ;;  %v475_v11 = vsel %vm347_vm15, %v283_v3, %v411_v8 }
  0x6c   :  { %v1216_v12 = vpack.c.bf16 %v475_v11, %v474_v10 }
  0x6d   :  { %1278 = vst [vmem:[%s1634_s3 + $0xf0] sm:$0xff] %v1211_v9  }
  0x6e   :  { %1279 = vst [vmem:[%s1634_s3 + $0xf8] sm:$0xff] %v1216_v12  }

// kernel: _lambda_.25
= control target key start
LH: loop header
LB: loop body
LE: loop exit
PB: predicated region body
PF: predicated region fallthrough
CT: control target
= control target key end

     0   :  { %s1876_s18 = smov 0   ;;  %s1878_s19 = smov 0   ;;  %s2140_s0 = inlined_call_operand.vmem [shape: bf16[512,144], index: 0, kind: input, shape index: {}]   ;;  %s2141_s1 = inlined_call_operand.vmem [shape: bf16[144,128], index: 1, kind: input, shape index: {}]   ;;  %s2142_s2 = inlined_call_operand.vmem [shape: f32[1,128], index: 2, kind: input, shape index: {}]   ;;  %s2143_s3 = inlined_call_operand.vmem [shape: bf16[512,128], index: 3, kind: output, shape index: {0}]   ;;  %s2144_s4 = inlined_call_operand.vmem [shape: f32[16,128], index: 4, kind: output, shape index: {1}]   ;;  %s2145_s5 = inlined_call_operand.vmem [shape: f32[16,128], index: 5, kind: output, shape index: {2}]  }
   0x1   :  { %s1880_s20 = smov 0  }
   0x2 LB: > { %s35_s21 = sadd.s32 1, %s1839_s19  ;;  %p1493_p0 = scmp.ge.s32.totalorder %s1843_s20, 1  ;;  %s1843_s20 = sphi %s1880_s20, %s16_s20   ;;  %s1839_s19 = sphi %s1878_s19, %s2147_s19   ;;  %s1835_s18 = sphi %s1876_s18, %s2146_s18  }
   0x3   : > { %p37_p1 = scmp.ge.s32.totalorder %s35_s21, 2  ;;  %p250_p2 = scmp.lt.s32.totalorder %s1843_s20, 3 }
   0x5   : > { %s2149_s21 = smov (%p37_p1, %s35_s21), 0  ;;  %p251_p3 = pnand %p1493_p0, %p250_p2 }
   0x6   : > { %v1764_v0 = vld [vmem:[%s2141_s1] sm:$0xff] (!%p251_p3)   ;;  %v1845_v1 = vmov (!%p251_p3), 0   ;;  %s1494_s24 = sshll.u32 (!%p251_p3), %s1835_s18, 5  ;;  %v1765_v2 = vld [vmem:[%s2141_s1 + $0x8] sm:$0xff] (!%p251_p3)   ;;  %v1766_v3 = vld [vmem:[%s2141_s1 + $0x10] sm:$0xff] (!%p251_p3)   ;;  %vm675_vm0 = vcmask (!%p251_p3), 130048  }
   0x7   : > { %254 = sbr.rel (%p251_p3) target bundleno = 364 (0x16c), region = 32  ;;  %724 = vmatprep.subr.bf16.mxu0 (!%p251_p3), %v1845_v1  ;;  %1721 = vmatprep.subr.bf16.mxu1 (!%p251_p3), %v1845_v1  ;;  %p313_p4 = scmp.lt.s32.totalorder (!%p251_p3), %s1494_s24, 63  ;;  %v1767_v4 = vld [vmem:[%s2141_s1 + $0x18] sm:$0xff] (!%p251_p3)   ;;  %v1768_v6 = vld [vmem:[%s2141_s1 + $0x20] sm:$0xff] (!%p251_p3)   ;;  %v1769_v8 = vld [vmem:[%s2141_s1 + $0x28] sm:$0xff] (!%p251_p3)  }
   0x8   : > { %725 = vmatpush1.bf16.msra.mxu0 (!%p251_p3), %v1764_v0  ;;  %1730 = vmatpush1.bf16.msra.mxu1 (!%p251_p3), %v1764_v0  ;;  %v1770_v9 = vld [vmem:[%s2141_s1 + $0x30] sm:$0xff] (!%p251_p3)   ;;  %v1771_v10 = vld [vmem:[%s2141_s1 + $0x38] sm:$0xff] (!%p251_p3)   ;;  %v1772_v11 = vld [vmem:[%s2141_s1 + $0x40] sm:$0xff] (!%p251_p3)   ;;  %p344_p5 = scmp.lt.s32.totalorder (!%p251_p3), %s1835_s18, 1 }
   0x9   : > { %726 = vmatprep.subr.bf16.mxu0 (!%p251_p3), %v1845_v1  ;;  %1722 = vmatprep.subr.bf16.mxu1 (!%p251_p3), %v1845_v1  ;;  %v1983_v42 = vld [vmem:[%s2142_s2] ss:$0 sm:$0xff] (!%p251_p3) }
   0xc   : > { %727 = vmatpush1.bf16.msra.mxu0 (!%p251_p3), %v1765_v2  ;;  %1731 = vmatpush1.bf16.msra.mxu1 (!%p251_p3), %v1765_v2 }
   0xd   : > { %728 = vmatprep.subr.bf16.mxu0 (!%p251_p3), %v1845_v1  ;;  %1723 = vmatprep.subr.bf16.mxu1 (!%p251_p3), %v1845_v1 }
   0xe   : > { %s2151_s24 = smov (!%p313_p4, %s1494_s24), 63  ;;  %s2153_s18 = smov (!%p344_p5, %s1835_s18), 1 }
   0xf   : > { %s1593_s29 = sshll.u32 %s2151_s24, 3  ;;  %s1498_s27 = sshll.u32 %s2151_s24, 2 }
  0x10   : > { %s1912_s7 = scalar_lea.vmem %s2140_s0, %s1593_s29  ;;  %729 = vmatpush1.bf16.msra.mxu0 %v1766_v3  ;;  %1732 = vmatpush1.bf16.msra.mxu1 %v1766_v3  ;;  %s1997_s30 = scalar_lea.vmem %s2143_s3, %s1498_s27 }
  0x11   : > { %v1775_v5 = vld [vmem:[%s1912_s7 + $0x4] ss:$8 sps:$4 sm:$0xff]   ;;  %730 = vmatprep.subr.bf16.mxu0 %v1845_v1  ;;  %1724 = vmatprep.subr.bf16.mxu1 %v1845_v1  ;;  %v1773_v12 = vld [vmem:[%s1912_s7] ss:$8 sps:$4 sm:$0xff]   ;;  %v1776_v14 = vld [vmem:[%s1912_s7 + $0x14] ss:$8 sps:$4 sm:$0xff]  }
  0x12   : > { %1542 = vmatprep.mubr.msk.bf16.mxu0 %vm675_vm0, %v1775_v5  ;;  %v1787_v7 = vld [vmem:[%s1912_s7 + $0x84] ss:$8 sps:$4 sm:$0xff]   ;;  %v1785_v13 = vld [vmem:[%s1912_s7 + $0x80] ss:$8 sps:$4 sm:$0xff]   ;;  %v1791_v15 = vld [vmem:[%s1912_s7 + $0x94] ss:$8 sps:$4 sm:$0xff]  }
  0x13   : > { %1550 = vmatprep.mubr.msk.bf16.mxu1 %vm675_vm0, %v1787_v7  ;;  %v1778_v16 = vld [vmem:[%s1912_s7 + $0x10] ss:$8 sps:$4 sm:$0xff]   ;;  %v1779_v18 = vld [vmem:[%s1912_s7 + $0x24] ss:$8 sps:$4 sm:$0xff]   ;;  %v1781_v20 = vld [vmem:[%s1912_s7 + $0x20] ss:$8 sps:$4 sm:$0xff]  }
  0x14   : > { %731 = vmatpush1.bf16.msra.mxu0 %v1767_v4  ;;  %1733 = vmatpush1.bf16.msra.mxu1 %v1767_v4  ;;  %v1793_v17 = vld [vmem:[%s1912_s7 + $0x90] ss:$8 sps:$4 sm:$0xff]   ;;  %v1797_v19 = vld [vmem:[%s1912_s7 + $0xa4] ss:$8 sps:$4 sm:$0xff]   ;;  %v1799_v21 = vld [vmem:[%s1912_s7 + $0xa0] ss:$8 sps:$4 sm:$0xff]  }
  0x15   : > { %732 = vmatprep.subr.bf16.mxu0 %v1845_v1  ;;  %1725 = vmatprep.subr.bf16.mxu1 %v1845_v1  ;;  %v1782_v22 = vld [vmem:[%s1912_s7 + $0x34] ss:$8 sps:$4 sm:$0xff]   ;;  %v1784_v24 = vld [vmem:[%s1912_s7 + $0x30] ss:$8 sps:$4 sm:$0xff]   ;;  %v1788_v26 = vld [vmem:[%s1912_s7 + $0x44] ss:$8 sps:$4 sm:$0xff]  }
  0x16   : > { %v1803_v23 = vld [vmem:[%s1912_s7 + $0xb4] ss:$8 sps:$4 sm:$0xff]   ;;  %v1805_v25 = vld [vmem:[%s1912_s7 + $0xb0] ss:$8 sps:$4 sm:$0xff]   ;;  %v1809_v27 = vld [vmem:[%s1912_s7 + $0xc4] ss:$8 sps:$4 sm:$0xff]  }
  0x17   : > { %v1790_v28 = vld [vmem:[%s1912_s7 + $0x40] ss:$8 sps:$4 sm:$0xff]   ;;  %v1794_v30 = vld [vmem:[%s1912_s7 + $0x54] ss:$8 sps:$4 sm:$0xff]   ;;  %v1796_v32 = vld [vmem:[%s1912_s7 + $0x50] ss:$8 sps:$4 sm:$0xff]  }
  0x18   : > { %733 = vmatpush1.bf16.msra.mxu0 %v1768_v6  ;;  %1734 = vmatpush1.bf16.msra.mxu1 %v1768_v6  ;;  %v1811_v29 = vld [vmem:[%s1912_s7 + $0xc0] ss:$8 sps:$4 sm:$0xff]   ;;  %v1812_v31 = vld [vmem:[%s1912_s7 + $0xd4] ss:$8 sps:$4 sm:$0xff]   ;;  %v1814_v33 = vld [vmem:[%s1912_s7 + $0xd0] ss:$8 sps:$4 sm:$0xff]  }
  0x19   : > { %734 = vmatprep.subr.bf16.mxu0 %v1845_v1  ;;  %1726 = vmatprep.subr.bf16.mxu1 %v1845_v1  ;;  %v1800_v34 = vld [vmem:[%s1912_s7 + $0x64] ss:$8 sps:$4 sm:$0xff]   ;;  %v1802_v36 = vld [vmem:[%s1912_s7 + $0x60] ss:$8 sps:$4 sm:$0xff]   ;;  %v1806_v38 = vld [vmem:[%s1912_s7 + $0x74] ss:$8 sps:$4 sm:$0xff]  }
  0x1a   : > { %v1815_v35 = vld [vmem:[%s1912_s7 + $0xe4] ss:$8 sps:$4 sm:$0xff]   ;;  %v1817_v37 = vld [vmem:[%s1912_s7 + $0xe0] ss:$8 sps:$4 sm:$0xff]   ;;  %v1818_v39 = vld [vmem:[%s1912_s7 + $0xf4] ss:$8 sps:$4 sm:$0xff]  }
  0x1b   : > { %v1808_v40 = vld [vmem:[%s1912_s7 + $0x70] ss:$8 sps:$4 sm:$0xff]   ;;  %s1499_s24 = sshll.u32 %s2153_s18, 3 }
  0x1c   : > { %735 = vmatpush1.bf16.msra.mxu0 %v1769_v8  ;;  %1735 = vmatpush1.bf16.msra.mxu1 %v1769_v8  ;;  %v1820_v41 = vld [vmem:[%s1912_s7 + $0xf0] ss:$8 sps:$4 sm:$0xff]   ;;  %s350_s8 = scalar_lea.vmem %s2144_s4, %s1499_s24  ;;  %s357_s11 = scalar_lea.vmem %s2145_s5, %s1499_s24 }
  0x1d   : > { %736 = vmatprep.subr.bf16.mxu0 %v1845_v1  ;;  %1727 = vmatprep.subr.bf16.mxu1 %v1845_v1 }
  0x20   : > { %737 = vmatpush1.bf16.msra.mxu0 %v1770_v9  ;;  %1736 = vmatpush1.bf16.msra.mxu1 %v1770_v9 }
  0x21   : > { %738 = vmatprep.subr.bf16.mxu0 %v1845_v1  ;;  %1728 = vmatprep.subr.bf16.mxu1 %v1845_v1 }
  0x24   : > { %739 = vmatpush1.bf16.msra.mxu0 %v1771_v10  ;;  %1737 = vmatpush1.bf16.msra.mxu1 %v1771_v10 }
  0x25   : > { %740 = vmatprep.subr.bf16.mxu0 %v1845_v1  ;;  %1729 = vmatprep.subr.bf16.mxu1 %v1845_v1 }
  0x28   : > { %741 = vmatpush1.bf16.msra.mxu0 %v1772_v11  ;;  %1738 = vmatpush1.bf16.msra.mxu1 %v1772_v11 }
  0x2b   : > { %757 = vmatmul.mubr.bf16.vlgmr.msra.gmra.mrb[0].mxu0 %v1773_v12  ;;  %821 = vmatmul.mubr.bf16.vlgmr.msra.gmra.mrb[0].mxu1 %v1785_v13 }
  0x2c   : > { %1543 = vmatprep.mubr.msk.bf16.mxu0 %vm675_vm0, %v1776_v14  ;;  %1551 = vmatprep.mubr.msk.bf16.mxu1 %vm675_vm0, %v1791_v15 }
  0x33   : > { %765 = vmatmul.mubr.bf16.gmra.mrb[4].mxu0 %v1778_v16  ;;  %829 = vmatmul.mubr.bf16.gmra.mrb[4].mxu1 %v1793_v17 }
  0x34   : > { %1544 = vmatprep.mubr.msk.bf16.mxu0 %vm675_vm0, %v1779_v18  ;;  %1552 = vmatprep.mubr.msk.bf16.mxu1 %vm675_vm0, %v1797_v19 }
  0x3b   : > { %773 = vmatmul.mubr.bf16.gmra.mrb[8].mxu0 %v1781_v20  ;;  %837 = vmatmul.mubr.bf16.gmra.mrb[8].mxu1 %v1799_v21 }
  0x3c   : > { %1545 = vmatprep.mubr.msk.bf16.mxu0 %vm675_vm0, %v1782_v22  ;;  %1553 = vmatprep.mubr.msk.bf16.mxu1 %vm675_vm0, %v1803_v23 }
  0x43   : > { %781 = vmatmul.mubr.bf16.gmra.mrb[12].mxu0 %v1784_v24  ;;  %845 = vmatmul.mubr.bf16.gmra.mrb[12].mxu1 %v1805_v25 }
  0x44   : > { %1546 = vmatprep.mubr.msk.bf16.mxu0 %vm675_vm0, %v1788_v26  ;;  %1554 = vmatprep.mubr.msk.bf16.mxu1 %vm675_vm0, %v1809_v27 }
  0x4b   : > { %789 = vmatmul.mubr.bf16.gmra.mrb[16].mxu0 %v1790_v28  ;;  %853 = vmatmul.mubr.bf16.gmra.mrb[16].mxu1 %v1811_v29 }
  0x4c   : > { %1547 = vmatprep.mubr.msk.bf16.mxu0 %vm675_vm0, %v1794_v30  ;;  %1555 = vmatprep.mubr.msk.bf16.mxu1 %vm675_vm0, %v1812_v31 }
  0x53   : > { %797 = vmatmul.mubr.bf16.gmra.mrb[20].mxu0 %v1796_v32  ;;  %861 = vmatmul.mubr.bf16.gmra.mrb[20].mxu1 %v1814_v33 }
  0x54   : > { %1548 = vmatprep.mubr.msk.bf16.mxu0 %vm675_vm0, %v1800_v34  ;;  %1556 = vmatprep.mubr.msk.bf16.mxu1 %vm675_vm0, %v1815_v35 }
  0x5b   : > { %805 = vmatmul.mubr.bf16.gmra.mrb[24].mxu0 %v1802_v36  ;;  %869 = vmatmul.mubr.bf16.gmra.mrb[24].mxu1 %v1817_v37 }
  0x5c   : > { %1549 = vmatprep.mubr.msk.bf16.mxu0 %vm675_vm0, %v1806_v38  ;;  %1557 = vmatprep.mubr.msk.bf16.mxu1 %vm675_vm0, %v1818_v39 }
  0x63   : > { %813 = vmatmul.mubr.bf16.gmra.mrb[28].mxu0 %v1808_v40  ;;  %877 = vmatmul.mubr.bf16.gmra.mrb[28].mxu1 %v1820_v41 }
  0xfe   : > { %v758_v43 = vpop.f32.mrb[0].mxu0  ;;  %v822_v44 = vpop.f32.mrb[0].mxu1 }
  0xff   : > { %v991_v45 = vadd.f32 %v1983_v42, %v758_v43  ;;  %v760_v46 = vpop.f32.mrb[1].mxu0  ;;  %v1988_v47 = vadd.f32 %v1983_v42, %v822_v44  ;;  %v824_v48 = vpop.f32.mrb[1].mxu1 }
 0x100   : > { %v761_v49 = vpop.f32.mrb[2].mxu0  ;;  %v825_v50 = vpop.f32.mrb[2].mxu1 }
 0x101   : > { %v992_v51 = vadd.f32 %v1983_v42, %v761_v49  ;;  %v763_v52 = vpop.f32.mrb[3].mxu0  ;;  %v1992_v53 = vadd.f32 %v1983_v42, %v825_v50  ;;  %v827_v54 = vpop.f32.mrb[3].mxu1  ;;  %v1220_v55 = vmul.f32 %v991_v45, %v991_v45 }
 0x103   : > { %v1629_v56 = vpack.c.bf16 %v992_v51, %v991_v45  ;;  %v1183_v57 = vadd.f32 %v992_v51, %v991_v45  ;;  %v1221_v58 = vmul.f32 %v992_v51, %v992_v51  ;;  %v1669_v59 = vpack.c.bf16 %v1992_v53, %v1988_v47 }
 0x105   : > { %1630 = vst [vmem:[%s1997_s30] sm:$0xff] %v1629_v56   ;;  %v1252_v60 = vadd.f32 %v1221_v58, %v1220_v55  ;;  %1713 = vst [vmem:[%s1997_s30 + $0x40] sm:$0xff] %v1669_v59  }
 0x106   : > { %v766_v61 = vpop.f32.mrb[4].mxu0  ;;  %v830_v62 = vpop.f32.mrb[4].mxu1 }
 0x107   : > { %v993_v63 = vadd.f32 %v1983_v42, %v766_v61  ;;  %v768_v0 = vpop.f32.mrb[5].mxu0  ;;  %v832_v1 = vpop.f32.mrb[5].mxu1  ;;  %v2005_v3 = vadd.f32 %v1983_v42, %v830_v62 }
 0x108   : > { %v769_v2 = vpop.f32.mrb[6].mxu0  ;;  %v833_v4 = vpop.f32.mrb[6].mxu1 }
 0x109   : > { %v1184_v5 = vadd.f32 %v1183_v57, %v993_v63  ;;  %v1222_v6 = vmul.f32 %v993_v63, %v993_v63  ;;  %v994_v7 = vadd.f32 %v1983_v42, %v769_v2  ;;  %v771_v8 = vpop.f32.mrb[7].mxu0  ;;  %v835_v9 = vpop.f32.mrb[7].mxu1  ;;  %v2009_v10 = vadd.f32 %v1983_v42, %v833_v4 }
 0x10b   : > { %v1253_v11 = vadd.f32 %v1252_v60, %v1222_v6  ;;  %v1634_v12 = vpack.c.bf16 %v994_v7, %v993_v63  ;;  %v1185_v13 = vadd.f32 %v1184_v5, %v994_v7  ;;  %v1223_v14 = vmul.f32 %v994_v7, %v994_v7 }
 0x10c   : > { %v1674_v15 = vpack.c.bf16 %v2009_v10, %v2005_v3 }
 0x10d   : > { %1706 = vst [vmem:[%s1997_s30 + $0x8] sm:$0xff] %v1634_v12   ;;  %v1254_v16 = vadd.f32 %v1253_v11, %v1223_v14 }
 0x10e   : > { %v774_v17 = vpop.f32.mrb[8].mxu0  ;;  %1714 = vst [vmem:[%s1997_s30 + $0x48] sm:$0xff] %v1674_v15   ;;  %v838_v18 = vpop.f32.mrb[8].mxu1 }
 0x10f   : > { %v995_v19 = vadd.f32 %v1983_v42, %v774_v17  ;;  %v776_v20 = vpop.f32.mrb[9].mxu0  ;;  %v840_v21 = vpop.f32.mrb[9].mxu1  ;;  %v2017_v23 = vadd.f32 %v1983_v42, %v838_v18 }
 0x110   : > { %v777_v22 = vpop.f32.mrb[10].mxu0  ;;  %v841_v24 = vpop.f32.mrb[10].mxu1 }
 0x111   : > { %v1186_v25 = vadd.f32 %v1185_v13, %v995_v19  ;;  %v1224_v26 = vmul.f32 %v995_v19, %v995_v19  ;;  %v996_v27 = vadd.f32 %v1983_v42, %v777_v22  ;;  %v779_v28 = vpop.f32.mrb[11].mxu0  ;;  %v843_v29 = vpop.f32.mrb[11].mxu1  ;;  %v2021_v30 = vadd.f32 %v1983_v42, %v841_v24 }
 0x113   : > { %v1255_v31 = vadd.f32 %v1254_v16, %v1224_v26  ;;  %v1639_v32 = vpack.c.bf16 %v996_v27, %v995_v19  ;;  %v1187_v33 = vadd.f32 %v1186_v25, %v996_v27  ;;  %v1225_v34 = vmul.f32 %v996_v27, %v996_v27 }
 0x114   : > { %v1679_v35 = vpack.c.bf16 %v2021_v30, %v2017_v23 }
 0x115   : > { %1707 = vst [vmem:[%s1997_s30 + $0x10] sm:$0xff] %v1639_v32   ;;  %v1256_v36 = vadd.f32 %v1255_v31, %v1225_v34 }
 0x116   : > { %v782_v37 = vpop.f32.mrb[12].mxu0  ;;  %1715 = vst [vmem:[%s1997_s30 + $0x50] sm:$0xff] %v1679_v35   ;;  %v846_v38 = vpop.f32.mrb[12].mxu1 }
 0x117   : > { %v997_v39 = vadd.f32 %v1983_v42, %v782_v37  ;;  %v784_v40 = vpop.f32.mrb[13].mxu0  ;;  %v848_v41 = vpop.f32.mrb[13].mxu1  ;;  %v2029_v44 = vadd.f32 %v1983_v42, %v846_v38 }
 0x118   : > { %v785_v43 = vpop.f32.mrb[14].mxu0  ;;  %v849_v45 = vpop.f32.mrb[14].mxu1 }
 0x119   : > { %v1188_v46 = vadd.f32 %v1187_v33, %v997_v39  ;;  %v1226_v48 = vmul.f32 %v997_v39, %v997_v39  ;;  %v998_v49 = vadd.f32 %v1983_v42, %v785_v43  ;;  %v787_v50 = vpop.f32.mrb[15].mxu0  ;;  %v851_v51 = vpop.f32.mrb[15].mxu1  ;;  %v2033_v52 = vadd.f32 %v1983_v42, %v849_v45 }
 0x11b   : > { %v1257_v54 = vadd.f32 %v1256_v36, %v1226_v48  ;;  %v1644_v55 = vpack.c.bf16 %v998_v49, %v997_v39  ;;  %v1189_v56 = vadd.f32 %v1188_v46, %v998_v49  ;;  %v1227_v57 = vmul.f32 %v998_v49, %v998_v49 }
 0x11c   : > { %v1684_v58 = vpack.c.bf16 %v2033_v52, %v2029_v44 }
 0x11d   : > { %1708 = vst [vmem:[%s1997_s30 + $0x18] sm:$0xff] %v1644_v55   ;;  %v1258_v59 = vadd.f32 %v1257_v54, %v1227_v57 }
 0x11e   : > { %v790_v60 = vpop.f32.mrb[16].mxu0  ;;  %1716 = vst [vmem:[%s1997_s30 + $0x58] sm:$0xff] %v1684_v58   ;;  %v854_v61 = vpop.f32.mrb[16].mxu1 }
 0x11f   : > { %v999_v62 = vadd.f32 %v1983_v42, %v790_v60  ;;  %v792_v63 = vpop.f32.mrb[17].mxu0  ;;  %v856_v0 = vpop.f32.mrb[17].mxu1  ;;  %v2041_v2 = vadd.f32 %v1983_v42, %v854_v61 }
 0x120   : > { %v793_v1 = vpop.f32.mrb[18].mxu0  ;;  %v857_v4 = vpop.f32.mrb[18].mxu1 }
 0x121   : > { %v1190_v5 = vadd.f32 %v1189_v56, %v999_v62  ;;  %v1228_v6 = vmul.f32 %v999_v62, %v999_v62  ;;  %v1000_v7 = vadd.f32 %v1983_v42, %v793_v1  ;;  %v795_v8 = vpop.f32.mrb[19].mxu0  ;;  %v859_v9 = vpop.f32.mrb[19].mxu1  ;;  %v2045_v11 = vadd.f32 %v1983_v42, %v857_v4 }
 0x123   : > { %v1259_v12 = vadd.f32 %v1258_v59, %v1228_v6  ;;  %v1649_v13 = vpack.c.bf16 %v1000_v7, %v999_v62  ;;  %v1191_v14 = vadd.f32 %v1190_v5, %v1000_v7  ;;  %v1229_v15 = vmul.f32 %v1000_v7, %v1000_v7 }
 0x124   : > { %v1689_v16 = vpack.c.bf16 %v2045_v11, %v2041_v2 }
 0x125   : > { %1709 = vst [vmem:[%s1997_s30 + $0x20] sm:$0xff] %v1649_v13   ;;  %v1260_v17 = vadd.f32 %v1259_v12, %v1229_v15 }
 0x126   : > { %v798_v18 = vpop.f32.mrb[20].mxu0  ;;  %1717 = vst [vmem:[%s1997_s30 + $0x60] sm:$0xff] %v1689_v16   ;;  %v862_v19 = vpop.f32.mrb[20].mxu1 }
 0x127   : > { %v1001_v20 = vadd.f32 %v1983_v42, %v798_v18  ;;  %v800_v21 = vpop.f32.mrb[21].mxu0  ;;  %v864_v22 = vpop.f32.mrb[21].mxu1  ;;  %v2053_v25 = vadd.f32 %v1983_v42, %v862_v19 }
 0x128   : > { %v801_v24 = vpop.f32.mrb[22].mxu0  ;;  %v865_v26 = vpop.f32.mrb[22].mxu1 }
 0x129   : > { %v1192_v27 = vadd.f32 %v1191_v14, %v1001_v20  ;;  %v1230_v28 = vmul.f32 %v1001_v20, %v1001_v20  ;;  %v1002_v29 = vadd.f32 %v1983_v42, %v801_v24  ;;  %v803_v31 = vpop.f32.mrb[23].mxu0  ;;  %v867_v32 = vpop.f32.mrb[23].mxu1  ;;  %v2057_v33 = vadd.f32 %v1983_v42, %v865_v26 }
 0x12a   : > { %v1236_v26 = vmul.f32 %v1988_v47, %v1988_v47 }
 0x12b   : > { %v1261_v34 = vadd.f32 %v1260_v17, %v1230_v28  ;;  %v1654_v35 = vpack.c.bf16 %v1002_v29, %v1001_v20  ;;  %v1193_v36 = vadd.f32 %v1192_v27, %v1002_v29  ;;  %v1231_v37 = vmul.f32 %v1002_v29, %v1002_v29 }
 0x12c   : > { %v1694_v38 = vpack.c.bf16 %v2057_v33, %v2053_v25  ;;  %v1237_v29 = vmul.f32 %v1992_v53, %v1992_v53 }
 0x12d   : > { %1710 = vst [vmem:[%s1997_s30 + $0x28] sm:$0xff] %v1654_v35   ;;  %v1262_v39 = vadd.f32 %v1261_v34, %v1231_v37 }
 0x12e   : > { %v806_v40 = vpop.f32.mrb[24].mxu0  ;;  %1718 = vst [vmem:[%s1997_s30 + $0x68] sm:$0xff] %v1694_v38   ;;  %v870_v41 = vpop.f32.mrb[24].mxu1  ;;  %v1240_v38 = vmul.f32 %v2017_v23, %v2017_v23 }
 0x12f   : > { %v1003_v43 = vadd.f32 %v1983_v42, %v806_v40  ;;  %v808_v45 = vpop.f32.mrb[25].mxu0  ;;  %v872_v46 = vpop.f32.mrb[25].mxu1  ;;  %v2065_v49 = vadd.f32 %v1983_v42, %v870_v41 }
 0x130   : > { %v809_v48 = vpop.f32.mrb[26].mxu0  ;;  %v873_v50 = vpop.f32.mrb[26].mxu1 }
 0x131   : > { %v1194_v51 = vadd.f32 %v1193_v36, %v1003_v43  ;;  %v1232_v54 = vmul.f32 %v1003_v43, %v1003_v43  ;;  %v1004_v55 = vadd.f32 %v1983_v42, %v809_v48  ;;  %v811_v56 = vpop.f32.mrb[27].mxu0  ;;  %v875_v57 = vpop.f32.mrb[27].mxu1  ;;  %v2069_v58 = vadd.f32 %v1983_v42, %v873_v50 }
 0x132   : > { %v1239_v36 = vmul.f32 %v2009_v10, %v2009_v10  ;;  %v1245_v56 = vmul.f32 %v2045_v11, %v2045_v11 }
 0x133   : > { %v1263_v59 = vadd.f32 %v1262_v39, %v1232_v54  ;;  %v1659_v60 = vpack.c.bf16 %v1004_v55, %v1003_v43  ;;  %v1195_v61 = vadd.f32 %v1194_v51, %v1004_v55  ;;  %v1233_v62 = vmul.f32 %v1004_v55, %v1004_v55 }
 0x134   : > { %v1699_v63 = vpack.c.bf16 %v2069_v58, %v2065_v49  ;;  %v1244_v51 = vmul.f32 %v2041_v2, %v2041_v2 }
 0x135   : > { %1711 = vst [vmem:[%s1997_s30 + $0x30] sm:$0xff] %v1659_v60   ;;  %v1264_v0 = vadd.f32 %v1263_v59, %v1233_v62 }
 0x136   : > { %v814_v1 = vpop.f32.mrb[28].mxu0  ;;  %1719 = vst [vmem:[%s1997_s30 + $0x70] sm:$0xff] %v1699_v63   ;;  %v878_v4 = vpop.f32.mrb[28].mxu1 }
 0x137   : > { %v1005_v5 = vadd.f32 %v1983_v42, %v814_v1  ;;  %v816_v6 = vpop.f32.mrb[29].mxu0  ;;  %v880_v7 = vpop.f32.mrb[29].mxu1  ;;  %v1021_v9 = vadd.f32 %v1983_v42, %v878_v4  ;;  %v1249_v1 = vmul.f32 %v2069_v58, %v2069_v58 }
 0x138   : > { %v817_v8 = vpop.f32.mrb[30].mxu0  ;;  %v881_v12 = vpop.f32.mrb[30].mxu1 }
 0x139   : > { %v1196_v13 = vadd.f32 %v1195_v61, %v1005_v5  ;;  %v1234_v14 = vmul.f32 %v1005_v5, %v1005_v5  ;;  %v1006_v15 = vadd.f32 %v1983_v42, %v817_v8  ;;  %v819_v16 = vpop.f32.mrb[31].mxu0  ;;  %v883_v17 = vpop.f32.mrb[31].mxu1  ;;  %v1022_v18 = vadd.f32 %v1983_v42, %v881_v12 }
 0x13a   : > { %v1238_v42 = vmul.f32 %v2005_v3, %v2005_v3 }
 0x13b   : > { %v1265_v19 = vadd.f32 %v1264_v0, %v1234_v14  ;;  %v1664_v20 = vpack.c.bf16 %v1006_v15, %v1005_v5  ;;  %v1197_v21 = vadd.f32 %v1196_v13, %v1006_v15  ;;  %v1235_v22 = vmul.f32 %v1006_v15, %v1006_v15 }
 0x13c   : > { %v1704_v24 = vpack.c.bf16 %v1022_v18, %v1021_v9 }
 0x13d   : > { %1712 = vst [vmem:[%s1997_s30 + $0x38] sm:$0xff] %v1664_v20   ;;  %v1198_v27 = vadd.f32 %v1197_v21, %v1988_v47  ;;  %v1266_v28 = vadd.f32 %v1265_v19, %v1235_v22 }
 0x13e   : > { %1720 = vst [vmem:[%s1997_s30 + $0x78] sm:$0xff] %v1704_v24  }
 0x13f   : > { %v1199_v31 = vadd.f32 %v1198_v27, %v1992_v53  ;;  %v1267_v32 = vadd.f32 %v1266_v28, %v1236_v26  ;;  %v1241_v53 = vmul.f32 %v2021_v30, %v2021_v30 }
 0x141   : > { %v1200_v34 = vadd.f32 %v1199_v31, %v2005_v3  ;;  %v1268_v35 = vadd.f32 %v1267_v32, %v1237_v29  ;;  %v1242_v3 = vmul.f32 %v2029_v44, %v2029_v44 }
 0x143   : > { %v1201_v37 = vadd.f32 %v1200_v34, %v2009_v10  ;;  %v1269_v47 = vadd.f32 %v1268_v35, %v1238_v42  ;;  %v1243_v10 = vmul.f32 %v2033_v52, %v2033_v52 }
 0x145   : > { %v1270_v39 = vadd.f32 %v1269_v47, %v1239_v36  ;;  %v1202_v40 = vadd.f32 %v1201_v37, %v2017_v23 }
 0x147   : > { %v1203_v41 = vadd.f32 %v1202_v40, %v2021_v30  ;;  %v1271_v43 = vadd.f32 %v1270_v39, %v1240_v38 }
 0x149   : > { %v1204_v45 = vadd.f32 %v1203_v41, %v2029_v44  ;;  %v1272_v46 = vadd.f32 %v1271_v43, %v1241_v53 }
 0x14b   : > { %v1205_v48 = vadd.f32 %v1204_v45, %v2033_v52  ;;  %v1273_v50 = vadd.f32 %v1272_v46, %v1242_v3  ;;  %v1246_v52 = vmul.f32 %v2053_v25, %v2053_v25 }
 0x14d   : > { %v1206_v23 = vadd.f32 %v1205_v48, %v2041_v2  ;;  %v1274_v54 = vadd.f32 %v1273_v50, %v1243_v10  ;;  %v1247_v2 = vmul.f32 %v2057_v33, %v2057_v33 }
 0x14f   : > { %v1275_v30 = vadd.f32 %v1274_v54, %v1244_v51  ;;  %v1207_v55 = vadd.f32 %v1206_v23, %v2045_v11  ;;  %v1248_v11 = vmul.f32 %v2065_v49, %v2065_v49 }
 0x151   : > { %v1276_v44 = vadd.f32 %v1275_v30, %v1245_v56  ;;  %v1208_v57 = vadd.f32 %v1207_v55, %v2053_v25  ;;  %v1250_v25 = vmul.f32 %v1021_v9, %v1021_v9 }
 0x153   : > { %v1277_v59 = vadd.f32 %v1276_v44, %v1246_v52  ;;  %v1209_v60 = vadd.f32 %v1208_v57, %v2057_v33  ;;  %v1251_v33 = vmul.f32 %v1022_v18, %v1022_v18 }
 0x155   : > { %v1278_v61 = vadd.f32 %v1277_v59, %v1247_v2  ;;  %v1210_v62 = vadd.f32 %v1209_v60, %v2065_v49 }
 0x157   : > { %v1279_v63 = vadd.f32 %v1278_v61, %v1248_v11  ;;  %v1211_v0 = vadd.f32 %v1210_v62, %v2069_v58 }
 0x159   : > { %v1280_v4 = vadd.f32 %v1279_v63, %v1249_v1  ;;  %v1212_v5 = vadd.f32 %v1211_v0, %v1021_v9 }
 0x15b   : > { %v1281_v6 = vadd.f32 %v1280_v4, %v1250_v25  ;;  %v1213_v7 = vadd.f32 %v1212_v5, %v1022_v18 }
 0x15d   : > { %v1214_v8 = vrot.slane %v1213_v7, 4  ;;  %v1282_v12 = vadd.f32 %v1281_v6, %v1251_v33 }
 0x15f   : > { %v1215_v13 = vadd.f32 %v1214_v8, %v1213_v7  ;;  %v1283_v14 = vrot.slane %v1282_v12, 4 }
 0x161   : > { %v1216_v15 = vrot.slane %v1215_v13, 2  ;;  %v1284_v49 = vadd.f32 %v1283_v14, %v1282_v12 }
 0x163   : > { %v1217_v16 = vadd.f32 %v1216_v15, %v1215_v13  ;;  %v1285_v17 = vrot.slane %v1284_v49, 2 }
 0x165   : > { %v1218_v19 = vrot.slane %v1217_v16, 1  ;;  %v1286_v20 = vadd.f32 %v1285_v17, %v1284_v49 }
 0x167   : > { %v1219_v58 = vadd.f32 %v1218_v19, %v1217_v16  ;;  %v1287_v9 = vrot.slane %v1286_v20, 1 }
 0x169   : > { %v1288_v18 = vadd.f32 %v1287_v9, %v1286_v20  ;;  %1289 = vst [vmem:[%s350_s8] sm:$0xff] %v1219_v58 }
 0x16b   : > { %1290 = vst [vmem:[%s357_s11] sm:$0xff] %v1288_v18 }
 0x16c PF: > { %s16_s20 = sadd.s32 1, %s1843_s20   ;;  %s2146_s18 = smov %s1839_s19 }
 0x16d   : > { %p13_p6 = scmp.ge.s32.totalorder %s16_s20, 4   ;;  %s2147_s19 = smov %s2149_s21 }
 0x16f   :  { %15 = sbr.rel (!%p13_p6) target bundleno = 2 (0x2), region = 100 }

// kernel: _lambda_.28
= control target key start
LH: loop header
LB: loop body
LE: loop exit
PB: predicated region body
PF: predicated region fallthrough
CT: control target
= control target key end

     0   :  { %s2097_s0 = inlined_call_operand.vmem [shape: bf16[512,128], index: 0, kind: input, shape index: {}]   ;;  %s2098_s1 = inlined_call_operand.vmem [shape: f32[1,128], index: 1, kind: input, shape index: {}]   ;;  %s2099_s2 = inlined_call_operand.vmem [shape: f32[1,128], index: 2, kind: input, shape index: {}]   ;;  %s2100_s3 = inlined_call_operand.vmem [shape: bf16[512,128], index: 3, kind: input, shape index: {}]   ;;  %s2101_s4 = inlined_call_operand.vmem [shape: bf16[512,128], index: 4, kind: output, shape index: {}]  }
   0x1   :  { %v1126_v0 = vld [vmem:[%s2097_s0] sm:$0xff]   ;;  %v1541_v5 = vld [vmem:[%s2097_s0 + $0x8] sm:$0xff]   ;;  %v1542_v12 = vld [vmem:[%s2097_s0 + $0x10] sm:$0xff]  }
   0x2   :  { %v1667_v1 = vld [vmem:[%s2098_s1] ss:$0 sm:$0xff]  ;;  %v1127_v2 = vunpack.c.l.bf16 %v1126_v0  ;;  %v1128_v3 = vunpack.c.h.bf16 %v1126_v0  ;;  %v1572_v6 = vld [vmem:[%s2100_s3 + $0x8] sm:$0xff]   ;;  %v1131_v10 = vunpack.c.l.bf16 %v1541_v5  ;;  %v1132_v11 = vunpack.c.h.bf16 %v1541_v5  ;;  %v1573_v13 = vld [vmem:[%s2100_s3 + $0x10] sm:$0xff]  }
   0x3   :  { %v1254_v4 = vld [vmem:[%s2100_s3] sm:$0xff]   ;;  %v1259_v16 = vunpack.c.l.bf16 %v1572_v6  ;;  %v1260_v17 = vunpack.c.h.bf16 %v1572_v6  ;;  %v1135_v20 = vunpack.c.l.bf16 %v1542_v12  ;;  %v1136_v21 = vunpack.c.h.bf16 %v1542_v12  ;;  %v1543_v22 = vld [vmem:[%s2097_s0 + $0x18] sm:$0xff]   ;;  %v1545_v0 = vld [vmem:[%s2097_s0 + $0x28] sm:$0xff]  }
   0x4   :  { %v1681_v7 = vld [vmem:[%s2099_s2] ss:$0 sm:$0xff]  ;;  %v1255_v8 = vunpack.c.l.bf16 %v1254_v4  ;;  %v1256_v9 = vunpack.c.h.bf16 %v1254_v4  ;;  %v152_v14 = vmul.f32 %v1127_v2, %v1667_v1  ;;  %v153_v15 = vmul.f32 %v1128_v3, %v1667_v1  ;;  %v1574_v47 = vld [vmem:[%s2100_s3 + $0x18] sm:$0xff]   ;;  %v1576_v6 = vld [vmem:[%s2100_s3 + $0x28] sm:$0xff]  }
   0x5   :  { %v154_v18 = vmul.f32 %v1131_v10, %v1667_v1  ;;  %v155_v19 = vmul.f32 %v1132_v11, %v1667_v1  ;;  %v1263_v25 = vunpack.c.l.bf16 %v1573_v13  ;;  %v1264_v26 = vunpack.c.h.bf16 %v1573_v13  ;;  %v1544_v52 = vld [vmem:[%s2097_s0 + $0x20] sm:$0xff]  }
   0x6   :  { %v223_v23 = vadd.f32 %v1681_v7, %v152_v14  ;;  %v224_v24 = vadd.f32 %v1681_v7, %v153_v15  ;;  %v156_v29 = vmul.f32 %v1135_v20, %v1667_v1  ;;  %v157_v30 = vmul.f32 %v1136_v21, %v1667_v1  ;;  %v1575_v55 = vld [vmem:[%s2100_s3 + $0x20] sm:$0xff]  }
   0x7   :  { %v225_v27 = vadd.f32 %v1681_v7, %v154_v18  ;;  %v226_v28 = vadd.f32 %v1681_v7, %v155_v19  ;;  %v1139_v33 = vunpack.c.l.bf16 %v1543_v22  ;;  %v1140_v34 = vunpack.c.h.bf16 %v1543_v22  ;;  %v1546_v19 = vld [vmem:[%s2097_s0 + $0x30] sm:$0xff]  }
   0x8   :  { %v415_v31 = vadd.f32 %v1255_v8, %v223_v23  ;;  %v416_v32 = vadd.f32 %v1256_v9, %v224_v24  ;;  %v227_v37 = vadd.f32 %v1681_v7, %v156_v29  ;;  %v228_v38 = vadd.f32 %v1681_v7, %v157_v30 }
   0x9   :  { %v417_v35 = vadd.f32 %v1259_v16, %v225_v27  ;;  %v418_v36 = vadd.f32 %v1260_v17, %v226_v28  ;;  %v158_v51 = vmul.f32 %v1139_v33, %v1667_v1  ;;  %v159_v57 = vmul.f32 %v1140_v34, %v1667_v1 }
   0xa   :  { %vm479_vm0 = vcmp.gt.f32.partialorder %v415_v31, 0.0  ;;  %vm480_vm1 = vcmp.gt.f32.partialorder %v416_v32, 0.0  ;;  %v543_v39 = vmul.f32 0.2, %v415_v31  ;;  %v544_v40 = vmul.f32 0.2, %v416_v32 }
   0xb   :  { %vm481_vm2 = vcmp.gt.f32.partialorder %v417_v35, 0.0  ;;  %vm482_vm3 = vcmp.gt.f32.partialorder %v418_v36, 0.0  ;;  %v545_v41 = vmul.f32 0.2, %v417_v35  ;;  %v546_v42 = vmul.f32 0.2, %v418_v36 }
   0xc   :  { %v607_v43 = vsel %vm479_vm0, %v415_v31, %v543_v39  ;;  %v608_v44 = vsel %vm480_vm1, %v416_v32, %v544_v40  ;;  %v419_v45 = vadd.f32 %v1263_v25, %v227_v37  ;;  %v420_v46 = vadd.f32 %v1264_v26, %v228_v38  ;;  %v1577_v31 = vld [vmem:[%s2100_s3 + $0x30] sm:$0xff]   ;;  %v1547_v38 = vld [vmem:[%s2097_s0 + $0x38] sm:$0xff]  }
   0xd   :  { %v1384_v48 = vpack.c.bf16 %v608_v44, %v607_v43  ;;  %v609_v49 = vsel %vm481_vm2, %v417_v35, %v545_v41  ;;  %v610_v50 = vsel %vm482_vm3, %v418_v36, %v546_v42  ;;  %v229_v58 = vadd.f32 %v1681_v7, %v158_v51  ;;  %v1548_v51 = vld [vmem:[%s2097_s0 + $0x40] sm:$0xff]  }
   0xe   :  { %v1389_v53 = vpack.c.bf16 %v610_v50, %v609_v49  ;;  %vm483_vm4 = vcmp.gt.f32.partialorder %v419_v45, 0.0  ;;  %vm484_vm5 = vcmp.gt.f32.partialorder %v420_v46, 0.0  ;;  %v547_v54 = vmul.f32 0.2, %v419_v45 }
   0xf   :  { %1385 = vst [vmem:[%s2101_s4] sm:$0xff] %v1384_v48   ;;  %v548_v56 = vmul.f32 0.2, %v420_v46  ;;  %v1267_v59 = vunpack.c.l.bf16 %v1574_v47  ;;  %v1268_v61 = vunpack.c.h.bf16 %v1574_v47  ;;  %v1143_v62 = vunpack.c.l.bf16 %v1544_v52 }
  0x10   :  { %1603 = vst [vmem:[%s2101_s4 + $0x8] sm:$0xff] %v1389_v53   ;;  %v611_v60 = vsel %vm483_vm4, %v419_v45, %v547_v54  ;;  %v1144_v63 = vunpack.c.h.bf16 %v1544_v52  ;;  %v230_v3 = vadd.f32 %v1681_v7, %v159_v57  ;;  %v1271_v5 = vunpack.c.l.bf16 %v1575_v55 }
  0x11   :  { %v612_v2 = vsel %vm484_vm5, %v420_v46, %v548_v56  ;;  %v421_v4 = vadd.f32 %v1267_v59, %v229_v58  ;;  %v160_v9 = vmul.f32 %v1143_v62, %v1667_v1  ;;  %v1272_v11 = vunpack.c.h.bf16 %v1575_v55  ;;  %v1578_v46 = vld [vmem:[%s2100_s3 + $0x38] sm:$0xff]  }
  0x12   :  { %v1394_v8 = vpack.c.bf16 %v612_v2, %v611_v60  ;;  %v161_v10 = vmul.f32 %v1144_v63, %v1667_v1  ;;  %v422_v12 = vadd.f32 %v1268_v61, %v230_v3  ;;  %v1147_v14 = vunpack.c.l.bf16 %v1545_v0  ;;  %v1579_v63 = vld [vmem:[%s2100_s3 + $0x40] sm:$0xff]  }
  0x13   :  { %vm485_vm6 = vcmp.gt.f32.partialorder %v421_v4, 0.0  ;;  %v549_v13 = vmul.f32 0.2, %v421_v4  ;;  %v231_v15 = vadd.f32 %v1681_v7, %v160_v9  ;;  %v1148_v17 = vunpack.c.h.bf16 %v1545_v0 }
  0x14   :  { %1604 = vst [vmem:[%s2101_s4 + $0x10] sm:$0xff] %v1394_v8   ;;  %v232_v16 = vadd.f32 %v1681_v7, %v161_v10  ;;  %v1275_v18 = vunpack.c.l.bf16 %v1576_v6  ;;  %vm486_vm7 = vcmp.gt.f32.partialorder %v422_v12, 0.0  ;;  %v550_v20 = vmul.f32 0.2, %v422_v12  ;;  %v1549_v8 = vld [vmem:[%s2097_s0 + $0x48] sm:$0xff]  }
  0x15   :  { %v613_v21 = vsel %vm485_vm6, %v421_v4, %v549_v13  ;;  %v162_v22 = vmul.f32 %v1147_v14, %v1667_v1  ;;  %v423_v23 = vadd.f32 %v1271_v5, %v231_v15  ;;  %v163_v25 = vmul.f32 %v1148_v17, %v1667_v1 }
  0x16   :  { %v424_v24 = vadd.f32 %v1272_v11, %v232_v16  ;;  %v1276_v26 = vunpack.c.h.bf16 %v1576_v6  ;;  %v614_v27 = vsel %vm486_vm7, %v422_v12, %v550_v20  ;;  %v1151_v29 = vunpack.c.l.bf16 %v1546_v19 }
  0x17   :  { %v233_v28 = vadd.f32 %v1681_v7, %v162_v22  ;;  %v1152_v30 = vunpack.c.h.bf16 %v1546_v19  ;;  %v1399_v32 = vpack.c.bf16 %v614_v27, %v613_v21  ;;  %vm487_vm8 = vcmp.gt.f32.partialorder %v423_v23, 0.0  ;;  %v1580_v21 = vld [vmem:[%s2100_s3 + $0x48] sm:$0xff]  }
  0x18   :  { %vm488_vm9 = vcmp.gt.f32.partialorder %v424_v24, 0.0  ;;  %v551_v33 = vmul.f32 0.2, %v423_v23  ;;  %v552_v34 = vmul.f32 0.2, %v424_v24  ;;  %v234_v35 = vadd.f32 %v1681_v7, %v163_v25 }
  0x19   :  { %v425_v36 = vadd.f32 %v1275_v18, %v233_v28  ;;  %v164_v37 = vmul.f32 %v1151_v29, %v1667_v1  ;;  %1605 = vst [vmem:[%s2101_s4 + $0x18] sm:$0xff] %v1399_v32   ;;  %v165_v40 = vmul.f32 %v1152_v30, %v1667_v1  ;;  %v1279_v41 = vunpack.c.l.bf16 %v1577_v31  ;;  %v1550_v28 = vld [vmem:[%s2097_s0 + $0x50] sm:$0xff]  }
  0x1a   :  { %v615_v39 = vsel %vm487_vm8, %v423_v23, %v551_v33  ;;  %v1280_v42 = vunpack.c.h.bf16 %v1577_v31  ;;  %v616_v43 = vsel %vm488_vm9, %v424_v24, %v552_v34  ;;  %v426_v44 = vadd.f32 %v1276_v26, %v234_v35  ;;  %v1581_v33 = vld [vmem:[%s2100_s3 + $0x50] sm:$0xff]  }
  0x1b   :  { %vm489_vm10 = vcmp.gt.f32.partialorder %v425_v36, 0.0  ;;  %v553_v45 = vmul.f32 0.2, %v425_v36  ;;  %v1404_v47 = vpack.c.bf16 %v616_v43, %v615_v39  ;;  %v235_v48 = vadd.f32 %v1681_v7, %v164_v37 }
  0x1c   :  { %v236_v49 = vadd.f32 %v1681_v7, %v165_v40  ;;  %v1155_v50 = vunpack.c.l.bf16 %v1547_v38  ;;  %vm490_vm11 = vcmp.gt.f32.partialorder %v426_v44, 0.0  ;;  %v554_v52 = vmul.f32 0.2, %v426_v44 }
  0x1d   :  { %v617_v53 = vsel %vm489_vm10, %v425_v36, %v553_v45  ;;  %v1156_v54 = vunpack.c.h.bf16 %v1547_v38  ;;  %1606 = vst [vmem:[%s2101_s4 + $0x20] sm:$0xff] %v1404_v47   ;;  %v427_v55 = vadd.f32 %v1279_v41, %v235_v48  ;;  %v1283_v58 = vunpack.c.l.bf16 %v1578_v46  ;;  %v1551_v41 = vld [vmem:[%s2097_s0 + $0x58] sm:$0xff]  }
  0x1e   :  { %v428_v56 = vadd.f32 %v1280_v42, %v236_v49  ;;  %v166_v57 = vmul.f32 %v1155_v50, %v1667_v1  ;;  %v618_v59 = vsel %vm490_vm11, %v426_v44, %v554_v52  ;;  %v1284_v61 = vunpack.c.h.bf16 %v1578_v46 }
  0x1f   :  { %v167_v60 = vmul.f32 %v1156_v54, %v1667_v1  ;;  %v1159_v62 = vunpack.c.l.bf16 %v1548_v51  ;;  %v1409_v0 = vpack.c.bf16 %v618_v59, %v617_v53  ;;  %vm491_vm12 = vcmp.gt.f32.partialorder %v427_v55, 0.0  ;;  %v1582_v53 = vld [vmem:[%s2100_s3 + $0x58] sm:$0xff]  }
  0x20   :  { %vm492_vm13 = vcmp.gt.f32.partialorder %v428_v56, 0.0  ;;  %v555_v2 = vmul.f32 0.2, %v427_v55  ;;  %v556_v3 = vmul.f32 0.2, %v428_v56  ;;  %v237_v4 = vadd.f32 %v1681_v7, %v166_v57 }
  0x21   :  { %v238_v5 = vadd.f32 %v1681_v7, %v167_v60  ;;  %v1160_v6 = vunpack.c.h.bf16 %v1548_v51  ;;  %1607 = vst [vmem:[%s2101_s4 + $0x28] sm:$0xff] %v1409_v0   ;;  %v168_v10 = vmul.f32 %v1159_v62, %v1667_v1  ;;  %v1287_v11 = vunpack.c.l.bf16 %v1579_v63  ;;  %v1552_v60 = vld [vmem:[%s2097_s0 + $0x60] sm:$0xff]  }
  0x22   :  { %v619_v9 = vsel %vm491_vm12, %v427_v55, %v555_v2  ;;  %v1288_v12 = vunpack.c.h.bf16 %v1579_v63  ;;  %v620_v13 = vsel %vm492_vm13, %v428_v56, %v556_v3  ;;  %v429_v14 = vadd.f32 %v1283_v58, %v237_v4 }
  0x23   :  { %v430_v15 = vadd.f32 %v1284_v61, %v238_v5  ;;  %v169_v16 = vmul.f32 %v1160_v6, %v1667_v1  ;;  %v1414_v17 = vpack.c.bf16 %v620_v13, %v619_v9  ;;  %v239_v18 = vadd.f32 %v1681_v7, %v168_v10 }
  0x24   :  { %v1163_v19 = vunpack.c.l.bf16 %v1549_v8  ;;  %v1164_v20 = vunpack.c.h.bf16 %v1549_v8  ;;  %vm493_vm14 = vcmp.gt.f32.partialorder %v429_v14, 0.0  ;;  %v557_v22 = vmul.f32 0.2, %v429_v14 }
  0x25   :  { %vm494_vm15 = vcmp.gt.f32.partialorder %v430_v15, 0.0  ;;  %v558_v23 = vmul.f32 0.2, %v430_v15  ;;  %1608 = vst [vmem:[%s2101_s4 + $0x30] sm:$0xff] %v1414_v17   ;;  %v240_v24 = vadd.f32 %v1681_v7, %v169_v16  ;;  %v431_v25 = vadd.f32 %v1287_v11, %v239_v18  ;;  %v1583_v11 = vld [vmem:[%s2100_s3 + $0x60] sm:$0xff]   ;;  %v1553_v18 = vld [vmem:[%s2097_s0 + $0x68] sm:$0xff]  }
  0x26   :  { %v170_v26 = vmul.f32 %v1163_v19, %v1667_v1  ;;  %v171_v27 = vmul.f32 %v1164_v20, %v1667_v1  ;;  %v621_v29 = vsel %vm493_vm14, %v429_v14, %v557_v22  ;;  %v1291_v31 = vunpack.c.l.bf16 %v1580_v21 }
  0x27   :  { %v622_v30 = vsel %vm494_vm15, %v430_v15, %v558_v23  ;;  %v1292_v32 = vunpack.c.h.bf16 %v1580_v21  ;;  %v432_v35 = vadd.f32 %v1288_v12, %v240_v24  ;;  %vm495_vm0 = vcmp.gt.f32.partialorder %v431_v25, 0.0  ;;  %v1584_v23 = vld [vmem:[%s2100_s3 + $0x68] sm:$0xff]  }
  0x28   :  { %v1419_v34 = vpack.c.bf16 %v622_v30, %v621_v29  ;;  %v559_v36 = vmul.f32 0.2, %v431_v25  ;;  %v241_v37 = vadd.f32 %v1681_v7, %v170_v26  ;;  %v242_v38 = vadd.f32 %v1681_v7, %v171_v27  ;;  %v1554_v30 = vld [vmem:[%s2097_s0 + $0x70] sm:$0xff]  }
  0x29   :  { %v1167_v39 = vunpack.c.l.bf16 %v1550_v28  ;;  %v1168_v40 = vunpack.c.h.bf16 %v1550_v28  ;;  %vm496_vm1 = vcmp.gt.f32.partialorder %v432_v35, 0.0  ;;  %v560_v42 = vmul.f32 0.2, %v432_v35 }
  0x2a   :  { %1609 = vst [vmem:[%s2101_s4 + $0x38] sm:$0xff] %v1419_v34   ;;  %v623_v43 = vsel %vm495_vm0, %v431_v25, %v559_v36  ;;  %v1295_v44 = vunpack.c.l.bf16 %v1581_v33  ;;  %v433_v45 = vadd.f32 %v1291_v31, %v241_v37  ;;  %v434_v46 = vadd.f32 %v1292_v32, %v242_v38 }
  0x2b   :  { %v172_v47 = vmul.f32 %v1167_v39, %v1667_v1  ;;  %v173_v48 = vmul.f32 %v1168_v40, %v1667_v1  ;;  %v624_v49 = vsel %vm496_vm1, %v432_v35, %v560_v42  ;;  %v1296_v50 = vunpack.c.h.bf16 %v1581_v33 }
  0x2c   :  { %v1171_v51 = vunpack.c.l.bf16 %v1551_v41  ;;  %v1172_v52 = vunpack.c.h.bf16 %v1551_v41  ;;  %v1424_v54 = vpack.c.bf16 %v624_v49, %v623_v43  ;;  %vm497_vm2 = vcmp.gt.f32.partialorder %v433_v45, 0.0  ;;  %v1585_v43 = vld [vmem:[%s2100_s3 + $0x70] sm:$0xff]  }
  0x2d   :  { %vm498_vm3 = vcmp.gt.f32.partialorder %v434_v46, 0.0  ;;  %v561_v55 = vmul.f32 0.2, %v433_v45  ;;  %v562_v56 = vmul.f32 0.2, %v434_v46  ;;  %v243_v57 = vadd.f32 %v1681_v7, %v172_v47 }
  0x2e   :  { %v244_v58 = vadd.f32 %v1681_v7, %v173_v48  ;;  %v174_v59 = vmul.f32 %v1171_v51, %v1667_v1  ;;  %1610 = vst [vmem:[%s2101_s4 + $0x40] sm:$0xff] %v1424_v54   ;;  %v175_v62 = vmul.f32 %v1172_v52, %v1667_v1  ;;  %v1299_v63 = vunpack.c.l.bf16 %v1582_v53  ;;  %v1586_v51 = vld [vmem:[%s2100_s3 + $0x78] sm:$0xff]  }
  0x2f   :  { %v625_v61 = vsel %vm497_vm2, %v433_v45, %v561_v55  ;;  %v1300_v0 = vunpack.c.h.bf16 %v1582_v53  ;;  %v626_v2 = vsel %vm498_vm3, %v434_v46, %v562_v56  ;;  %v435_v3 = vadd.f32 %v1295_v44, %v243_v57 }
  0x30   :  { %v436_v4 = vadd.f32 %v1296_v50, %v244_v58  ;;  %v245_v5 = vadd.f32 %v1681_v7, %v174_v59  ;;  %v1429_v6 = vpack.c.bf16 %v626_v2, %v625_v61  ;;  %v246_v8 = vadd.f32 %v1681_v7, %v175_v62  ;;  %v1555_v50 = vld [vmem:[%s2097_s0 + $0x78] sm:$0xff]  }
  0x31   :  { %v1175_v9 = vunpack.c.l.bf16 %v1552_v60  ;;  %v1176_v10 = vunpack.c.h.bf16 %v1552_v60  ;;  %vm499_vm4 = vcmp.gt.f32.partialorder %v435_v3, 0.0  ;;  %v563_v12 = vmul.f32 0.2, %v435_v3 }
  0x32   :  { %vm500_vm5 = vcmp.gt.f32.partialorder %v436_v4, 0.0  ;;  %v564_v13 = vmul.f32 0.2, %v436_v4  ;;  %1611 = vst [vmem:[%s2101_s4 + $0x48] sm:$0xff] %v1429_v6   ;;  %v437_v14 = vadd.f32 %v1299_v63, %v245_v5  ;;  %v438_v15 = vadd.f32 %v1300_v0, %v246_v8  ;;  %v1556_v0 = vld [vmem:[%s2097_s0 + $0x80] sm:$0xff]  }
  0x33   :  { %v176_v16 = vmul.f32 %v1175_v9, %v1667_v1  ;;  %v177_v17 = vmul.f32 %v1176_v10, %v1667_v1  ;;  %v627_v19 = vsel %vm499_vm4, %v435_v3, %v563_v12  ;;  %v1303_v21 = vunpack.c.l.bf16 %v1583_v11 }
  0x34   :  { %v628_v20 = vsel %vm500_vm5, %v436_v4, %v564_v13  ;;  %v1304_v22 = vunpack.c.h.bf16 %v1583_v11  ;;  %vm501_vm6 = vcmp.gt.f32.partialorder %v437_v14, 0.0  ;;  %vm502_vm7 = vcmp.gt.f32.partialorder %v438_v15, 0.0  ;;  %v1587_v13 = vld [vmem:[%s2100_s3 + $0x80] sm:$0xff]  }
  0x35   :  { %v1434_v24 = vpack.c.bf16 %v628_v20, %v627_v19  ;;  %v565_v25 = vmul.f32 0.2, %v437_v14  ;;  %v566_v26 = vmul.f32 0.2, %v438_v15  ;;  %v247_v27 = vadd.f32 %v1681_v7, %v176_v16  ;;  %v1557_v20 = vld [vmem:[%s2097_s0 + $0x88] sm:$0xff]  }
  0x36   :  { %v248_v28 = vadd.f32 %v1681_v7, %v177_v17  ;;  %v1179_v29 = vunpack.c.l.bf16 %v1553_v18  ;;  %v1180_v32 = vunpack.c.h.bf16 %v1553_v18  ;;  %v1307_v33 = vunpack.c.l.bf16 %v1584_v23 }
  0x37   :  { %1612 = vst [vmem:[%s2101_s4 + $0x50] sm:$0xff] %v1434_v24   ;;  %v629_v31 = vsel %vm501_vm6, %v437_v14, %v565_v25  ;;  %v1308_v34 = vunpack.c.h.bf16 %v1584_v23  ;;  %v630_v35 = vsel %vm502_vm7, %v438_v15, %v566_v26  ;;  %v439_v36 = vadd.f32 %v1303_v21, %v247_v27 }
  0x38   :  { %v440_v37 = vadd.f32 %v1304_v22, %v248_v28  ;;  %v178_v38 = vmul.f32 %v1179_v29, %v1667_v1  ;;  %v1439_v39 = vpack.c.bf16 %v630_v35, %v629_v31  ;;  %v179_v40 = vmul.f32 %v1180_v32, %v1667_v1 }
  0x39   :  { %v1183_v41 = vunpack.c.l.bf16 %v1554_v30  ;;  %v1184_v42 = vunpack.c.h.bf16 %v1554_v30  ;;  %vm503_vm8 = vcmp.gt.f32.partialorder %v439_v36, 0.0  ;;  %v567_v44 = vmul.f32 0.2, %v439_v36 }
  0x3a   :  { %vm504_vm9 = vcmp.gt.f32.partialorder %v440_v37, 0.0  ;;  %v568_v45 = vmul.f32 0.2, %v440_v37  ;;  %1613 = vst [vmem:[%s2101_s4 + $0x58] sm:$0xff] %v1439_v39   ;;  %v249_v46 = vadd.f32 %v1681_v7, %v178_v38  ;;  %v250_v47 = vadd.f32 %v1681_v7, %v179_v40  ;;  %v1558_v40 = vld [vmem:[%s2097_s0 + $0x90] sm:$0xff]  }
  0x3b   :  { %v180_v48 = vmul.f32 %v1183_v41, %v1667_v1  ;;  %v181_v49 = vmul.f32 %v1184_v42, %v1667_v1  ;;  %v631_v52 = vsel %vm503_vm8, %v439_v36, %v567_v44  ;;  %v1311_v54 = vunpack.c.l.bf16 %v1585_v43 }
  0x3c   :  { %v632_v53 = vsel %vm504_vm9, %v440_v37, %v568_v45  ;;  %v1312_v55 = vunpack.c.h.bf16 %v1585_v43  ;;  %v441_v57 = vadd.f32 %v1307_v33, %v249_v46  ;;  %v442_v58 = vadd.f32 %v1308_v34, %v250_v47  ;;  %v1588_v33 = vld [vmem:[%s2100_s3 + $0x88] sm:$0xff]   ;;  %v1589_v45 = vld [vmem:[%s2100_s3 + $0x90] sm:$0xff]  }
  0x3d   :  { %v1444_v56 = vpack.c.bf16 %v632_v53, %v631_v52  ;;  %v251_v59 = vadd.f32 %v1681_v7, %v180_v48  ;;  %v252_v60 = vadd.f32 %v1681_v7, %v181_v49  ;;  %v1187_v61 = vunpack.c.l.bf16 %v1555_v50  ;;  %v1559_v53 = vld [vmem:[%s2097_s0 + $0x98] sm:$0xff]  }
  0x3e   :  { %v1188_v62 = vunpack.c.h.bf16 %v1555_v50  ;;  %v1315_v63 = vunpack.c.l.bf16 %v1586_v51  ;;  %vm505_vm10 = vcmp.gt.f32.partialorder %v441_v57, 0.0  ;;  %vm506_vm11 = vcmp.gt.f32.partialorder %v442_v58, 0.0 }
  0x3f   :  { %1614 = vst [vmem:[%s2101_s4 + $0x60] sm:$0xff] %v1444_v56   ;;  %v569_v2 = vmul.f32 0.2, %v441_v57  ;;  %v570_v3 = vmul.f32 0.2, %v442_v58  ;;  %v443_v4 = vadd.f32 %v1311_v54, %v251_v59  ;;  %v444_v5 = vadd.f32 %v1312_v55, %v252_v60 }
  0x40   :  { %v182_v6 = vmul.f32 %v1187_v61, %v1667_v1  ;;  %v183_v8 = vmul.f32 %v1188_v62, %v1667_v1  ;;  %v1316_v11 = vunpack.c.h.bf16 %v1586_v51  ;;  %v1191_v12 = vunpack.c.l.bf16 %v1556_v0 }
  0x41   :  { %v633_v9 = vsel %vm505_vm10, %v441_v57, %v569_v2  ;;  %v634_v10 = vsel %vm506_vm11, %v442_v58, %v570_v3  ;;  %vm507_vm12 = vcmp.gt.f32.partialorder %v443_v4, 0.0  ;;  %vm508_vm13 = vcmp.gt.f32.partialorder %v444_v5, 0.0  ;;  %v1590_v2 = vld [vmem:[%s2100_s3 + $0x98] sm:$0xff]  }
  0x42   :  { %v1449_v14 = vpack.c.bf16 %v634_v10, %v633_v9  ;;  %v571_v15 = vmul.f32 0.2, %v443_v4  ;;  %v572_v16 = vmul.f32 0.2, %v444_v5  ;;  %v253_v17 = vadd.f32 %v1681_v7, %v182_v6  ;;  %v1560_v10 = vld [vmem:[%s2097_s0 + $0xa0] sm:$0xff]  }
  0x43   :  { %v254_v18 = vadd.f32 %v1681_v7, %v183_v8  ;;  %v1192_v19 = vunpack.c.h.bf16 %v1556_v0  ;;  %v184_v22 = vmul.f32 %v1191_v12, %v1667_v1  ;;  %v1319_v23 = vunpack.c.l.bf16 %v1587_v13 }
  0x44   :  { %1615 = vst [vmem:[%s2101_s4 + $0x68] sm:$0xff] %v1449_v14   ;;  %v635_v21 = vsel %vm507_vm12, %v443_v4, %v571_v15  ;;  %v1320_v24 = vunpack.c.h.bf16 %v1587_v13  ;;  %v636_v25 = vsel %vm508_vm13, %v444_v5, %v572_v16  ;;  %v445_v26 = vadd.f32 %v1315_v63, %v253_v17 }
  0x45   :  { %v446_v27 = vadd.f32 %v1316_v11, %v254_v18  ;;  %v185_v28 = vmul.f32 %v1192_v19, %v1667_v1  ;;  %v1454_v29 = vpack.c.bf16 %v636_v25, %v635_v21  ;;  %v255_v30 = vadd.f32 %v1681_v7, %v184_v22 }
  0x46   :  { %v1195_v31 = vunpack.c.l.bf16 %v1557_v20  ;;  %v1196_v32 = vunpack.c.h.bf16 %v1557_v20  ;;  %vm509_vm14 = vcmp.gt.f32.partialorder %v445_v26, 0.0  ;;  %v573_v34 = vmul.f32 0.2, %v445_v26 }
  0x47   :  { %vm510_vm15 = vcmp.gt.f32.partialorder %v446_v27, 0.0  ;;  %v574_v35 = vmul.f32 0.2, %v446_v27  ;;  %1616 = vst [vmem:[%s2101_s4 + $0x70] sm:$0xff] %v1454_v29   ;;  %v256_v36 = vadd.f32 %v1681_v7, %v185_v28  ;;  %v447_v37 = vadd.f32 %v1319_v23, %v255_v30  ;;  %v1591_v23 = vld [vmem:[%s2100_s3 + $0xa0] sm:$0xff]   ;;  %v1561_v30 = vld [vmem:[%s2097_s0 + $0xa8] sm:$0xff]  }
  0x48   :  { %v186_v38 = vmul.f32 %v1195_v31, %v1667_v1  ;;  %v187_v39 = vmul.f32 %v1196_v32, %v1667_v1  ;;  %v637_v41 = vsel %vm509_vm14, %v445_v26, %v573_v34  ;;  %v1323_v43 = vunpack.c.l.bf16 %v1588_v33 }
  0x49   :  { %v638_v42 = vsel %vm510_vm15, %v446_v27, %v574_v35  ;;  %v1324_v44 = vunpack.c.h.bf16 %v1588_v33  ;;  %v448_v47 = vadd.f32 %v1320_v24, %v256_v36  ;;  %vm511_vm0 = vcmp.gt.f32.partialorder %v447_v37, 0.0  ;;  %v1592_v35 = vld [vmem:[%s2100_s3 + $0xa8] sm:$0xff]  }
  0x4a   :  { %v1459_v46 = vpack.c.bf16 %v638_v42, %v637_v41  ;;  %v575_v48 = vmul.f32 0.2, %v447_v37  ;;  %v257_v49 = vadd.f32 %v1681_v7, %v186_v38  ;;  %v258_v50 = vadd.f32 %v1681_v7, %v187_v39  ;;  %v1562_v42 = vld [vmem:[%s2097_s0 + $0xb0] sm:$0xff]  }
  0x4b   :  { %v1199_v51 = vunpack.c.l.bf16 %v1558_v40  ;;  %v1200_v52 = vunpack.c.h.bf16 %v1558_v40  ;;  %vm512_vm1 = vcmp.gt.f32.partialorder %v448_v47, 0.0  ;;  %v576_v54 = vmul.f32 0.2, %v448_v47 }
  0x4c   :  { %1617 = vst [vmem:[%s2101_s4 + $0x78] sm:$0xff] %v1459_v46   ;;  %v639_v55 = vsel %vm511_vm0, %v447_v37, %v575_v48  ;;  %v1327_v56 = vunpack.c.l.bf16 %v1589_v45  ;;  %v449_v57 = vadd.f32 %v1323_v43, %v257_v49  ;;  %v450_v58 = vadd.f32 %v1324_v44, %v258_v50 }
  0x4d   :  { %v188_v59 = vmul.f32 %v1199_v51, %v1667_v1  ;;  %v189_v60 = vmul.f32 %v1200_v52, %v1667_v1  ;;  %v640_v61 = vsel %vm512_vm1, %v448_v47, %v576_v54  ;;  %v1328_v62 = vunpack.c.h.bf16 %v1589_v45 }
  0x4e   :  { %v1203_v63 = vunpack.c.l.bf16 %v1559_v53  ;;  %v1204_v0 = vunpack.c.h.bf16 %v1559_v53  ;;  %v1464_v3 = vpack.c.bf16 %v640_v61, %v639_v55  ;;  %vm513_vm2 = vcmp.gt.f32.partialorder %v449_v57, 0.0  ;;  %v1593_v55 = vld [vmem:[%s2100_s3 + $0xb0] sm:$0xff]  }
  0x4f   :  { %vm514_vm3 = vcmp.gt.f32.partialorder %v450_v58, 0.0  ;;  %v577_v4 = vmul.f32 0.2, %v449_v57  ;;  %v578_v5 = vmul.f32 0.2, %v450_v58  ;;  %v259_v6 = vadd.f32 %v1681_v7, %v188_v59 }
  0x50   :  { %v260_v8 = vadd.f32 %v1681_v7, %v189_v60  ;;  %v190_v9 = vmul.f32 %v1203_v63, %v1667_v1  ;;  %1618 = vst [vmem:[%s2101_s4 + $0x80] sm:$0xff] %v1464_v3   ;;  %v191_v12 = vmul.f32 %v1204_v0, %v1667_v1  ;;  %v1331_v13 = vunpack.c.l.bf16 %v1590_v2  ;;  %v1594_v63 = vld [vmem:[%s2100_s3 + $0xb8] sm:$0xff]  }
  0x51   :  { %v641_v11 = vsel %vm513_vm2, %v449_v57, %v577_v4  ;;  %v1332_v14 = vunpack.c.h.bf16 %v1590_v2  ;;  %v642_v15 = vsel %vm514_vm3, %v450_v58, %v578_v5  ;;  %v451_v16 = vadd.f32 %v1327_v56, %v259_v6 }
  0x52   :  { %v452_v17 = vadd.f32 %v1328_v62, %v260_v8  ;;  %v261_v18 = vadd.f32 %v1681_v7, %v190_v9  ;;  %v1469_v19 = vpack.c.bf16 %v642_v15, %v641_v11  ;;  %v262_v20 = vadd.f32 %v1681_v7, %v191_v12  ;;  %v1563_v62 = vld [vmem:[%s2097_s0 + $0xb8] sm:$0xff]  }
  0x53   :  { %v1207_v21 = vunpack.c.l.bf16 %v1560_v10  ;;  %v1208_v22 = vunpack.c.h.bf16 %v1560_v10  ;;  %vm515_vm4 = vcmp.gt.f32.partialorder %v451_v16, 0.0  ;;  %v579_v24 = vmul.f32 0.2, %v451_v16 }
  0x54   :  { %vm516_vm5 = vcmp.gt.f32.partialorder %v452_v17, 0.0  ;;  %v580_v25 = vmul.f32 0.2, %v452_v17  ;;  %1619 = vst [vmem:[%s2101_s4 + $0x88] sm:$0xff] %v1469_v19   ;;  %v453_v26 = vadd.f32 %v1331_v13, %v261_v18  ;;  %v454_v27 = vadd.f32 %v1332_v14, %v262_v20  ;;  %v1564_v14 = vld [vmem:[%s2097_s0 + $0xc0] sm:$0xff]  }
  0x55   :  { %v192_v28 = vmul.f32 %v1207_v21, %v1667_v1  ;;  %v193_v29 = vmul.f32 %v1208_v22, %v1667_v1  ;;  %v643_v31 = vsel %vm515_vm4, %v451_v16, %v579_v24  ;;  %v1335_v33 = vunpack.c.l.bf16 %v1591_v23 }
  0x56   :  { %v644_v32 = vsel %vm516_vm5, %v452_v17, %v580_v25  ;;  %v1336_v34 = vunpack.c.h.bf16 %v1591_v23  ;;  %vm517_vm6 = vcmp.gt.f32.partialorder %v453_v26, 0.0  ;;  %vm518_vm7 = vcmp.gt.f32.partialorder %v454_v27, 0.0  ;;  %v1595_v25 = vld [vmem:[%s2100_s3 + $0xc0] sm:$0xff]  }
  0x57   :  { %v1474_v36 = vpack.c.bf16 %v644_v32, %v643_v31  ;;  %v581_v37 = vmul.f32 0.2, %v453_v26  ;;  %v582_v38 = vmul.f32 0.2, %v454_v27  ;;  %v263_v39 = vadd.f32 %v1681_v7, %v192_v28  ;;  %v1565_v32 = vld [vmem:[%s2097_s0 + $0xc8] sm:$0xff]  }
  0x58   :  { %v264_v40 = vadd.f32 %v1681_v7, %v193_v29  ;;  %v1211_v41 = vunpack.c.l.bf16 %v1561_v30  ;;  %v1212_v44 = vunpack.c.h.bf16 %v1561_v30  ;;  %v1339_v45 = vunpack.c.l.bf16 %v1592_v35 }
  0x59   :  { %1620 = vst [vmem:[%s2101_s4 + $0x90] sm:$0xff] %v1474_v36   ;;  %v645_v43 = vsel %vm517_vm6, %v453_v26, %v581_v37  ;;  %v1340_v46 = vunpack.c.h.bf16 %v1592_v35  ;;  %v646_v47 = vsel %vm518_vm7, %v454_v27, %v582_v38  ;;  %v455_v48 = vadd.f32 %v1335_v33, %v263_v39 }
  0x5a   :  { %v456_v49 = vadd.f32 %v1336_v34, %v264_v40  ;;  %v194_v50 = vmul.f32 %v1211_v41, %v1667_v1  ;;  %v1479_v51 = vpack.c.bf16 %v646_v47, %v645_v43  ;;  %v195_v52 = vmul.f32 %v1212_v44, %v1667_v1 }
  0x5b   :  { %v1215_v53 = vunpack.c.l.bf16 %v1562_v42  ;;  %v1216_v54 = vunpack.c.h.bf16 %v1562_v42  ;;  %vm519_vm8 = vcmp.gt.f32.partialorder %v455_v48, 0.0  ;;  %v583_v56 = vmul.f32 0.2, %v455_v48 }
  0x5c   :  { %vm520_vm9 = vcmp.gt.f32.partialorder %v456_v49, 0.0  ;;  %v584_v57 = vmul.f32 0.2, %v456_v49  ;;  %1621 = vst [vmem:[%s2101_s4 + $0x98] sm:$0xff] %v1479_v51   ;;  %v265_v58 = vadd.f32 %v1681_v7, %v194_v50  ;;  %v266_v59 = vadd.f32 %v1681_v7, %v195_v52  ;;  %v1566_v52 = vld [vmem:[%s2097_s0 + $0xd0] sm:$0xff]  }
  0x5d   :  { %v196_v60 = vmul.f32 %v1215_v53, %v1667_v1  ;;  %v197_v61 = vmul.f32 %v1216_v54, %v1667_v1  ;;  %v647_v0 = vsel %vm519_vm8, %v455_v48, %v583_v56  ;;  %v1343_v3 = vunpack.c.l.bf16 %v1593_v55 }
  0x5e   :  { %v648_v2 = vsel %vm520_vm9, %v456_v49, %v584_v57  ;;  %v1344_v4 = vunpack.c.h.bf16 %v1593_v55  ;;  %v457_v6 = vadd.f32 %v1339_v45, %v265_v58  ;;  %v458_v8 = vadd.f32 %v1340_v46, %v266_v59  ;;  %v1596_v45 = vld [vmem:[%s2100_s3 + $0xc8] sm:$0xff]   ;;  %v1597_v57 = vld [vmem:[%s2100_s3 + $0xd0] sm:$0xff]  }
  0x5f   :  { %v1484_v5 = vpack.c.bf16 %v648_v2, %v647_v0  ;;  %v267_v9 = vadd.f32 %v1681_v7, %v196_v60  ;;  %v268_v10 = vadd.f32 %v1681_v7, %v197_v61  ;;  %v1219_v11 = vunpack.c.l.bf16 %v1563_v62  ;;  %v1567_v0 = vld [vmem:[%s2097_s0 + $0xd8] sm:$0xff]  }
  0x60   :  { %v1220_v12 = vunpack.c.h.bf16 %v1563_v62  ;;  %v1347_v13 = vunpack.c.l.bf16 %v1594_v63  ;;  %vm521_vm10 = vcmp.gt.f32.partialorder %v457_v6, 0.0  ;;  %vm522_vm11 = vcmp.gt.f32.partialorder %v458_v8, 0.0 }
  0x61   :  { %1622 = vst [vmem:[%s2101_s4 + $0xa0] sm:$0xff] %v1484_v5   ;;  %v585_v15 = vmul.f32 0.2, %v457_v6  ;;  %v586_v16 = vmul.f32 0.2, %v458_v8  ;;  %v459_v17 = vadd.f32 %v1343_v3, %v267_v9  ;;  %v460_v18 = vadd.f32 %v1344_v4, %v268_v10 }
  0x62   :  { %v198_v19 = vmul.f32 %v1219_v11, %v1667_v1  ;;  %v199_v20 = vmul.f32 %v1220_v12, %v1667_v1  ;;  %v1348_v23 = vunpack.c.h.bf16 %v1594_v63  ;;  %v1223_v24 = vunpack.c.l.bf16 %v1564_v14 }
  0x63   :  { %v649_v21 = vsel %vm521_vm10, %v457_v6, %v585_v15  ;;  %v650_v22 = vsel %vm522_vm11, %v458_v8, %v586_v16  ;;  %vm523_vm12 = vcmp.gt.f32.partialorder %v459_v17, 0.0  ;;  %vm524_vm13 = vcmp.gt.f32.partialorder %v460_v18, 0.0 }
  0x64   :  { %v1489_v26 = vpack.c.bf16 %v650_v22, %v649_v21  ;;  %v587_v27 = vmul.f32 0.2, %v459_v17  ;;  %v588_v28 = vmul.f32 0.2, %v460_v18  ;;  %v269_v29 = vadd.f32 %v1681_v7, %v198_v19  ;;  %v1568_v22 = vld [vmem:[%s2097_s0 + $0xe0] sm:$0xff]  }
  0x65   :  { %v270_v30 = vadd.f32 %v1681_v7, %v199_v20  ;;  %v1224_v31 = vunpack.c.h.bf16 %v1564_v14  ;;  %v200_v34 = vmul.f32 %v1223_v24, %v1667_v1  ;;  %v1351_v35 = vunpack.c.l.bf16 %v1595_v25  ;;  %v1598_v14 = vld [vmem:[%s2100_s3 + $0xd8] sm:$0xff]  }
  0x66   :  { %1623 = vst [vmem:[%s2101_s4 + $0xa8] sm:$0xff] %v1489_v26   ;;  %v651_v33 = vsel %vm523_vm12, %v459_v17, %v587_v27  ;;  %v1352_v36 = vunpack.c.h.bf16 %v1595_v25  ;;  %v652_v37 = vsel %vm524_vm13, %v460_v18, %v588_v28  ;;  %v461_v38 = vadd.f32 %v1347_v13, %v269_v29  ;;  %v2025_v18 = vld [vmem:[%s2099_s2] ss:$0 sm:$0xff] }
  0x67   :  { %v462_v39 = vadd.f32 %v1348_v23, %v270_v30  ;;  %v201_v40 = vmul.f32 %v1224_v31, %v1667_v1  ;;  %v1494_v41 = vpack.c.bf16 %v652_v37, %v651_v33  ;;  %v271_v42 = vadd.f32 %v1681_v7, %v200_v34 }
  0x68   :  { %v1227_v43 = vunpack.c.l.bf16 %v1565_v32  ;;  %v1228_v44 = vunpack.c.h.bf16 %v1565_v32  ;;  %vm525_vm14 = vcmp.gt.f32.partialorder %v461_v38, 0.0  ;;  %v589_v46 = vmul.f32 0.2, %v461_v38 }
  0x69   :  { %vm526_vm15 = vcmp.gt.f32.partialorder %v462_v39, 0.0  ;;  %v590_v47 = vmul.f32 0.2, %v462_v39  ;;  %1624 = vst [vmem:[%s2101_s4 + $0xb0] sm:$0xff] %v1494_v41   ;;  %v272_v48 = vadd.f32 %v1681_v7, %v201_v40  ;;  %v463_v49 = vadd.f32 %v1351_v35, %v271_v42  ;;  %v1599_v35 = vld [vmem:[%s2100_s3 + $0xe0] sm:$0xff]   ;;  %v1569_v42 = vld [vmem:[%s2097_s0 + $0xe8] sm:$0xff]  }
  0x6a   :  { %v202_v50 = vmul.f32 %v1227_v43, %v1667_v1  ;;  %v203_v51 = vmul.f32 %v1228_v44, %v1667_v1  ;;  %v653_v53 = vsel %vm525_vm14, %v461_v38, %v589_v46  ;;  %v1355_v55 = vunpack.c.l.bf16 %v1596_v45 }
  0x6b   :  { %v654_v54 = vsel %vm526_vm15, %v462_v39, %v590_v47  ;;  %v1356_v56 = vunpack.c.h.bf16 %v1596_v45  ;;  %v464_v59 = vadd.f32 %v1352_v36, %v272_v48  ;;  %vm527_vm0 = vcmp.gt.f32.partialorder %v463_v49, 0.0  ;;  %v1600_v47 = vld [vmem:[%s2100_s3 + $0xe8] sm:$0xff]  }
  0x6c   :  { %v1499_v58 = vpack.c.bf16 %v654_v54, %v653_v53  ;;  %v591_v60 = vmul.f32 0.2, %v463_v49  ;;  %v273_v61 = vadd.f32 %v1681_v7, %v202_v50  ;;  %v274_v1 = vadd.f32 %v1681_v7, %v203_v51  ;;  %v2015_v7 = vld [vmem:[%s2098_s1] ss:$0 sm:$0xff]  ;;  %v1570_v54 = vld [vmem:[%s2097_s0 + $0xf0] sm:$0xff]  }
  0x6d   :  { %v1231_v62 = vunpack.c.l.bf16 %v1566_v52  ;;  %v1232_v63 = vunpack.c.h.bf16 %v1566_v52  ;;  %vm528_vm1 = vcmp.gt.f32.partialorder %v464_v59, 0.0  ;;  %v592_v2 = vmul.f32 0.2, %v464_v59 }
  0x6e   :  { %1625 = vst [vmem:[%s2101_s4 + $0xb8] sm:$0xff] %v1499_v58   ;;  %v655_v3 = vsel %vm527_vm0, %v463_v49, %v591_v60  ;;  %v1359_v4 = vunpack.c.l.bf16 %v1597_v57  ;;  %v465_v5 = vadd.f32 %v1355_v55, %v273_v61  ;;  %v466_v6 = vadd.f32 %v1356_v56, %v274_v1 }
  0x6f   :  { %v204_v8 = vmul.f32 %v2015_v7, %v1231_v62  ;;  %v205_v9 = vmul.f32 %v2015_v7, %v1232_v63  ;;  %v656_v10 = vsel %vm528_vm1, %v464_v59, %v592_v2  ;;  %v1360_v11 = vunpack.c.h.bf16 %v1597_v57 }
  0x70   :  { %v1235_v12 = vunpack.c.l.bf16 %v1567_v0  ;;  %v1236_v13 = vunpack.c.h.bf16 %v1567_v0  ;;  %v1504_v15 = vpack.c.bf16 %v656_v10, %v655_v3  ;;  %vm529_vm2 = vcmp.gt.f32.partialorder %v465_v5, 0.0  ;;  %v1601_v3 = vld [vmem:[%s2100_s3 + $0xf0] sm:$0xff]  }
  0x71   :  { %vm530_vm3 = vcmp.gt.f32.partialorder %v466_v6, 0.0  ;;  %v593_v16 = vmul.f32 0.2, %v465_v5  ;;  %v594_v17 = vmul.f32 0.2, %v466_v6  ;;  %v275_v19 = vadd.f32 %v2025_v18, %v204_v8 }
  0x72   :  { %v276_v20 = vadd.f32 %v2025_v18, %v205_v9  ;;  %v206_v21 = vmul.f32 %v2015_v7, %v1235_v12  ;;  %1626 = vst [vmem:[%s2101_s4 + $0xc0] sm:$0xff] %v1504_v15   ;;  %v207_v24 = vmul.f32 %v2015_v7, %v1236_v13  ;;  %v1363_v25 = vunpack.c.l.bf16 %v1598_v14 }
  0x73   :  { %v657_v23 = vsel %vm529_vm2, %v465_v5, %v593_v16  ;;  %v1364_v26 = vunpack.c.h.bf16 %v1598_v14  ;;  %v658_v27 = vsel %vm530_vm3, %v466_v6, %v594_v17  ;;  %v467_v28 = vadd.f32 %v1359_v4, %v275_v19 }
  0x74   :  { %v468_v29 = vadd.f32 %v1360_v11, %v276_v20  ;;  %v277_v30 = vadd.f32 %v2025_v18, %v206_v21  ;;  %v1509_v31 = vpack.c.bf16 %v658_v27, %v657_v23  ;;  %v278_v32 = vadd.f32 %v2025_v18, %v207_v24  ;;  %v1571_v11 = vld [vmem:[%s2097_s0 + $0xf8] sm:$0xff]  }
  0x75   :  { %v1239_v33 = vunpack.c.l.bf16 %v1568_v22  ;;  %v1240_v34 = vunpack.c.h.bf16 %v1568_v22  ;;  %vm531_vm4 = vcmp.gt.f32.partialorder %v467_v28, 0.0  ;;  %v595_v36 = vmul.f32 0.2, %v467_v28  ;;  %v1602_v24 = vld [vmem:[%s2100_s3 + $0xf8] sm:$0xff]  }
  0x76   :  { %vm532_vm5 = vcmp.gt.f32.partialorder %v468_v29, 0.0  ;;  %v596_v37 = vmul.f32 0.2, %v468_v29  ;;  %1627 = vst [vmem:[%s2101_s4 + $0xc8] sm:$0xff] %v1509_v31   ;;  %v469_v38 = vadd.f32 %v1363_v25, %v277_v30  ;;  %v470_v39 = vadd.f32 %v1364_v26, %v278_v32 }
  0x77   :  { %v208_v40 = vmul.f32 %v2015_v7, %v1239_v33  ;;  %v209_v41 = vmul.f32 %v2015_v7, %v1240_v34  ;;  %v659_v43 = vsel %vm531_vm4, %v467_v28, %v595_v36  ;;  %v1367_v45 = vunpack.c.l.bf16 %v1599_v35 }
  0x78   :  { %v660_v44 = vsel %vm532_vm5, %v468_v29, %v596_v37  ;;  %v1368_v46 = vunpack.c.h.bf16 %v1599_v35  ;;  %vm533_vm6 = vcmp.gt.f32.partialorder %v469_v38, 0.0  ;;  %vm534_vm7 = vcmp.gt.f32.partialorder %v470_v39, 0.0 }
  0x79   :  { %v1514_v48 = vpack.c.bf16 %v660_v44, %v659_v43  ;;  %v597_v49 = vmul.f32 0.2, %v469_v38  ;;  %v598_v50 = vmul.f32 0.2, %v470_v39  ;;  %v279_v51 = vadd.f32 %v2025_v18, %v208_v40 }
  0x7a   :  { %v280_v52 = vadd.f32 %v2025_v18, %v209_v41  ;;  %v1243_v53 = vunpack.c.l.bf16 %v1569_v42  ;;  %v1244_v56 = vunpack.c.h.bf16 %v1569_v42  ;;  %v1371_v57 = vunpack.c.l.bf16 %v1600_v47 }
  0x7b   :  { %1628 = vst [vmem:[%s2101_s4 + $0xd0] sm:$0xff] %v1514_v48   ;;  %v661_v55 = vsel %vm533_vm6, %v469_v38, %v597_v49  ;;  %v1372_v58 = vunpack.c.h.bf16 %v1600_v47  ;;  %v662_v59 = vsel %vm534_vm7, %v470_v39, %v598_v50  ;;  %v471_v60 = vadd.f32 %v1367_v45, %v279_v51 }
  0x7c   :  { %v472_v61 = vadd.f32 %v1368_v46, %v280_v52  ;;  %v210_v1 = vmul.f32 %v2015_v7, %v1243_v53  ;;  %v1519_v62 = vpack.c.bf16 %v662_v59, %v661_v55  ;;  %v211_v63 = vmul.f32 %v2015_v7, %v1244_v56 }
  0x7d   :  { %v1247_v0 = vunpack.c.l.bf16 %v1570_v54  ;;  %v1248_v2 = vunpack.c.h.bf16 %v1570_v54  ;;  %vm535_vm8 = vcmp.gt.f32.partialorder %v471_v60, 0.0  ;;  %v599_v4 = vmul.f32 0.2, %v471_v60 }
  0x7e   :  { %vm536_vm9 = vcmp.gt.f32.partialorder %v472_v61, 0.0  ;;  %v600_v5 = vmul.f32 0.2, %v472_v61  ;;  %1629 = vst [vmem:[%s2101_s4 + $0xd8] sm:$0xff] %v1519_v62   ;;  %v281_v6 = vadd.f32 %v2025_v18, %v210_v1  ;;  %v282_v8 = vadd.f32 %v2025_v18, %v211_v63 }
  0x7f   :  { %v212_v9 = vmul.f32 %v2015_v7, %v1247_v0  ;;  %v213_v10 = vmul.f32 %v2015_v7, %v1248_v2  ;;  %v663_v12 = vsel %vm535_vm8, %v471_v60, %v599_v4  ;;  %v1375_v14 = vunpack.c.l.bf16 %v1601_v3 }
  0x80   :  { %v664_v13 = vsel %vm536_vm9, %v472_v61, %v600_v5  ;;  %v1376_v15 = vunpack.c.h.bf16 %v1601_v3  ;;  %v473_v17 = vadd.f32 %v1371_v57, %v281_v6  ;;  %v474_v19 = vadd.f32 %v1372_v58, %v282_v8 }
  0x81   :  { %v1524_v16 = vpack.c.bf16 %v664_v13, %v663_v12  ;;  %v283_v20 = vadd.f32 %v2025_v18, %v212_v9  ;;  %v284_v21 = vadd.f32 %v2025_v18, %v213_v10  ;;  %v1251_v22 = vunpack.c.l.bf16 %v1571_v11 }
  0x82   :  { %v1252_v23 = vunpack.c.h.bf16 %v1571_v11  ;;  %vm537_vm10 = vcmp.gt.f32.partialorder %v473_v17, 0.0  ;;  %vm538_vm11 = vcmp.gt.f32.partialorder %v474_v19, 0.0  ;;  %v601_v25 = vmul.f32 0.2, %v473_v17 }
  0x83   :  { %1630 = vst [vmem:[%s2101_s4 + $0xe0] sm:$0xff] %v1524_v16   ;;  %v602_v26 = vmul.f32 0.2, %v474_v19  ;;  %v475_v27 = vadd.f32 %v1375_v14, %v283_v20  ;;  %v476_v28 = vadd.f32 %v1376_v15, %v284_v21  ;;  %v214_v29 = vmul.f32 %v2015_v7, %v1251_v22 }
  0x84   :  { %v215_v30 = vmul.f32 %v2015_v7, %v1252_v23  ;;  %v665_v31 = vsel %vm537_vm10, %v473_v17, %v601_v25  ;;  %v1379_v33 = vunpack.c.l.bf16 %v1602_v24  ;;  %v1380_v34 = vunpack.c.h.bf16 %v1602_v24 }
  0x85   :  { %v666_v32 = vsel %vm538_vm11, %v474_v19, %v602_v26  ;;  %vm539_vm12 = vcmp.gt.f32.partialorder %v475_v27, 0.0  ;;  %vm540_vm13 = vcmp.gt.f32.partialorder %v476_v28, 0.0  ;;  %v603_v36 = vmul.f32 0.2, %v475_v27 }
  0x86   :  { %v1529_v35 = vpack.c.bf16 %v666_v32, %v665_v31  ;;  %v604_v37 = vmul.f32 0.2, %v476_v28  ;;  %v285_v38 = vadd.f32 %v2025_v18, %v214_v29  ;;  %v286_v39 = vadd.f32 %v2025_v18, %v215_v30 }
  0x87   :  { %v667_v40 = vsel %vm539_vm12, %v475_v27, %v603_v36 }
  0x88   :  { %1631 = vst [vmem:[%s2101_s4 + $0xe8] sm:$0xff] %v1529_v35   ;;  %v668_v41 = vsel %vm540_vm13, %v476_v28, %v604_v37  ;;  %v477_v7 = vadd.f32 %v1379_v33, %v285_v38  ;;  %v478_v42 = vadd.f32 %v1380_v34, %v286_v39 }
  0x89   :  { %v1534_v43 = vpack.c.bf16 %v668_v41, %v667_v40 }
  0x8a   :  { %vm541_vm14 = vcmp.gt.f32.partialorder %v477_v7, 0.0  ;;  %vm542_vm15 = vcmp.gt.f32.partialorder %v478_v42, 0.0  ;;  %v605_v44 = vmul.f32 0.2, %v477_v7  ;;  %v606_v45 = vmul.f32 0.2, %v478_v42 }
  0x8b   :  { %1632 = vst [vmem:[%s2101_s4 + $0xf0] sm:$0xff] %v1534_v43  }
  0x8c   :  { %v669_v46 = vsel %vm541_vm14, %v477_v7, %v605_v44  ;;  %v670_v47 = vsel %vm542_vm15, %v478_v42, %v606_v45 }
  0x8d   :  { %v1539_v18 = vpack.c.bf16 %v670_v47, %v669_v46 }
  0x8f   :  { %1633 = vst [vmem:[%s2101_s4 + $0xf8] sm:$0xff] %v1539_v18  }

// kernel: _lambda_.29
= control target key start
LH: loop header
LB: loop body
LE: loop exit
PB: predicated region body
PF: predicated region fallthrough
CT: control target
= control target key end

     0   :  { %s1983_s12 = smov 0   ;;  %s1985_s13 = smov 0   ;;  %s2260_s0 = inlined_call_operand.vmem [shape: bf16[512,400], index: 0, kind: input, shape index: {}]   ;;  %s2261_s1 = inlined_call_operand.vmem [shape: bf16[400,128], index: 1, kind: input, shape index: {}]   ;;  %s2262_s2 = inlined_call_operand.vmem [shape: f32[1,128], index: 2, kind: input, shape index: {}]   ;;  %s2263_s3 = inlined_call_operand.vmem [shape: f32[512,128], index: 3, kind: output, shape index: {}]  }
   0x1   :  { %s1987_s14 = smov 0  }
   0x2 LB: > { %s32_s15 = sadd.s32 1, %s1956_s13  ;;  %p1565_p0 = scmp.ge.s32.totalorder %s1960_s14, 1  ;;  %s1960_s14 = sphi %s1987_s14, %s13_s14   ;;  %s1956_s13 = sphi %s1985_s13, %s2265_s13   ;;  %s1952_s12 = sphi %s1983_s12, %s2264_s12  }
   0x3   : > { %p34_p1 = scmp.ge.s32.totalorder %s32_s15, 2  ;;  %p191_p2 = scmp.lt.s32.totalorder %s1960_s14, 3 }
   0x5   : > { %s2267_s15 = smov (%p34_p1, %s32_s15), 0  ;;  %p192_p3 = pnand %p1565_p0, %p191_p2 }
   0x6   : > { %v1817_v0 = vld [vmem:[%s2261_s1 + $0x40] sm:$0xff] (!%p192_p3)   ;;  %v1962_v1 = vmov (!%p192_p3), 0   ;;  %v1820_v4 = vld [vmem:[%s2261_s1 + $0x48] sm:$0xff] (!%p192_p3)   ;;  %v1823_v7 = vld [vmem:[%s2261_s1 + $0x50] sm:$0xff] (!%p192_p3)   ;;  %s1566_s7 = sshll.u32 (!%p192_p3), %s1952_s12, 5  ;;  %vm904_vm0 = vcmask (!%p192_p3), 130048  }
   0x7   : > { %195 = sbr.rel (%p192_p3) target bundleno = 382 (0x17e), region = 32  ;;  %1114 = vmatprep.subr.bf16.mxu1 (!%p192_p3), %v1962_v1  ;;  %v1818_v2 = vld [vmem:[%s2261_s1 + $0x80] sm:$0xff] (!%p192_p3)   ;;  %1680 = vmatprep.subr.bf16.mxu0 (!%p192_p3), %v1817_v0  ;;  %v1821_v5 = vld [vmem:[%s2261_s1 + $0x88] sm:$0xff] (!%p192_p3)   ;;  %v1824_v8 = vld [vmem:[%s2261_s1 + $0x90] sm:$0xff] (!%p192_p3)   ;;  %p236_p4 = scmp.lt.s32.totalorder (!%p192_p3), %s1566_s7, 63 }
   0x8   : > { %v1819_v3 = vld [vmem:[%s2261_s1] sm:$0xff] (!%p192_p3)   ;;  %1115 = vmatpush1.bf16.msra.mxu1 (!%p192_p3), %v1818_v2  ;;  %v1822_v6 = vld [vmem:[%s2261_s1 + $0x8] sm:$0xff] (!%p192_p3)   ;;  %v1825_v9 = vld [vmem:[%s2261_s1 + $0x10] sm:$0xff] (!%p192_p3)  }
   0x9   : > { %1681 = vmatpush3.bf16.msra.mxu0 (!%p192_p3), %v1819_v3  ;;  %1116 = vmatprep.subr.bf16.mxu1 (!%p192_p3), %v1962_v1  ;;  %v1826_v10 = vld [vmem:[%s2261_s1 + $0x58] sm:$0xff] (!%p192_p3)   ;;  %v1829_v13 = vld [vmem:[%s2261_s1 + $0x60] sm:$0xff] (!%p192_p3)   ;;  %v1832_v16 = vld [vmem:[%s2261_s1 + $0x68] sm:$0xff] (!%p192_p3)  }
   0xa   : > { %1682 = vmatprep.subr.bf16.mxu0 (!%p192_p3), %v1820_v4  ;;  %v1827_v11 = vld [vmem:[%s2261_s1 + $0x98] sm:$0xff] (!%p192_p3)   ;;  %v1830_v14 = vld [vmem:[%s2261_s1 + $0xa0] sm:$0xff] (!%p192_p3)   ;;  %v1833_v17 = vld [vmem:[%s2261_s1 + $0xa8] sm:$0xff] (!%p192_p3)  }
   0xb   : > { %v1828_v12 = vld [vmem:[%s2261_s1 + $0x18] sm:$0xff] (!%p192_p3)   ;;  %v1831_v15 = vld [vmem:[%s2261_s1 + $0x20] sm:$0xff] (!%p192_p3)   ;;  %v1834_v18 = vld [vmem:[%s2261_s1 + $0x28] sm:$0xff] (!%p192_p3)  }
   0xc   : > { %1117 = vmatpush1.bf16.msra.mxu1 (!%p192_p3), %v1821_v5  ;;  %v1835_v19 = vld [vmem:[%s2261_s1 + $0x70] sm:$0xff] (!%p192_p3)   ;;  %v1838_v22 = vld [vmem:[%s2261_s1 + $0x78] sm:$0xff] (!%p192_p3)   ;;  %v1844_v28 = vld [vmem:[%s2261_s1 + $0xc0] sm:$0xff] (!%p192_p3)  }
   0xd   : > { %1683 = vmatpush3.bf16.msra.mxu0 (!%p192_p3), %v1822_v6  ;;  %1118 = vmatprep.subr.bf16.mxu1 (!%p192_p3), %v1962_v1  ;;  %v1836_v20 = vld [vmem:[%s2261_s1 + $0xb0] sm:$0xff] (!%p192_p3)   ;;  %v1839_v24 = vld [vmem:[%s2261_s1 + $0xb8] sm:$0xff] (!%p192_p3)  }
   0xe   : > { %1684 = vmatprep.subr.bf16.mxu0 %v1823_v7  ;;  %s2269_s7 = smov (!%p236_p4, %s1566_s7), 63  ;;  %v1837_v21 = vld [vmem:[%s2261_s1 + $0x30] sm:$0xff]   ;;  %v1840_v26 = vld [vmem:[%s2261_s1 + $0x38] sm:$0xff]  }
   0xf   : > { %s1679_s27 = sshll.u32 %s2269_s7, 4  ;;  %s1570_s24 = sshll.u32 %s2269_s7, 3 }
  0x10   : > { %1119 = vmatpush1.bf16.msra.mxu1 %v1824_v8  ;;  %s2076_s10 = scalar_lea.vmem %s2260_s0, %s1679_s27  ;;  %s2185_s29 = scalar_lea.vmem %s2263_s3, %s1570_s24 }
  0x11   : > { %1685 = vmatpush3.bf16.msra.mxu0 %v1825_v9  ;;  %1120 = vmatprep.subr.bf16.mxu1 %v1962_v1  ;;  %v1843_v23 = vld [vmem:[%s2076_s10 + $0x4] ss:$16 sps:$4 sm:$0xff]   ;;  %v1847_v25 = vld [vmem:[%s2076_s10 + $0xc] ss:$16 sps:$4 sm:$0xff]   ;;  %v1841_v27 = vld [vmem:[%s2076_s10] ss:$16 sps:$4 sm:$0xff]  }
  0x12   : > { %1686 = vmatprep.subr.bf16.mxu0 %v1826_v10  ;;  %985 = vmatprep.mubr.bf16.mxu0 %v1843_v23  ;;  %v1848_v29 = vld [vmem:[%s2076_s10 + $0x24] ss:$16 sps:$4 sm:$0xff]   ;;  %v1845_v30 = vld [vmem:[%s2076_s10 + $0x8] ss:$16 sps:$4 sm:$0xff]   ;;  %v1851_v31 = vld [vmem:[%s2076_s10 + $0x2c] ss:$16 sps:$4 sm:$0xff]  }
  0x13   : > { %1660 = vmatprep.mubr.msk.bf16.mxu1 %vm904_vm0, %v1847_v25  ;;  %v1850_v32 = vld [vmem:[%s2076_s10 + $0x20] ss:$16 sps:$4 sm:$0xff]   ;;  %v1854_v33 = vld [vmem:[%s2076_s10 + $0x44] ss:$16 sps:$4 sm:$0xff]   ;;  %v1853_v34 = vld [vmem:[%s2076_s10 + $0x28] ss:$16 sps:$4 sm:$0xff]  }
  0x14   : > { %1121 = vmatpush1.bf16.msra.mxu1 %v1827_v11  ;;  %v1857_v35 = vld [vmem:[%s2076_s10 + $0x4c] ss:$16 sps:$4 sm:$0xff]   ;;  %v1856_v36 = vld [vmem:[%s2076_s10 + $0x40] ss:$16 sps:$4 sm:$0xff]   ;;  %v1860_v37 = vld [vmem:[%s2076_s10 + $0x64] ss:$16 sps:$4 sm:$0xff]  }
  0x15   : > { %1687 = vmatpush3.bf16.msra.mxu0 %v1828_v12  ;;  %1122 = vmatprep.subr.bf16.mxu1 %v1962_v1  ;;  %v1859_v38 = vld [vmem:[%s2076_s10 + $0x48] ss:$16 sps:$4 sm:$0xff]   ;;  %v1863_v39 = vld [vmem:[%s2076_s10 + $0x6c] ss:$16 sps:$4 sm:$0xff]   ;;  %v1862_v40 = vld [vmem:[%s2076_s10 + $0x60] ss:$16 sps:$4 sm:$0xff]  }
  0x16   : > { %1688 = vmatprep.subr.bf16.mxu0 %v1829_v13  ;;  %v1866_v41 = vld [vmem:[%s2076_s10 + $0x84] ss:$16 sps:$4 sm:$0xff]   ;;  %v1865_v42 = vld [vmem:[%s2076_s10 + $0x68] ss:$16 sps:$4 sm:$0xff]   ;;  %v1869_v43 = vld [vmem:[%s2076_s10 + $0x8c] ss:$16 sps:$4 sm:$0xff]  }
  0x17   : > { %v1868_v44 = vld [vmem:[%s2076_s10 + $0x80] ss:$16 sps:$4 sm:$0xff]   ;;  %v1872_v45 = vld [vmem:[%s2076_s10 + $0xa4] ss:$16 sps:$4 sm:$0xff]   ;;  %v1871_v46 = vld [vmem:[%s2076_s10 + $0x88] ss:$16 sps:$4 sm:$0xff]  }
  0x18   : > { %1123 = vmatpush1.bf16.msra.mxu1 %v1830_v14  ;;  %v1875_v47 = vld [vmem:[%s2076_s10 + $0xac] ss:$16 sps:$4 sm:$0xff]   ;;  %v1874_v48 = vld [vmem:[%s2076_s10 + $0xa0] ss:$16 sps:$4 sm:$0xff]   ;;  %v1878_v49 = vld [vmem:[%s2076_s10 + $0xc4] ss:$16 sps:$4 sm:$0xff]  }
  0x19   : > { %1689 = vmatpush3.bf16.msra.mxu0 %v1831_v15  ;;  %1124 = vmatprep.subr.bf16.mxu1 %v1962_v1  ;;  %v1877_v50 = vld [vmem:[%s2076_s10 + $0xa8] ss:$16 sps:$4 sm:$0xff]   ;;  %v1881_v51 = vld [vmem:[%s2076_s10 + $0xcc] ss:$16 sps:$4 sm:$0xff]   ;;  %v1880_v52 = vld [vmem:[%s2076_s10 + $0xc0] ss:$16 sps:$4 sm:$0xff]  }
  0x1a   : > { %1690 = vmatprep.subr.bf16.mxu0 %v1832_v16  ;;  %v1884_v53 = vld [vmem:[%s2076_s10 + $0xe4] ss:$16 sps:$4 sm:$0xff]   ;;  %v1883_v54 = vld [vmem:[%s2076_s10 + $0xc8] ss:$16 sps:$4 sm:$0xff]   ;;  %v1887_v55 = vld [vmem:[%s2076_s10 + $0xec] ss:$16 sps:$4 sm:$0xff]  }
  0x1b   : > { %v1886_v56 = vld [vmem:[%s2076_s10 + $0xe0] ss:$16 sps:$4 sm:$0xff]   ;;  %v1890_v57 = vld [vmem:[%s2076_s10 + $0x104] ss:$16 sps:$4 sm:$0xff]   ;;  %v1889_v58 = vld [vmem:[%s2076_s10 + $0xe8] ss:$16 sps:$4 sm:$0xff]  }
  0x1c   : > { %1125 = vmatpush1.bf16.msra.mxu1 %v1833_v17  ;;  %v1893_v59 = vld [vmem:[%s2076_s10 + $0x10c] ss:$16 sps:$4 sm:$0xff]   ;;  %v1892_v60 = vld [vmem:[%s2076_s10 + $0x100] ss:$16 sps:$4 sm:$0xff]   ;;  %v1896_v61 = vld [vmem:[%s2076_s10 + $0x124] ss:$16 sps:$4 sm:$0xff]  }
  0x1d   : > { %1691 = vmatpush3.bf16.msra.mxu0 %v1834_v18  ;;  %1126 = vmatprep.subr.bf16.mxu1 %v1962_v1  ;;  %v1895_v62 = vld [vmem:[%s2076_s10 + $0x108] ss:$16 sps:$4 sm:$0xff]   ;;  %v1899_v63 = vld [vmem:[%s2076_s10 + $0x12c] ss:$16 sps:$4 sm:$0xff]   ;;  %v1898_v0 = vld [vmem:[%s2076_s10 + $0x120] ss:$16 sps:$4 sm:$0xff]  }
  0x1e   : > { %1692 = vmatprep.subr.bf16.mxu0 %v1835_v19  ;;  %v1901_v2 = vld [vmem:[%s2076_s10 + $0x128] ss:$16 sps:$4 sm:$0xff]   ;;  %v1905_v3 = vld [vmem:[%s2076_s10 + $0x14c] ss:$16 sps:$4 sm:$0xff]   ;;  %v1904_v4 = vld [vmem:[%s2076_s10 + $0x140] ss:$16 sps:$4 sm:$0xff]  }
  0x1f   : > { %v1908_v5 = vld [vmem:[%s2076_s10 + $0x164] ss:$16 sps:$4 sm:$0xff]   ;;  %v1907_v6 = vld [vmem:[%s2076_s10 + $0x148] ss:$16 sps:$4 sm:$0xff]   ;;  %v1911_v7 = vld [vmem:[%s2076_s10 + $0x16c] ss:$16 sps:$4 sm:$0xff]  }
  0x20   : > { %1127 = vmatpush1.bf16.msra.mxu1 %v1836_v20  ;;  %v1910_v8 = vld [vmem:[%s2076_s10 + $0x160] ss:$16 sps:$4 sm:$0xff]   ;;  %v1914_v9 = vld [vmem:[%s2076_s10 + $0x184] ss:$16 sps:$4 sm:$0xff]   ;;  %v1913_v10 = vld [vmem:[%s2076_s10 + $0x168] ss:$16 sps:$4 sm:$0xff]  }
  0x21   : > { %1693 = vmatpush3.bf16.msra.mxu0 %v1837_v21  ;;  %1128 = vmatprep.subr.bf16.mxu1 %v1962_v1  ;;  %v1917_v11 = vld [vmem:[%s2076_s10 + $0x18c] ss:$16 sps:$4 sm:$0xff]   ;;  %v1916_v12 = vld [vmem:[%s2076_s10 + $0x180] ss:$16 sps:$4 sm:$0xff]   ;;  %v1920_v13 = vld [vmem:[%s2076_s10 + $0x1a4] ss:$16 sps:$4 sm:$0xff]  }
  0x22   : > { %1694 = vmatprep.subr.bf16.mxu0 %v1838_v22  ;;  %v1919_v14 = vld [vmem:[%s2076_s10 + $0x188] ss:$16 sps:$4 sm:$0xff]   ;;  %v1923_v15 = vld [vmem:[%s2076_s10 + $0x1ac] ss:$16 sps:$4 sm:$0xff]   ;;  %v1922_v16 = vld [vmem:[%s2076_s10 + $0x1a0] ss:$16 sps:$4 sm:$0xff]  }
  0x23   : > { %v1926_v17 = vld [vmem:[%s2076_s10 + $0x1c4] ss:$16 sps:$4 sm:$0xff]   ;;  %v1925_v18 = vld [vmem:[%s2076_s10 + $0x1a8] ss:$16 sps:$4 sm:$0xff]   ;;  %v1929_v19 = vld [vmem:[%s2076_s10 + $0x1cc] ss:$16 sps:$4 sm:$0xff]  }
  0x24   : > { %1129 = vmatpush1.bf16.msra.mxu1 %v1839_v24  ;;  %v1928_v20 = vld [vmem:[%s2076_s10 + $0x1c0] ss:$16 sps:$4 sm:$0xff]   ;;  %v1932_v21 = vld [vmem:[%s2076_s10 + $0x1e4] ss:$16 sps:$4 sm:$0xff]   ;;  %v1931_v22 = vld [vmem:[%s2076_s10 + $0x1c8] ss:$16 sps:$4 sm:$0xff]  }
  0x25   : > { %1695 = vmatpush3.bf16.msra.mxu0 %v1840_v26  ;;  %1130 = vmatprep.subr.bf16.mxu1 %v1962_v1  ;;  %v1902_v1 = vld [vmem:[%s2076_s10 + $0x144] ss:$16 sps:$4 sm:$0xff]   ;;  %v1935_v23 = vld [vmem:[%s2076_s10 + $0x1ec] ss:$16 sps:$4 sm:$0xff]   ;;  %v1934_v24 = vld [vmem:[%s2076_s10 + $0x1e0] ss:$16 sps:$4 sm:$0xff]  }
  0x26   : > { %v1937_v25 = vld [vmem:[%s2076_s10 + $0x1e8] ss:$16 sps:$4 sm:$0xff]  }
  0x28   : > { %986 = vmatmul.mubr.bf16.vlgmr.msra.gmra.mrb[0].mxu0 %v1841_v27  ;;  %1131 = vmatpush1.bf16.msra.mxu1 %v1844_v28 }
  0x29   : > { %993 = vmatprep.mubr.bf16.mxu0 %v1848_v29 }
  0x2b   : > { %1147 = vmatmul.mubr.bf16.vlgmr.msra.gmra.mrb[0].mxu1 %v1845_v30 }
  0x2c   : > { %1661 = vmatprep.mubr.msk.bf16.mxu1 %vm904_vm0, %v1851_v31 }
  0x30   : > { %994 = vmatmul.mubr.bf16.gmra.mrb[4].mxu0 %v1850_v32  ;;  %v2180_v32 = vld [vmem:[%s2262_s2] ss:$0 sm:$0xff] }
  0x31   : > { %1001 = vmatprep.mubr.bf16.mxu0 %v1854_v33 }
  0x33   : > { %1155 = vmatmul.mubr.bf16.gmra.mrb[4].mxu1 %v1853_v34 }
  0x34   : > { %1662 = vmatprep.mubr.msk.bf16.mxu1 %vm904_vm0, %v1857_v35 }
  0x38   : > { %1002 = vmatmul.mubr.bf16.gmra.mrb[8].mxu0 %v1856_v36 }
  0x39   : > { %1009 = vmatprep.mubr.bf16.mxu0 %v1860_v37 }
  0x3b   : > { %1163 = vmatmul.mubr.bf16.gmra.mrb[8].mxu1 %v1859_v38 }
  0x3c   : > { %1663 = vmatprep.mubr.msk.bf16.mxu1 %vm904_vm0, %v1863_v39 }
  0x40   : > { %1010 = vmatmul.mubr.bf16.gmra.mrb[12].mxu0 %v1862_v40 }
  0x41   : > { %1017 = vmatprep.mubr.bf16.mxu0 %v1866_v41 }
  0x43   : > { %1171 = vmatmul.mubr.bf16.gmra.mrb[12].mxu1 %v1865_v42 }
  0x44   : > { %1664 = vmatprep.mubr.msk.bf16.mxu1 %vm904_vm0, %v1869_v43 }
  0x48   : > { %1018 = vmatmul.mubr.bf16.gmra.mrb[16].mxu0 %v1868_v44 }
  0x49   : > { %1025 = vmatprep.mubr.bf16.mxu0 %v1872_v45 }
  0x4b   : > { %1179 = vmatmul.mubr.bf16.gmra.mrb[16].mxu1 %v1871_v46 }
  0x4c   : > { %1665 = vmatprep.mubr.msk.bf16.mxu1 %vm904_vm0, %v1875_v47 }
  0x50   : > { %1026 = vmatmul.mubr.bf16.gmra.mrb[20].mxu0 %v1874_v48 }
  0x51   : > { %1033 = vmatprep.mubr.bf16.mxu0 %v1878_v49 }
  0x53   : > { %1187 = vmatmul.mubr.bf16.gmra.mrb[20].mxu1 %v1877_v50 }
  0x54   : > { %1666 = vmatprep.mubr.msk.bf16.mxu1 %vm904_vm0, %v1881_v51 }
  0x58   : > { %1034 = vmatmul.mubr.bf16.gmra.mrb[24].mxu0 %v1880_v52 }
  0x59   : > { %1041 = vmatprep.mubr.bf16.mxu0 %v1884_v53 }
  0x5b   : > { %1195 = vmatmul.mubr.bf16.gmra.mrb[24].mxu1 %v1883_v54 }
  0x5c   : > { %1667 = vmatprep.mubr.msk.bf16.mxu1 %vm904_vm0, %v1887_v55 }
  0x60   : > { %1042 = vmatmul.mubr.bf16.gmra.mrb[28].mxu0 %v1886_v56 }
  0x61   : > { %1049 = vmatprep.mubr.bf16.mxu0 %v1890_v57 }
  0x63   : > { %1203 = vmatmul.mubr.bf16.gmra.mrb[28].mxu1 %v1889_v58 }
  0x64   : > { %1668 = vmatprep.mubr.msk.bf16.mxu1 %vm904_vm0, %v1893_v59 }
  0x68   : > { %1050 = vmatmul.mubr.bf16.gmra.mrb[32].mxu0 %v1892_v60 }
  0x69   : > { %1057 = vmatprep.mubr.bf16.mxu0 %v1896_v61 }
  0x6b   : > { %1211 = vmatmul.mubr.bf16.gmra.mrb[32].mxu1 %v1895_v62 }
  0x6c   : > { %1669 = vmatprep.mubr.msk.bf16.mxu1 %vm904_vm0, %v1899_v63 }
  0x70   : > { %1058 = vmatmul.mubr.bf16.gmra.mrb[36].mxu0 %v1898_v0 }
  0x71   : > { %1065 = vmatprep.mubr.bf16.mxu0 %v1902_v1 }
  0x73   : > { %1219 = vmatmul.mubr.bf16.gmra.mrb[36].mxu1 %v1901_v2 }
  0x74   : > { %1670 = vmatprep.mubr.msk.bf16.mxu1 %vm904_vm0, %v1905_v3 }
  0x78   : > { %1066 = vmatmul.mubr.bf16.gmra.mrb[40].mxu0 %v1904_v4 }
  0x79   : > { %1073 = vmatprep.mubr.bf16.mxu0 %v1908_v5 }
  0x7b   : > { %1227 = vmatmul.mubr.bf16.gmra.mrb[40].mxu1 %v1907_v6 }
  0x7c   : > { %1671 = vmatprep.mubr.msk.bf16.mxu1 %vm904_vm0, %v1911_v7 }
  0x80   : > { %1074 = vmatmul.mubr.bf16.gmra.mrb[44].mxu0 %v1910_v8 }
  0x81   : > { %1081 = vmatprep.mubr.bf16.mxu0 %v1914_v9 }
  0x83   : > { %1235 = vmatmul.mubr.bf16.gmra.mrb[44].mxu1 %v1913_v10 }
  0x84   : > { %1672 = vmatprep.mubr.msk.bf16.mxu1 %vm904_vm0, %v1917_v11 }
  0x88   : > { %1082 = vmatmul.mubr.bf16.gmra.mrb[48].mxu0 %v1916_v12 }
  0x89   : > { %1089 = vmatprep.mubr.bf16.mxu0 %v1920_v13 }
  0x8b   : > { %1243 = vmatmul.mubr.bf16.gmra.mrb[48].mxu1 %v1919_v14 }
  0x8c   : > { %1673 = vmatprep.mubr.msk.bf16.mxu1 %vm904_vm0, %v1923_v15 }
  0x90   : > { %1090 = vmatmul.mubr.bf16.gmra.mrb[52].mxu0 %v1922_v16 }
  0x91   : > { %1097 = vmatprep.mubr.bf16.mxu0 %v1926_v17 }
  0x93   : > { %1251 = vmatmul.mubr.bf16.gmra.mrb[52].mxu1 %v1925_v18 }
  0x94   : > { %1674 = vmatprep.mubr.msk.bf16.mxu1 %vm904_vm0, %v1929_v19 }
  0x98   : > { %1098 = vmatmul.mubr.bf16.gmra.mrb[56].mxu0 %v1928_v20 }
  0x99   : > { %1105 = vmatprep.mubr.bf16.mxu0 %v1932_v21 }
  0x9b   : > { %1259 = vmatmul.mubr.bf16.gmra.mrb[56].mxu1 %v1931_v22 }
  0x9c   : > { %1675 = vmatprep.mubr.msk.bf16.mxu1 %vm904_vm0, %v1935_v23 }
  0xa0   : > { %1106 = vmatmul.mubr.bf16.gmra.mrb[60].mxu0 %v1934_v24 }
  0xa3   : > { %1267 = vmatmul.mubr.bf16.gmra.mrb[60].mxu1 %v1937_v25 }
  0xfb   : > { %v1696_v26 = vpop.f32.mrb[0].mxu0 }
  0xfc   : > { %v1697_v27 = vpop.f32.mrb[1].mxu0 }
  0xfd   : > { %v1698_v28 = vadd.f32 %v1697_v27, %v1696_v26  ;;  %v1699_v29 = vpop.f32.mrb[2].mxu0 }
  0xfe   : > { %v1700_v30 = vpop.f32.mrb[3].mxu0  ;;  %v1148_v31 = vpop.f32.mrb[0].mxu1 }
  0xff   : > { %v1701_v33 = vadd.f32 %v1700_v30, %v1699_v29  ;;  %v1149_v34 = vadd.f32 %v1698_v28, %v1148_v31  ;;  %v1150_v35 = vpop.f32.mrb[1].mxu1 }
 0x100   : > { %v1151_v36 = vpop.f32.mrb[2].mxu1 }
 0x101   : > { %v1381_v37 = vadd.f32 %v2180_v32, %v1149_v34  ;;  %v1152_v38 = vadd.f32 %v1701_v33, %v1151_v36  ;;  %v1153_v39 = vpop.f32.mrb[3].mxu1 }
 0x103   : > { %1413 = vst [vmem:[%s2185_s29] sm:$0xff] %v1381_v37  ;;  %v1382_v40 = vadd.f32 %v2180_v32, %v1152_v38  ;;  %v1702_v41 = vpop.f32.mrb[4].mxu0 }
 0x104   : > { %v1703_v42 = vpop.f32.mrb[5].mxu0 }
 0x105   : > { %1414 = vst [vmem:[%s2185_s29 + $0x8] sm:$0xff] %v1382_v40  ;;  %v1704_v43 = vadd.f32 %v1703_v42, %v1702_v41  ;;  %v1705_v44 = vpop.f32.mrb[6].mxu0 }
 0x106   : > { %v1706_v45 = vpop.f32.mrb[7].mxu0  ;;  %v1156_v46 = vpop.f32.mrb[4].mxu1 }
 0x107   : > { %v1707_v47 = vadd.f32 %v1706_v45, %v1705_v44  ;;  %v1157_v48 = vadd.f32 %v1704_v43, %v1156_v46  ;;  %v1158_v49 = vpop.f32.mrb[5].mxu1 }
 0x108   : > { %v1159_v50 = vpop.f32.mrb[6].mxu1 }
 0x109   : > { %v1383_v51 = vadd.f32 %v2180_v32, %v1157_v48  ;;  %v1160_v52 = vadd.f32 %v1707_v47, %v1159_v50  ;;  %v1161_v53 = vpop.f32.mrb[7].mxu1 }
 0x10b   : > { %1415 = vst [vmem:[%s2185_s29 + $0x10] sm:$0xff] %v1383_v51  ;;  %v1384_v54 = vadd.f32 %v2180_v32, %v1160_v52  ;;  %v1708_v55 = vpop.f32.mrb[8].mxu0 }
 0x10c   : > { %v1709_v56 = vpop.f32.mrb[9].mxu0 }
 0x10d   : > { %1416 = vst [vmem:[%s2185_s29 + $0x18] sm:$0xff] %v1384_v54  ;;  %v1710_v57 = vadd.f32 %v1709_v56, %v1708_v55  ;;  %v1711_v58 = vpop.f32.mrb[10].mxu0 }
 0x10e   : > { %v1712_v59 = vpop.f32.mrb[11].mxu0  ;;  %v1164_v60 = vpop.f32.mrb[8].mxu1 }
 0x10f   : > { %v1713_v61 = vadd.f32 %v1712_v59, %v1711_v58  ;;  %v1165_v62 = vadd.f32 %v1710_v57, %v1164_v60  ;;  %v1166_v63 = vpop.f32.mrb[9].mxu1 }
 0x110   : > { %v1167_v0 = vpop.f32.mrb[10].mxu1 }
 0x111   : > { %v1385_v1 = vadd.f32 %v2180_v32, %v1165_v62  ;;  %v1168_v2 = vadd.f32 %v1713_v61, %v1167_v0  ;;  %v1169_v3 = vpop.f32.mrb[11].mxu1 }
 0x113   : > { %1417 = vst [vmem:[%s2185_s29 + $0x20] sm:$0xff] %v1385_v1  ;;  %v1386_v4 = vadd.f32 %v2180_v32, %v1168_v2  ;;  %v1714_v5 = vpop.f32.mrb[12].mxu0 }
 0x114   : > { %v1715_v6 = vpop.f32.mrb[13].mxu0 }
 0x115   : > { %1418 = vst [vmem:[%s2185_s29 + $0x28] sm:$0xff] %v1386_v4  ;;  %v1716_v7 = vadd.f32 %v1715_v6, %v1714_v5  ;;  %v1717_v8 = vpop.f32.mrb[14].mxu0 }
 0x116   : > { %v1718_v9 = vpop.f32.mrb[15].mxu0  ;;  %v1172_v10 = vpop.f32.mrb[12].mxu1 }
 0x117   : > { %v1719_v11 = vadd.f32 %v1718_v9, %v1717_v8  ;;  %v1173_v12 = vadd.f32 %v1716_v7, %v1172_v10  ;;  %v1174_v13 = vpop.f32.mrb[13].mxu1 }
 0x118   : > { %v1175_v14 = vpop.f32.mrb[14].mxu1 }
 0x119   : > { %v1387_v15 = vadd.f32 %v2180_v32, %v1173_v12  ;;  %v1176_v16 = vadd.f32 %v1719_v11, %v1175_v14  ;;  %v1177_v17 = vpop.f32.mrb[15].mxu1 }
 0x11b   : > { %1419 = vst [vmem:[%s2185_s29 + $0x30] sm:$0xff] %v1387_v15  ;;  %v1388_v18 = vadd.f32 %v2180_v32, %v1176_v16  ;;  %v1720_v19 = vpop.f32.mrb[16].mxu0 }
 0x11c   : > { %v1721_v20 = vpop.f32.mrb[17].mxu0 }
 0x11d   : > { %1420 = vst [vmem:[%s2185_s29 + $0x38] sm:$0xff] %v1388_v18  ;;  %v1722_v21 = vadd.f32 %v1721_v20, %v1720_v19  ;;  %v1723_v22 = vpop.f32.mrb[18].mxu0 }
 0x11e   : > { %v1724_v23 = vpop.f32.mrb[19].mxu0  ;;  %v1180_v24 = vpop.f32.mrb[16].mxu1 }
 0x11f   : > { %v1725_v25 = vadd.f32 %v1724_v23, %v1723_v22  ;;  %v1181_v26 = vadd.f32 %v1722_v21, %v1180_v24  ;;  %v1182_v27 = vpop.f32.mrb[17].mxu1 }
 0x120   : > { %v1183_v28 = vpop.f32.mrb[18].mxu1 }
 0x121   : > { %v1389_v29 = vadd.f32 %v2180_v32, %v1181_v26  ;;  %v1184_v30 = vadd.f32 %v1725_v25, %v1183_v28  ;;  %v1185_v31 = vpop.f32.mrb[19].mxu1 }
 0x123   : > { %1421 = vst [vmem:[%s2185_s29 + $0x40] sm:$0xff] %v1389_v29  ;;  %v1390_v33 = vadd.f32 %v2180_v32, %v1184_v30  ;;  %v1726_v34 = vpop.f32.mrb[20].mxu0 }
 0x124   : > { %v1727_v35 = vpop.f32.mrb[21].mxu0 }
 0x125   : > { %1422 = vst [vmem:[%s2185_s29 + $0x48] sm:$0xff] %v1390_v33  ;;  %v1728_v36 = vadd.f32 %v1727_v35, %v1726_v34  ;;  %v1729_v37 = vpop.f32.mrb[22].mxu0 }
 0x126   : > { %v1730_v38 = vpop.f32.mrb[23].mxu0  ;;  %v1188_v39 = vpop.f32.mrb[20].mxu1 }
 0x127   : > { %v1731_v40 = vadd.f32 %v1730_v38, %v1729_v37  ;;  %v1189_v41 = vadd.f32 %v1728_v36, %v1188_v39  ;;  %v1190_v42 = vpop.f32.mrb[21].mxu1 }
 0x128   : > { %v1191_v43 = vpop.f32.mrb[22].mxu1 }
 0x129   : > { %v1391_v44 = vadd.f32 %v2180_v32, %v1189_v41  ;;  %v1192_v45 = vadd.f32 %v1731_v40, %v1191_v43  ;;  %v1193_v46 = vpop.f32.mrb[23].mxu1 }
 0x12b   : > { %1423 = vst [vmem:[%s2185_s29 + $0x50] sm:$0xff] %v1391_v44  ;;  %v1392_v47 = vadd.f32 %v2180_v32, %v1192_v45  ;;  %v1732_v48 = vpop.f32.mrb[24].mxu0 }
 0x12c   : > { %v1733_v49 = vpop.f32.mrb[25].mxu0 }
 0x12d   : > { %1424 = vst [vmem:[%s2185_s29 + $0x58] sm:$0xff] %v1392_v47  ;;  %v1734_v50 = vadd.f32 %v1733_v49, %v1732_v48  ;;  %v1735_v51 = vpop.f32.mrb[26].mxu0 }
 0x12e   : > { %v1736_v52 = vpop.f32.mrb[27].mxu0  ;;  %v1196_v53 = vpop.f32.mrb[24].mxu1 }
 0x12f   : > { %v1737_v54 = vadd.f32 %v1736_v52, %v1735_v51  ;;  %v1197_v55 = vadd.f32 %v1734_v50, %v1196_v53  ;;  %v1198_v56 = vpop.f32.mrb[25].mxu1 }
 0x130   : > { %v1199_v57 = vpop.f32.mrb[26].mxu1 }
 0x131   : > { %v1393_v58 = vadd.f32 %v2180_v32, %v1197_v55  ;;  %v1200_v59 = vadd.f32 %v1737_v54, %v1199_v57  ;;  %v1201_v60 = vpop.f32.mrb[27].mxu1 }
 0x133   : > { %1425 = vst [vmem:[%s2185_s29 + $0x60] sm:$0xff] %v1393_v58  ;;  %v1394_v61 = vadd.f32 %v2180_v32, %v1200_v59  ;;  %v1738_v62 = vpop.f32.mrb[28].mxu0 }
 0x134   : > { %v1739_v63 = vpop.f32.mrb[29].mxu0 }
 0x135   : > { %1426 = vst [vmem:[%s2185_s29 + $0x68] sm:$0xff] %v1394_v61  ;;  %v1740_v0 = vadd.f32 %v1739_v63, %v1738_v62  ;;  %v1741_v1 = vpop.f32.mrb[30].mxu0 }
 0x136   : > { %v1742_v2 = vpop.f32.mrb[31].mxu0  ;;  %v1204_v3 = vpop.f32.mrb[28].mxu1 }
 0x137   : > { %v1743_v4 = vadd.f32 %v1742_v2, %v1741_v1  ;;  %v1205_v5 = vadd.f32 %v1740_v0, %v1204_v3  ;;  %v1206_v6 = vpop.f32.mrb[29].mxu1 }
 0x138   : > { %v1207_v7 = vpop.f32.mrb[30].mxu1 }
 0x139   : > { %v1395_v8 = vadd.f32 %v2180_v32, %v1205_v5  ;;  %v1208_v9 = vadd.f32 %v1743_v4, %v1207_v7  ;;  %v1209_v10 = vpop.f32.mrb[31].mxu1 }
 0x13b   : > { %1427 = vst [vmem:[%s2185_s29 + $0x70] sm:$0xff] %v1395_v8  ;;  %v1396_v11 = vadd.f32 %v2180_v32, %v1208_v9  ;;  %v1744_v12 = vpop.f32.mrb[32].mxu0 }
 0x13c   : > { %v1745_v13 = vpop.f32.mrb[33].mxu0 }
 0x13d   : > { %1428 = vst [vmem:[%s2185_s29 + $0x78] sm:$0xff] %v1396_v11  ;;  %v1746_v14 = vadd.f32 %v1745_v13, %v1744_v12  ;;  %v1747_v15 = vpop.f32.mrb[34].mxu0 }
 0x13e   : > { %v1748_v16 = vpop.f32.mrb[35].mxu0  ;;  %v1212_v17 = vpop.f32.mrb[32].mxu1 }
 0x13f   : > { %v1749_v18 = vadd.f32 %v1748_v16, %v1747_v15  ;;  %v1213_v19 = vadd.f32 %v1746_v14, %v1212_v17  ;;  %v1214_v20 = vpop.f32.mrb[33].mxu1 }
 0x140   : > { %v1215_v21 = vpop.f32.mrb[34].mxu1 }
 0x141   : > { %v1397_v22 = vadd.f32 %v2180_v32, %v1213_v19  ;;  %v1216_v23 = vadd.f32 %v1749_v18, %v1215_v21  ;;  %v1217_v24 = vpop.f32.mrb[35].mxu1 }
 0x143   : > { %1429 = vst [vmem:[%s2185_s29 + $0x80] sm:$0xff] %v1397_v22  ;;  %v1398_v25 = vadd.f32 %v2180_v32, %v1216_v23  ;;  %v1750_v26 = vpop.f32.mrb[36].mxu0 }
 0x144   : > { %v1751_v27 = vpop.f32.mrb[37].mxu0 }
 0x145   : > { %1430 = vst [vmem:[%s2185_s29 + $0x88] sm:$0xff] %v1398_v25  ;;  %v1752_v28 = vadd.f32 %v1751_v27, %v1750_v26  ;;  %v1753_v29 = vpop.f32.mrb[38].mxu0 }
 0x146   : > { %v1754_v30 = vpop.f32.mrb[39].mxu0  ;;  %v1220_v31 = vpop.f32.mrb[36].mxu1 }
 0x147   : > { %v1755_v33 = vadd.f32 %v1754_v30, %v1753_v29  ;;  %v1221_v34 = vadd.f32 %v1752_v28, %v1220_v31  ;;  %v1222_v35 = vpop.f32.mrb[37].mxu1 }
 0x148   : > { %v1223_v36 = vpop.f32.mrb[38].mxu1 }
 0x149   : > { %v1399_v37 = vadd.f32 %v2180_v32, %v1221_v34  ;;  %v1224_v38 = vadd.f32 %v1755_v33, %v1223_v36  ;;  %v1225_v39 = vpop.f32.mrb[39].mxu1 }
 0x14b   : > { %1431 = vst [vmem:[%s2185_s29 + $0x90] sm:$0xff] %v1399_v37  ;;  %v1400_v40 = vadd.f32 %v2180_v32, %v1224_v38  ;;  %v1756_v41 = vpop.f32.mrb[40].mxu0 }
 0x14c   : > { %v1757_v42 = vpop.f32.mrb[41].mxu0 }
 0x14d   : > { %1432 = vst [vmem:[%s2185_s29 + $0x98] sm:$0xff] %v1400_v40  ;;  %v1758_v43 = vadd.f32 %v1757_v42, %v1756_v41  ;;  %v1759_v44 = vpop.f32.mrb[42].mxu0 }
 0x14e   : > { %v1760_v45 = vpop.f32.mrb[43].mxu0  ;;  %v1228_v46 = vpop.f32.mrb[40].mxu1 }
 0x14f   : > { %v1761_v47 = vadd.f32 %v1760_v45, %v1759_v44  ;;  %v1229_v48 = vadd.f32 %v1758_v43, %v1228_v46  ;;  %v1230_v49 = vpop.f32.mrb[41].mxu1 }
 0x150   : > { %v1231_v50 = vpop.f32.mrb[42].mxu1 }
 0x151   : > { %v1401_v51 = vadd.f32 %v2180_v32, %v1229_v48  ;;  %v1232_v52 = vadd.f32 %v1761_v47, %v1231_v50  ;;  %v1233_v53 = vpop.f32.mrb[43].mxu1 }
 0x153   : > { %1433 = vst [vmem:[%s2185_s29 + $0xa0] sm:$0xff] %v1401_v51  ;;  %v1402_v54 = vadd.f32 %v2180_v32, %v1232_v52  ;;  %v1762_v55 = vpop.f32.mrb[44].mxu0 }
 0x154   : > { %v1763_v56 = vpop.f32.mrb[45].mxu0 }
 0x155   : > { %1434 = vst [vmem:[%s2185_s29 + $0xa8] sm:$0xff] %v1402_v54  ;;  %v1764_v57 = vadd.f32 %v1763_v56, %v1762_v55  ;;  %v1765_v58 = vpop.f32.mrb[46].mxu0 }
 0x156   : > { %v1766_v59 = vpop.f32.mrb[47].mxu0  ;;  %v1236_v60 = vpop.f32.mrb[44].mxu1 }
 0x157   : > { %v1767_v61 = vadd.f32 %v1766_v59, %v1765_v58  ;;  %v1237_v62 = vadd.f32 %v1764_v57, %v1236_v60  ;;  %v1238_v63 = vpop.f32.mrb[45].mxu1 }
 0x158   : > { %v1239_v0 = vpop.f32.mrb[46].mxu1 }
 0x159   : > { %v1403_v1 = vadd.f32 %v2180_v32, %v1237_v62  ;;  %v1240_v2 = vadd.f32 %v1767_v61, %v1239_v0  ;;  %v1241_v3 = vpop.f32.mrb[47].mxu1 }
 0x15b   : > { %1435 = vst [vmem:[%s2185_s29 + $0xb0] sm:$0xff] %v1403_v1  ;;  %v1404_v4 = vadd.f32 %v2180_v32, %v1240_v2  ;;  %v1768_v5 = vpop.f32.mrb[48].mxu0 }
 0x15c   : > { %v1769_v6 = vpop.f32.mrb[49].mxu0 }
 0x15d   : > { %1436 = vst [vmem:[%s2185_s29 + $0xb8] sm:$0xff] %v1404_v4  ;;  %v1770_v7 = vadd.f32 %v1769_v6, %v1768_v5  ;;  %v1771_v8 = vpop.f32.mrb[50].mxu0 }
 0x15e   : > { %v1772_v9 = vpop.f32.mrb[51].mxu0  ;;  %v1244_v10 = vpop.f32.mrb[48].mxu1 }
 0x15f   : > { %v1773_v11 = vadd.f32 %v1772_v9, %v1771_v8  ;;  %v1245_v12 = vadd.f32 %v1770_v7, %v1244_v10  ;;  %v1246_v13 = vpop.f32.mrb[49].mxu1 }
 0x160   : > { %v1247_v14 = vpop.f32.mrb[50].mxu1 }
 0x161   : > { %v1405_v15 = vadd.f32 %v2180_v32, %v1245_v12  ;;  %v1248_v16 = vadd.f32 %v1773_v11, %v1247_v14  ;;  %v1249_v17 = vpop.f32.mrb[51].mxu1 }
 0x163   : > { %1437 = vst [vmem:[%s2185_s29 + $0xc0] sm:$0xff] %v1405_v15  ;;  %v1406_v18 = vadd.f32 %v2180_v32, %v1248_v16  ;;  %v1774_v19 = vpop.f32.mrb[52].mxu0 }
 0x164   : > { %v1775_v20 = vpop.f32.mrb[53].mxu0 }
 0x165   : > { %1438 = vst [vmem:[%s2185_s29 + $0xc8] sm:$0xff] %v1406_v18  ;;  %v1776_v21 = vadd.f32 %v1775_v20, %v1774_v19  ;;  %v1777_v22 = vpop.f32.mrb[54].mxu0 }
 0x166   : > { %v1778_v23 = vpop.f32.mrb[55].mxu0  ;;  %v1252_v24 = vpop.f32.mrb[52].mxu1 }
 0x167   : > { %v1779_v25 = vadd.f32 %v1778_v23, %v1777_v22  ;;  %v1253_v26 = vadd.f32 %v1776_v21, %v1252_v24  ;;  %v1254_v27 = vpop.f32.mrb[53].mxu1 }
 0x168   : > { %v1255_v28 = vpop.f32.mrb[54].mxu1 }
 0x169   : > { %v1407_v29 = vadd.f32 %v2180_v32, %v1253_v26  ;;  %v1256_v30 = vadd.f32 %v1779_v25, %v1255_v28  ;;  %v1257_v31 = vpop.f32.mrb[55].mxu1 }
 0x16b   : > { %1439 = vst [vmem:[%s2185_s29 + $0xd0] sm:$0xff] %v1407_v29  ;;  %v1408_v33 = vadd.f32 %v2180_v32, %v1256_v30  ;;  %v1780_v34 = vpop.f32.mrb[56].mxu0 }
 0x16c   : > { %v1781_v35 = vpop.f32.mrb[57].mxu0 }
 0x16d   : > { %1440 = vst [vmem:[%s2185_s29 + $0xd8] sm:$0xff] %v1408_v33  ;;  %v1782_v36 = vadd.f32 %v1781_v35, %v1780_v34  ;;  %v1783_v37 = vpop.f32.mrb[58].mxu0 }
 0x16e   : > { %v1784_v38 = vpop.f32.mrb[59].mxu0  ;;  %v1260_v39 = vpop.f32.mrb[56].mxu1 }
 0x16f   : > { %v1785_v40 = vadd.f32 %v1784_v38, %v1783_v37  ;;  %v1261_v41 = vadd.f32 %v1782_v36, %v1260_v39  ;;  %v1262_v42 = vpop.f32.mrb[57].mxu1 }
 0x170   : > { %v1263_v43 = vpop.f32.mrb[58].mxu1 }
 0x171   : > { %v1409_v44 = vadd.f32 %v2180_v32, %v1261_v41  ;;  %v1264_v45 = vadd.f32 %v1785_v40, %v1263_v43  ;;  %v1265_v46 = vpop.f32.mrb[59].mxu1 }
 0x173   : > { %1441 = vst [vmem:[%s2185_s29 + $0xe0] sm:$0xff] %v1409_v44  ;;  %v1410_v47 = vadd.f32 %v2180_v32, %v1264_v45  ;;  %v1786_v48 = vpop.f32.mrb[60].mxu0 }
 0x174   : > { %v1787_v49 = vpop.f32.mrb[61].mxu0 }
 0x175   : > { %1442 = vst [vmem:[%s2185_s29 + $0xe8] sm:$0xff] %v1410_v47  ;;  %v1788_v50 = vadd.f32 %v1787_v49, %v1786_v48  ;;  %v1789_v51 = vpop.f32.mrb[62].mxu0 }
 0x176   : > { %v1790_v52 = vpop.f32.mrb[63].mxu0  ;;  %v1268_v53 = vpop.f32.mrb[60].mxu1 }
 0x177   : > { %v1791_v54 = vadd.f32 %v1790_v52, %v1789_v51  ;;  %v1269_v55 = vadd.f32 %v1788_v50, %v1268_v53  ;;  %v1270_v56 = vpop.f32.mrb[61].mxu1 }
 0x178   : > { %v1271_v57 = vpop.f32.mrb[62].mxu1 }
 0x179   : > { %v1411_v58 = vadd.f32 %v2180_v32, %v1269_v55  ;;  %v1272_v59 = vadd.f32 %v1791_v54, %v1271_v57  ;;  %v1273_v60 = vpop.f32.mrb[63].mxu1 }
 0x17b   : > { %1443 = vst [vmem:[%s2185_s29 + $0xf0] sm:$0xff] %v1411_v58  ;;  %v1412_v61 = vadd.f32 %v2180_v32, %v1272_v59 }
 0x17d   : > { %1444 = vst [vmem:[%s2185_s29 + $0xf8] sm:$0xff] %v1412_v61 }
 0x17e PF: > { %s13_s14 = sadd.s32 1, %s1960_s14   ;;  %s2264_s12 = smov %s1956_s13 }
 0x17f   : > { %p10_p5 = scmp.ge.s32.totalorder %s13_s14, 4   ;;  %s2265_s13 = smov %s2267_s15 }
 0x181   :  { %12 = sbr.rel (!%p10_p5) target bundleno = 2 (0x2), region = 76 }

</bundles_post_ra>
